<compile_context>
chip_gen: v7x
topology: tpu7x:2x2x1
jax: 0.10.0
libtpu: 0.0.40
codegen_flags: <defaults>
</compile_context>

<pallas_src>
import math

import jax
import jax.numpy as jnp
from jax.experimental import pallas as pl
from jax.experimental.pallas import tpu as pltpu

# ----------------- small, module-consistent configuration -----------------
B = 2                     # batch
NC_P, DC_P = 16, 8        # primary capsules: num x dim        (orig 64 x 20)
C = NC_P * DC_P           # channels into PrimaryCaps conv     (orig 1280) -> 128 lanes
K = 3                     # depthwise conv kernel size         (orig 8)
KK = K * K
S = 4                     # spatial size after conv            (orig 7)
SS = S * S                # spatial positions per batch element
HIN = S + K - 1           # backbone feature-map spatial size  (orig 14)
Q = 2                     # DigitCaps num_capsules
D2 = 16                   # DigitCaps dim_capsules             (orig 50)
I = 8                     # attention "heads"
NI = NC_P * I             # lane-dense (n, i) axis -> exactly 128 lanes
QD = Q * D2
P = B * SS

A_LRN = 1.0               # lateral_inhibit 'a'
K_LRN = 3e-5              # lateral_inhibit 'k'
EPS = 1e-20
BIAS2 = 1e-4              # DigitCapsP2.bias
INV_SQRT_D2 = 1.0 / math.sqrt(float(D2))

# The fused layout reuses the conv-channel lane grouping (NC_P groups of DC_P) as
# the routing grouping (NC_P groups of I); this relies on DC_P == I and C == 128.
assert DC_P == I and NC_P * I == 128 and C == 128


# ---------------------- in-lane reduction helpers --------------------------
def _class_reduce_lanes(x, stride, count, op):
    """Reduce over the lane classes {l, l+stride, l+2*stride, ...} (count members,
    stride*count == lane extent).  Every roll shift is a multiple of `stride`, so
    classes never mix; the result is broadcast to every lane of its class."""
    assert stride * count == x.shape[-1]
    shift = stride
    while shift < stride * count:
        x = op(x, jnp.roll(x, shift, axis=-1))
        shift *= 2
    return x


def _group_reduce_lanes(x, group, op):
    """Reduce over contiguous groups of `group` lanes along the last axis; the
    result is broadcast back to every lane of its group (cyclic-within-group tree)."""
    assert x.shape[-1] % group == 0
    pos = jax.lax.broadcasted_iota(jnp.int32, x.shape, x.ndim - 1) % group
    shift = 1
    while shift < group:
        wrapped = jnp.roll(x, shift - group, axis=-1)   # within-group wraparound source
        plain = jnp.roll(x, shift, axis=-1)
        x = op(x, jnp.where(pos < shift, wrapped, plain))
        shift *= 2
    return x


# ============================ fused kernel =================================
def capsnet_kernel(x_ref, w_ref, b_ref, waw_ref, waw2_ref, wtd_ref, o_ref, sv_ref):
    # x_ref   : (1, HIN, HIN, C)  NHWC backbone feature map (one batch element)
    # w_ref   : (KK, C)           depthwise conv weights (tap-major)
    # b_ref   : (1, C)            conv bias
    # waw_ref : (QD, NI)          (sum_h DigitCapsP1.W) * MHSA.W_affine  [n-major/i-minor lanes]
    # waw2_ref: (QD, NI)          waw**2 (recompute-u trick for a_diag)
    # wtd_ref : (QD, NI)          (W_t - max_n W_t) / sqrt(D2)  (softmax exponent factor, <= 0)
    # o_ref   : (1, SS, QD)       per-spatial-position DigitCaps rows (refolded in XLA)
    # sv_ref  : (S, S, NI) VMEM   squashed+summed primary capsules, broadcast per lane group

    # ---- PrimaryCaps: depthwise KxK "valid" conv (stride 1), im2col done in-kernel ----
    w = w_ref[...]                                                   # (KK, C)
    acc = jnp.zeros((S, S, C), jnp.float32) + b_ref[...]
    for ky in range(K):
        for kx in range(K):
            acc = acc + x_ref[0, ky:ky + S, kx:kx + S, :] * w[ky * K + kx, :][None, None, :]

    # ---- lateral inhibition (channel axis == lane axis) ----
    x_mean = jnp.mean(acc, axis=-1, keepdims=True)                   # (S, S, 1)
    denom = jnp.full((S, S, C), K_LRN, jnp.float32)
    for j in (-1, 0, 1):                                             # range(-r//2, r//2+1), r=2
        shifted = acc if j == 0 else jnp.roll(acc, j, axis=-1)
        denom = denom + A_LRN * jnp.abs(shifted - x_mean)
    y = acc / denom                                                  # exact divide (feeds softmax)

    # ---- PrimaryCaps.squash folded into sv = sum_d v.  Lanes are NC_P contiguous
    # groups of DC_P; the broadcast group sums land exactly on the (n, i) lane
    # layout the routing stage needs (DC_P == I). ----
    sy_b = _group_reduce_lanes(y, DC_P, jnp.add)                     # sum_d x   (broadcast)
    ss_b = _group_reduce_lanes(y * y, DC_P, jnp.add)                 # sum_d x^2 (broadcast)
    nrm = jnp.sqrt(ss_b)
    coef = 1.0 - 1.0 / (jnp.exp(nrm) + EPS)
    sv_ref[...] = coef * sy_b / (nrm + EPS)                          # exact: feeds softmax exponent

    # ---- DigitCapsP1 + MHSA + DigitCapsP2, chunked over spatial rows.  Each chunk
    # works on (S, QD, NI) = (4, 32, 128) slabs (16 vregs each); the real scf.for
    # bounds live ranges so peak pressure stays well under 64 vregs (no spills). ----
    @pl.loop(0, S)
    def _(sy):
        sv = sv_ref[sy]                                              # (S, NI)
        # a_diag = sum_n u^2 with u = sv * waw; u is not materialized (waw2 = waw^2).
        # Invariant: a_diag >= 0 (sum of squares), hence
        #   softmax_n(a_diag * W_t) exponent == a_diag * (W_t - max_n W_t) == a_diag * wtd.
        prod = (sv * sv)[:, None, :] * waw2_ref[...][None]           # (S, QD, NI)
        a_diag = _class_reduce_lanes(prod, I, NC_P, jnp.add)         # sum over n, broadcast
        e = jnp.exp(a_diag * wtd_ref[...][None])
        z = _class_reduce_lanes(e, I, NC_P, jnp.add)                 # softmax denom over n
        c = e * pl.reciprocal(z, approx=True)
        # DigitCapsP2.B is an all-zeros parameter; the `C + B` add is dropped.
        # vraw = sum_{n,i} u * c, recomputing u = sv * waw instead of keeping it live.
        vraw = jnp.sum(waw_ref[...][None] * (sv[:, None, :] * c), axis=-1) + BIAS2  # (S, QD)

        # ---- DigitCapsP2.squash over dim_capsules (contiguous groups of D2 lanes) ----
        n2sq = _group_reduce_lanes(vraw * vraw, D2, jnp.add)         # ||v||^2, broadcast
        n2 = jnp.sqrt(n2sq)
        coef2 = n2sq * pl.reciprocal(1.0 + n2sq, approx=True)
        out = coef2 * vraw * pl.reciprocal(n2 + EPS, approx=True)    # (S, QD)

        row0 = pl.multiple_of(sy * S, S)
        o_ref[0, pl.ds(row0, S), :] = out.astype(o_ref.dtype)


def efficient_capsnet_forward(x_nchw, params):
    # One NCHW->NHWC transpose puts channels on the lane axis; the KxK im2col lives
    # inside the kernel, so the wrapper is transpose + pallas_call + free reshape.
    x = jnp.transpose(x_nchw, (0, 2, 3, 1))                          # (B, HIN, HIN, C)
    out = pl.pallas_call(
        capsnet_kernel,
        out_shape=jax.ShapeDtypeStruct((B, SS, QD), jnp.float32),
        grid=(B,),
        in_specs=[
            pl.BlockSpec((1, HIN, HIN, C), lambda b: (b, 0, 0, 0)),
            pl.BlockSpec((KK, C), lambda b: (0, 0)),
            pl.BlockSpec((1, C), lambda b: (0, 0)),
            pl.BlockSpec((QD, NI), lambda b: (0, 0)),
            pl.BlockSpec((QD, NI), lambda b: (0, 0)),
            pl.BlockSpec((QD, NI), lambda b: (0, 0)),
        ],
        out_specs=pl.BlockSpec((1, SS, QD), lambda b: (b, 0, 0)),
        scratch_shapes=[pltpu.VMEM((S, S, NI), jnp.float32)],
        # grid=(B,): one batch element per grid step.  On v7x switch this axis to
        # pltpu.CORE_PARALLEL so the two TensorCores each take one element; on
        # single-TC v5e/v6e the 2nd step only costs ~0.35us, so one build is kept.
        compiler_params=pltpu.CompilerParams(dimension_semantics=("parallel",)),
    )(x, params["conv_wk"], params["conv_b"], params["waw"], params["waw2"], params["wtd"])
    # Row-major (b, s, q, d) -> (b, q, s*d) is exactly torch's `v.view(batch, 2, -1)`:
    # a free contiguous reshape done in XLA instead of an in-kernel lane shuffle.
    return out.reshape(B, Q, SS * D2)


# ============================ params =======================================
def init_params(key):
    k = jax.random.split(key, 5)
    # PrimaryCaps depthwise conv: weight (C, 1, K, K), bias (C,)
    conv_w = jax.random.normal(k[0], (C, 1, K, K), jnp.float32) * (1.0 / K)
    conv_b = jax.random.normal(k[1], (C,), jnp.float32) * 0.01
    # DigitCapsP1.W: (1, NC_P, Q, DC_P, D2)
    W1 = jax.random.normal(k[2], (1, NC_P, Q, DC_P, D2), jnp.float32) * math.sqrt(2.0 / DC_P)
    # MHSA.W_affine_other: (1, 1, Q, D2, NC_P, I);  MHSA.W_t: (1, Q, D2, NC_P, I)
    W_affine = jax.random.normal(k[3], (1, 1, Q, D2, NC_P, I), jnp.float32) * 0.1
    W_t = jax.random.normal(k[4], (1, Q, D2, NC_P, I), jnp.float32) * math.sqrt(2.0 / NC_P)

    conv_w_kkc = jnp.transpose(conv_w[:, 0, :, :], (1, 2, 0))        # (K, K, C)
    sw = jnp.transpose(jnp.sum(W1[0], axis=2), (1, 2, 0))            # (Q, D2, NC_P) = sum_h W
    wa = W_affine[0, 0]                                              # (Q, D2, NC_P, I)
    wt = W_t[0]                                                      # (Q, D2, NC_P, I)

    waw = (sw[..., None] * wa).reshape(QD, NI)                       # sum_h W folded into W_affine
    # softmax-exponent factor: (W_t - max_n W_t)/sqrt(D2)  (valid because a_diag >= 0)
    wtd = (INV_SQRT_D2 * (wt - jnp.max(wt, axis=2, keepdims=True))).reshape(QD, NI)
    return dict(
        # reference-layout parameters
        conv_w=conv_w_kkc,
        conv_b=conv_b.reshape(1, C),
        sw=sw, wa=wa, wt=wt,
        b2=jnp.zeros((Q, D2, NC_P, I), jnp.float32),                 # DigitCapsP2.B (zeros)
        # kernel-layout (lane-dense) parameters
        conv_wk=conv_w_kkc.reshape(KK, C),                           # (KK, C)
        waw=waw,
        waw2=waw * waw,
        wtd=wtd,
    )


# ============================ pure-JAX reference ===========================
def reference_forward(x_nchw, params):
    x = jnp.transpose(x_nchw, (0, 2, 3, 1))
    w, b = params["conv_w"], params["conv_b"][0]
    acc = jnp.zeros((B, S, S, C), jnp.float32)
    for ky in range(K):
        for kx in range(K):
            acc = acc + x[:, ky:ky + S, kx:kx + S, :] * w[ky, kx][None, None, None, :]
    acc = acc + b[None, None, None, :]
    xm = jnp.mean(acc, axis=-1, keepdims=True)
    denom = jnp.full_like(acc, K_LRN)
    for j in (-1, 0, 1):
        shifted = acc if j == 0 else jnp.roll(acc, j, axis=-1)
        denom = denom + A_LRN * jnp.abs(shifted - xm)
    vr = (acc / denom).reshape(P, NC_P, DC_P)

    nrm = jnp.sqrt(jnp.sum(vr * vr, axis=-1, keepdims=True))
    v = (1.0 - 1.0 / (jnp.exp(nrm) + EPS)) * vr / (nrm + EPS)
    sv = jnp.sum(v, axis=-1)                                         # (P, N)
    u_hat = sv[:, None, None, :] * params["sw"][None]                # (P, Q, D2, N)
    u_hat_i = u_hat[..., None] * params["wa"][None]                  # (P, Q, D2, N, I)
    a_diag = jnp.sum(u_hat_i * u_hat_i, axis=3) * INV_SQRT_D2
    a_att = a_diag[:, :, :, None, :] * params["wt"][None]
    c = jax.nn.softmax(a_att, axis=3) + params["b2"][None]
    vraw = jnp.sum(u_hat_i * c, axis=(3, 4)) + BIAS2
    n2 = jnp.sqrt(jnp.sum(vraw * vraw, axis=-1, keepdims=True))
    out = (n2 * n2 / (1.0 + n2 * n2)) * vraw / (n2 + EPS)
    return out.reshape(B, Q, -1)


# ================================ main =====================================
if __name__ == "__main__":
    key = jax.random.PRNGKey(0)
    kdata, kparams = jax.random.split(key)
    # x is the feature map the DenseNet backbone would produce (NCHW).
    x = jax.random.normal(kdata, (B, C, HIN, HIN), jnp.float32)
    params = init_params(kparams)

    out = jax.jit(efficient_capsnet_forward)(x, params)
    out = jax.block_until_ready(out)

    ref = reference_forward(x, params)
    assert out.shape == (B, Q, SS * D2), out.shape
    assert bool(jnp.all(jnp.isfinite(out)))
    assert bool(jnp.allclose(out, ref, rtol=2e-3, atol=2e-3)), float(jnp.max(jnp.abs(out - ref)))
    print("KERNEL_OK")
</pallas_src>

<mosaic_0001>
module attributes {stable_mosaic.version = 11 : i64} {
  func.func @capsnet_kernel(%arg0: i32, %arg1: memref<1x6x6x128xf32, #tpu.memory_space<vmem>>, %arg2: memref<9x128xf32, #tpu.memory_space<vmem>>, %arg3: memref<1x128xf32, #tpu.memory_space<vmem>>, %arg4: memref<32x128xf32, #tpu.memory_space<vmem>>, %arg5: memref<32x128xf32, #tpu.memory_space<vmem>>, %arg6: memref<32x128xf32, #tpu.memory_space<vmem>>, %arg7: memref<1x16x32xf32, #tpu.memory_space<vmem>>, %arg8: memref<4x4x128xf32, #tpu.memory_space<vmem>>) attributes {dimension_semantics = [#tpu.dimension_semantics<parallel>], iteration_bounds = array<i64: 2>, scalar_prefetch = 0 : i64, scratch_operands = 1 : i64, tpu.core_type = #tpu.core_type<tc>, window_params = [{transform_indices = @transform_0, window_bounds = array<i64: 1, 6, 6, 128>}, {pipeline_mode = #tpu.pipeline_mode<synchronous>, transform_indices = @transform_1, window_bounds = array<i64: 9, 128>}, {pipeline_mode = #tpu.pipeline_mode<synchronous>, transform_indices = @transform_2, window_bounds = array<i64: 1, 128>}, {pipeline_mode = #tpu.pipeline_mode<synchronous>, transform_indices = @transform_3, window_bounds = array<i64: 32, 128>}, {pipeline_mode = #tpu.pipeline_mode<synchronous>, transform_indices = @transform_4, window_bounds = array<i64: 32, 128>}, {pipeline_mode = #tpu.pipeline_mode<synchronous>, transform_indices = @transform_5, window_bounds = array<i64: 32, 128>}, {transform_indices = @transform_6, window_bounds = array<i64: 1, 16, 32>}]} {
    %c0 = arith.constant 0 : index
    %c0_0 = arith.constant 0 : index
    %0 = vector.load %arg2[%c0, %c0_0] : memref<9x128xf32, #tpu.memory_space<vmem>>, vector<9x128xf32>
    %cst = arith.constant 0.000000e+00 : f32
    %1 = vector.broadcast %cst : f32 to vector<4x4x128xf32>
    %c0_1 = arith.constant 0 : index
    %c0_2 = arith.constant 0 : index
    %2 = vector.load %arg3[%c0_1, %c0_2] : memref<1x128xf32, #tpu.memory_space<vmem>>, vector<1x128xf32>
    %3 = vector.shape_cast %2 : vector<1x128xf32> to vector<1x1x128xf32>
    %4 = vector.broadcast %3 : vector<1x1x128xf32> to vector<4x4x128xf32>
    %5 = arith.addf %1, %4 : vector<4x4x128xf32>
    %c0_3 = arith.constant 0 : index
    %c0_4 = arith.constant 0 : index
    %c0_5 = arith.constant 0 : index
    %c0_6 = arith.constant 0 : index
    %6 = vector.load %arg1[%c0_3, %c0_4, %c0_5, %c0_6] : memref<1x6x6x128xf32, #tpu.memory_space<vmem>>, vector<1x4x4x128xf32>
    %7 = vector.shape_cast %6 : vector<1x4x4x128xf32> to vector<4x4x128xf32>
    %8 = vector.extract_strided_slice %0 {offsets = [0, 0], sizes = [1, 128], strides = [1, 1]} : vector<9x128xf32> to vector<1x128xf32>
    %9 = vector.shape_cast %8 : vector<1x128xf32> to vector<128xf32>
    %10 = vector.shape_cast %9 : vector<128xf32> to vector<1x1x128xf32>
    %11 = vector.broadcast %10 : vector<1x1x128xf32> to vector<4x4x128xf32>
    %12 = arith.mulf %7, %11 : vector<4x4x128xf32>
    %13 = arith.addf %5, %12 : vector<4x4x128xf32>
    %c0_7 = arith.constant 0 : index
    %c0_8 = arith.constant 0 : index
    %c1 = arith.constant 1 : index
    %c0_9 = arith.constant 0 : index
    %14 = vector.load %arg1[%c0_7, %c0_8, %c1, %c0_9] : memref<1x6x6x128xf32, #tpu.memory_space<vmem>>, vector<1x4x4x128xf32>
    %15 = vector.shape_cast %14 : vector<1x4x4x128xf32> to vector<4x4x128xf32>
    %16 = vector.extract_strided_slice %0 {offsets = [1, 0], sizes = [1, 128], strides = [1, 1]} : vector<9x128xf32> to vector<1x128xf32>
    %17 = vector.shape_cast %16 : vector<1x128xf32> to vector<128xf32>
    %18 = vector.shape_cast %17 : vector<128xf32> to vector<1x1x128xf32>
    %19 = vector.broadcast %18 : vector<1x1x128xf32> to vector<4x4x128xf32>
    %20 = arith.mulf %15, %19 : vector<4x4x128xf32>
    %21 = arith.addf %13, %20 : vector<4x4x128xf32>
    %c0_10 = arith.constant 0 : index
    %c0_11 = arith.constant 0 : index
    %c2 = arith.constant 2 : index
    %c0_12 = arith.constant 0 : index
    %22 = vector.load %arg1[%c0_10, %c0_11, %c2, %c0_12] : memref<1x6x6x128xf32, #tpu.memory_space<vmem>>, vector<1x4x4x128xf32>
    %23 = vector.shape_cast %22 : vector<1x4x4x128xf32> to vector<4x4x128xf32>
    %24 = vector.extract_strided_slice %0 {offsets = [2, 0], sizes = [1, 128], strides = [1, 1]} : vector<9x128xf32> to vector<1x128xf32>
    %25 = vector.shape_cast %24 : vector<1x128xf32> to vector<128xf32>
    %26 = vector.shape_cast %25 : vector<128xf32> to vector<1x1x128xf32>
    %27 = vector.broadcast %26 : vector<1x1x128xf32> to vector<4x4x128xf32>
    %28 = arith.mulf %23, %27 : vector<4x4x128xf32>
    %29 = arith.addf %21, %28 : vector<4x4x128xf32>
    %c0_13 = arith.constant 0 : index
    %c1_14 = arith.constant 1 : index
    %c0_15 = arith.constant 0 : index
    %c0_16 = arith.constant 0 : index
    %30 = vector.load %arg1[%c0_13, %c1_14, %c0_15, %c0_16] : memref<1x6x6x128xf32, #tpu.memory_space<vmem>>, vector<1x4x4x128xf32>
    %31 = vector.shape_cast %30 : vector<1x4x4x128xf32> to vector<4x4x128xf32>
    %32 = vector.extract_strided_slice %0 {offsets = [3, 0], sizes = [1, 128], strides = [1, 1]} : vector<9x128xf32> to vector<1x128xf32>
    %33 = vector.shape_cast %32 : vector<1x128xf32> to vector<128xf32>
    %34 = vector.shape_cast %33 : vector<128xf32> to vector<1x1x128xf32>
    %35 = vector.broadcast %34 : vector<1x1x128xf32> to vector<4x4x128xf32>
    %36 = arith.mulf %31, %35 : vector<4x4x128xf32>
    %37 = arith.addf %29, %36 : vector<4x4x128xf32>
    %c0_17 = arith.constant 0 : index
    %c1_18 = arith.constant 1 : index
    %c1_19 = arith.constant 1 : index
    %c0_20 = arith.constant 0 : index
    %38 = vector.load %arg1[%c0_17, %c1_18, %c1_19, %c0_20] : memref<1x6x6x128xf32, #tpu.memory_space<vmem>>, vector<1x4x4x128xf32>
    %39 = vector.shape_cast %38 : vector<1x4x4x128xf32> to vector<4x4x128xf32>
    %40 = vector.extract_strided_slice %0 {offsets = [4, 0], sizes = [1, 128], strides = [1, 1]} : vector<9x128xf32> to vector<1x128xf32>
    %41 = vector.shape_cast %40 : vector<1x128xf32> to vector<128xf32>
    %42 = vector.shape_cast %41 : vector<128xf32> to vector<1x1x128xf32>
    %43 = vector.broadcast %42 : vector<1x1x128xf32> to vector<4x4x128xf32>
    %44 = arith.mulf %39, %43 : vector<4x4x128xf32>
    %45 = arith.addf %37, %44 : vector<4x4x128xf32>
    %c0_21 = arith.constant 0 : index
    %c1_22 = arith.constant 1 : index
    %c2_23 = arith.constant 2 : index
    %c0_24 = arith.constant 0 : index
    %46 = vector.load %arg1[%c0_21, %c1_22, %c2_23, %c0_24] : memref<1x6x6x128xf32, #tpu.memory_space<vmem>>, vector<1x4x4x128xf32>
    %47 = vector.shape_cast %46 : vector<1x4x4x128xf32> to vector<4x4x128xf32>
    %48 = vector.extract_strided_slice %0 {offsets = [5, 0], sizes = [1, 128], strides = [1, 1]} : vector<9x128xf32> to vector<1x128xf32>
    %49 = vector.shape_cast %48 : vector<1x128xf32> to vector<128xf32>
    %50 = vector.shape_cast %49 : vector<128xf32> to vector<1x1x128xf32>
    %51 = vector.broadcast %50 : vector<1x1x128xf32> to vector<4x4x128xf32>
    %52 = arith.mulf %47, %51 : vector<4x4x128xf32>
    %53 = arith.addf %45, %52 : vector<4x4x128xf32>
    %c0_25 = arith.constant 0 : index
    %c2_26 = arith.constant 2 : index
    %c0_27 = arith.constant 0 : index
    %c0_28 = arith.constant 0 : index
    %54 = vector.load %arg1[%c0_25, %c2_26, %c0_27, %c0_28] : memref<1x6x6x128xf32, #tpu.memory_space<vmem>>, vector<1x4x4x128xf32>
    %55 = vector.shape_cast %54 : vector<1x4x4x128xf32> to vector<4x4x128xf32>
    %56 = vector.extract_strided_slice %0 {offsets = [6, 0], sizes = [1, 128], strides = [1, 1]} : vector<9x128xf32> to vector<1x128xf32>
    %57 = vector.shape_cast %56 : vector<1x128xf32> to vector<128xf32>
    %58 = vector.shape_cast %57 : vector<128xf32> to vector<1x1x128xf32>
    %59 = vector.broadcast %58 : vector<1x1x128xf32> to vector<4x4x128xf32>
    %60 = arith.mulf %55, %59 : vector<4x4x128xf32>
    %61 = arith.addf %53, %60 : vector<4x4x128xf32>
    %c0_29 = arith.constant 0 : index
    %c2_30 = arith.constant 2 : index
    %c1_31 = arith.constant 1 : index
    %c0_32 = arith.constant 0 : index
    %62 = vector.load %arg1[%c0_29, %c2_30, %c1_31, %c0_32] : memref<1x6x6x128xf32, #tpu.memory_space<vmem>>, vector<1x4x4x128xf32>
    %63 = vector.shape_cast %62 : vector<1x4x4x128xf32> to vector<4x4x128xf32>
    %64 = vector.extract_strided_slice %0 {offsets = [7, 0], sizes = [1, 128], strides = [1, 1]} : vector<9x128xf32> to vector<1x128xf32>
    %65 = vector.shape_cast %64 : vector<1x128xf32> to vector<128xf32>
    %66 = vector.shape_cast %65 : vector<128xf32> to vector<1x1x128xf32>
    %67 = vector.broadcast %66 : vector<1x1x128xf32> to vector<4x4x128xf32>
    %68 = arith.mulf %63, %67 : vector<4x4x128xf32>
    %69 = arith.addf %61, %68 : vector<4x4x128xf32>
    %c0_33 = arith.constant 0 : index
    %c2_34 = arith.constant 2 : index
    %c2_35 = arith.constant 2 : index
    %c0_36 = arith.constant 0 : index
    %70 = vector.load %arg1[%c0_33, %c2_34, %c2_35, %c0_36] : memref<1x6x6x128xf32, #tpu.memory_space<vmem>>, vector<1x4x4x128xf32>
    %71 = vector.shape_cast %70 : vector<1x4x4x128xf32> to vector<4x4x128xf32>
    %72 = vector.extract_strided_slice %0 {offsets = [8, 0], sizes = [1, 128], strides = [1, 1]} : vector<9x128xf32> to vector<1x128xf32>
    %73 = vector.shape_cast %72 : vector<1x128xf32> to vector<128xf32>
    %74 = vector.shape_cast %73 : vector<128xf32> to vector<1x1x128xf32>
    %75 = vector.broadcast %74 : vector<1x1x128xf32> to vector<4x4x128xf32>
    %76 = arith.mulf %71, %75 : vector<4x4x128xf32>
    %77 = arith.addf %69, %76 : vector<4x4x128xf32>
    %cst_37 = arith.constant dense<0.000000e+00> : vector<4x4xf32>
    %78 = vector.multi_reduction <add>, %77, %cst_37 [2] : vector<4x4x128xf32> to vector<4x4xf32>
    %79 = vector.shape_cast %78 : vector<4x4xf32> to vector<4x4x1xf32>
    %cst_38 = arith.constant 1.280000e+02 : f32
    %80 = vector.broadcast %cst_38 : f32 to vector<4x4x1xf32>
    %81 = arith.divf %79, %80 : vector<4x4x1xf32>
    %cst_39 = arith.constant 3.000000e-05 : f32
    %82 = vector.broadcast %cst_39 : f32 to vector<4x4x128xf32>
    %83 = vector.extract_strided_slice %77 {offsets = [0, 0, 1], sizes = [4, 4, 127], strides = [1, 1, 1]} : vector<4x4x128xf32> to vector<4x4x127xf32>
    %84 = vector.extract_strided_slice %77 {offsets = [0, 0, 0], sizes = [4, 4, 1], strides = [1, 1, 1]} : vector<4x4x128xf32> to vector<4x4x1xf32>
    %85 = tpu.concatenate %83, %84 in 2 : vector<4x4x127xf32>, vector<4x4x1xf32> -> vector<4x4x128xf32>
    %86 = vector.broadcast %81 : vector<4x4x1xf32> to vector<4x4x128xf32>
    %87 = arith.subf %85, %86 : vector<4x4x128xf32>
    %88 = math.absf %87 : vector<4x4x128xf32>
    %cst_40 = arith.constant 1.000000e+00 : f32
    %89 = vector.broadcast %cst_40 : f32 to vector<4x4x128xf32>
    %90 = arith.mulf %89, %88 : vector<4x4x128xf32>
    %91 = arith.addf %82, %90 : vector<4x4x128xf32>
    %92 = vector.broadcast %81 : vector<4x4x1xf32> to vector<4x4x128xf32>
    %93 = arith.subf %77, %92 : vector<4x4x128xf32>
    %94 = math.absf %93 : vector<4x4x128xf32>
    %cst_41 = arith.constant 1.000000e+00 : f32
    %95 = vector.broadcast %cst_41 : f32 to vector<4x4x128xf32>
    %96 = arith.mulf %95, %94 : vector<4x4x128xf32>
    %97 = arith.addf %91, %96 : vector<4x4x128xf32>
    %98 = vector.extract_strided_slice %77 {offsets = [0, 0, 127], sizes = [4, 4, 1], strides = [1, 1, 1]} : vector<4x4x128xf32> to vector<4x4x1xf32>
    %99 = vector.extract_strided_slice %77 {offsets = [0, 0, 0], sizes = [4, 4, 127], strides = [1, 1, 1]} : vector<4x4x128xf32> to vector<4x4x127xf32>
    %100 = tpu.concatenate %98, %99 in 2 : vector<4x4x1xf32>, vector<4x4x127xf32> -> vector<4x4x128xf32>
    %101 = vector.broadcast %81 : vector<4x4x1xf32> to vector<4x4x128xf32>
    %102 = arith.subf %100, %101 : vector<4x4x128xf32>
    %103 = math.absf %102 : vector<4x4x128xf32>
    %cst_42 = arith.constant 1.000000e+00 : f32
    %104 = vector.broadcast %cst_42 : f32 to vector<4x4x128xf32>
    %105 = arith.mulf %104, %103 : vector<4x4x128xf32>
    %106 = arith.addf %97, %105 : vector<4x4x128xf32>
    %107 = arith.divf %77, %106 : vector<4x4x128xf32>
    %108 = tpu.iota {dimensions = array<i32: 2>} : vector<4x4x128xi32>
    %c8_i32 = arith.constant 8 : i32
    %c0_i32 = arith.constant 0 : i32
    %109 = arith.cmpi eq, %c8_i32, %c0_i32 : i32
    %c1_i32 = arith.constant 1 : i32
    %110 = arith.select %109, %c1_i32, %c8_i32 : i32
    %111 = vector.broadcast %110 : i32 to vector<4x4x128xi32>
    %112 = arith.remsi %108, %111 : vector<4x4x128xi32>
    %c0_i32_43 = arith.constant 0 : i32
    %113 = vector.broadcast %c0_i32_43 : i32 to vector<4x4x128xi32>
    %114 = arith.cmpi ne, %112, %113 : vector<4x4x128xi32>
    %c0_i32_44 = arith.constant 0 : i32
    %115 = vector.broadcast %c0_i32_44 : i32 to vector<4x4x128xi32>
    %116 = arith.cmpi slt, %112, %115 : vector<4x4x128xi32>
    %c0_i32_45 = arith.constant 0 : i32
    %117 = arith.cmpi slt, %110, %c0_i32_45 : i32
    %118 = vector.broadcast %117 : i1 to vector<4x4x128xi1>
    %119 = vector.broadcast %118 : vector<4x4x128xi1> to vector<4x4x128xi1>
    %120 = arith.xori %116, %119 : vector<4x4x128xi1>
    %121 = arith.andi %120, %114 : vector<4x4x128xi1>
    %122 = vector.broadcast %110 : i32 to vector<4x4x128xi32>
    %123 = arith.addi %112, %122 : vector<4x4x128xi32>
    %124 = arith.select %121, %123, %112 : vector<4x4x128xi1>, vector<4x4x128xi32>
    %125 = vector.extract_strided_slice %107 {offsets = [0, 0, 7], sizes = [4, 4, 121], strides = [1, 1, 1]} : vector<4x4x128xf32> to vector<4x4x121xf32>
    %126 = vector.extract_strided_slice %107 {offsets = [0, 0, 0], sizes = [4, 4, 7], strides = [1, 1, 1]} : vector<4x4x128xf32> to vector<4x4x7xf32>
    %127 = tpu.concatenate %125, %126 in 2 : vector<4x4x121xf32>, vector<4x4x7xf32> -> vector<4x4x128xf32>
    %128 = vector.extract_strided_slice %107 {offsets = [0, 0, 127], sizes = [4, 4, 1], strides = [1, 1, 1]} : vector<4x4x128xf32> to vector<4x4x1xf32>
    %129 = vector.extract_strided_slice %107 {offsets = [0, 0, 0], sizes = [4, 4, 127], strides = [1, 1, 1]} : vector<4x4x128xf32> to vector<4x4x127xf32>
    %130 = tpu.concatenate %128, %129 in 2 : vector<4x4x1xf32>, vector<4x4x127xf32> -> vector<4x4x128xf32>
    %c1_i32_46 = arith.constant 1 : i32
    %131 = vector.broadcast %c1_i32_46 : i32 to vector<4x4x128xi32>
    %132 = arith.cmpi slt, %124, %131 : vector<4x4x128xi32>
    %133 = arith.select %132, %127, %130 : vector<4x4x128xi1>, vector<4x4x128xf32>
    %134 = arith.addf %107, %133 : vector<4x4x128xf32>
    %135 = vector.extract_strided_slice %134 {offsets = [0, 0, 6], sizes = [4, 4, 122], strides = [1, 1, 1]} : vector<4x4x128xf32> to vector<4x4x122xf32>
    %136 = vector.extract_strided_slice %134 {offsets = [0, 0, 0], sizes = [4, 4, 6], strides = [1, 1, 1]} : vector<4x4x128xf32> to vector<4x4x6xf32>
    %137 = tpu.concatenate %135, %136 in 2 : vector<4x4x122xf32>, vector<4x4x6xf32> -> vector<4x4x128xf32>
    %138 = vector.extract_strided_slice %134 {offsets = [0, 0, 126], sizes = [4, 4, 2], strides = [1, 1, 1]} : vector<4x4x128xf32> to vector<4x4x2xf32>
    %139 = vector.extract_strided_slice %134 {offsets = [0, 0, 0], sizes = [4, 4, 126], strides = [1, 1, 1]} : vector<4x4x128xf32> to vector<4x4x126xf32>
    %140 = tpu.concatenate %138, %139 in 2 : vector<4x4x2xf32>, vector<4x4x126xf32> -> vector<4x4x128xf32>
    %c2_i32 = arith.constant 2 : i32
    %141 = vector.broadcast %c2_i32 : i32 to vector<4x4x128xi32>
    %142 = arith.cmpi slt, %124, %141 : vector<4x4x128xi32>
    %143 = arith.select %142, %137, %140 : vector<4x4x128xi1>, vector<4x4x128xf32>
    %144 = arith.addf %134, %143 : vector<4x4x128xf32>
    %145 = vector.extract_strided_slice %144 {offsets = [0, 0, 4], sizes = [4, 4, 124], strides = [1, 1, 1]} : vector<4x4x128xf32> to vector<4x4x124xf32>
    %146 = vector.extract_strided_slice %144 {offsets = [0, 0, 0], sizes = [4, 4, 4], strides = [1, 1, 1]} : vector<4x4x128xf32> to vector<4x4x4xf32>
    %147 = tpu.concatenate %145, %146 in 2 : vector<4x4x124xf32>, vector<4x4x4xf32> -> vector<4x4x128xf32>
    %148 = vector.extract_strided_slice %144 {offsets = [0, 0, 124], sizes = [4, 4, 4], strides = [1, 1, 1]} : vector<4x4x128xf32> to vector<4x4x4xf32>
    %149 = vector.extract_strided_slice %144 {offsets = [0, 0, 0], sizes = [4, 4, 124], strides = [1, 1, 1]} : vector<4x4x128xf32> to vector<4x4x124xf32>
    %150 = tpu.concatenate %148, %149 in 2 : vector<4x4x4xf32>, vector<4x4x124xf32> -> vector<4x4x128xf32>
    %c4_i32 = arith.constant 4 : i32
    %151 = vector.broadcast %c4_i32 : i32 to vector<4x4x128xi32>
    %152 = arith.cmpi slt, %124, %151 : vector<4x4x128xi32>
    %153 = arith.select %152, %147, %150 : vector<4x4x128xi1>, vector<4x4x128xf32>
    %154 = arith.addf %144, %153 : vector<4x4x128xf32>
    %155 = arith.mulf %107, %107 : vector<4x4x128xf32>
    %156 = tpu.iota {dimensions = array<i32: 2>} : vector<4x4x128xi32>
    %c8_i32_47 = arith.constant 8 : i32
    %c0_i32_48 = arith.constant 0 : i32
    %157 = arith.cmpi eq, %c8_i32_47, %c0_i32_48 : i32
    %c1_i32_49 = arith.constant 1 : i32
    %158 = arith.select %157, %c1_i32_49, %c8_i32_47 : i32
    %159 = vector.broadcast %158 : i32 to vector<4x4x128xi32>
    %160 = arith.remsi %156, %159 : vector<4x4x128xi32>
    %c0_i32_50 = arith.constant 0 : i32
    %161 = vector.broadcast %c0_i32_50 : i32 to vector<4x4x128xi32>
    %162 = arith.cmpi ne, %160, %161 : vector<4x4x128xi32>
    %c0_i32_51 = arith.constant 0 : i32
    %163 = vector.broadcast %c0_i32_51 : i32 to vector<4x4x128xi32>
    %164 = arith.cmpi slt, %160, %163 : vector<4x4x128xi32>
    %c0_i32_52 = arith.constant 0 : i32
    %165 = arith.cmpi slt, %158, %c0_i32_52 : i32
    %166 = vector.broadcast %165 : i1 to vector<4x4x128xi1>
    %167 = vector.broadcast %166 : vector<4x4x128xi1> to vector<4x4x128xi1>
    %168 = arith.xori %164, %167 : vector<4x4x128xi1>
    %169 = arith.andi %168, %162 : vector<4x4x128xi1>
    %170 = vector.broadcast %158 : i32 to vector<4x4x128xi32>
    %171 = arith.addi %160, %170 : vector<4x4x128xi32>
    %172 = arith.select %169, %171, %160 : vector<4x4x128xi1>, vector<4x4x128xi32>
    %173 = vector.extract_strided_slice %155 {offsets = [0, 0, 7], sizes = [4, 4, 121], strides = [1, 1, 1]} : vector<4x4x128xf32> to vector<4x4x121xf32>
    %174 = vector.extract_strided_slice %155 {offsets = [0, 0, 0], sizes = [4, 4, 7], strides = [1, 1, 1]} : vector<4x4x128xf32> to vector<4x4x7xf32>
    %175 = tpu.concatenate %173, %174 in 2 : vector<4x4x121xf32>, vector<4x4x7xf32> -> vector<4x4x128xf32>
    %176 = vector.extract_strided_slice %155 {offsets = [0, 0, 127], sizes = [4, 4, 1], strides = [1, 1, 1]} : vector<4x4x128xf32> to vector<4x4x1xf32>
    %177 = vector.extract_strided_slice %155 {offsets = [0, 0, 0], sizes = [4, 4, 127], strides = [1, 1, 1]} : vector<4x4x128xf32> to vector<4x4x127xf32>
    %178 = tpu.concatenate %176, %177 in 2 : vector<4x4x1xf32>, vector<4x4x127xf32> -> vector<4x4x128xf32>
    %c1_i32_53 = arith.constant 1 : i32
    %179 = vector.broadcast %c1_i32_53 : i32 to vector<4x4x128xi32>
    %180 = arith.cmpi slt, %172, %179 : vector<4x4x128xi32>
    %181 = arith.select %180, %175, %178 : vector<4x4x128xi1>, vector<4x4x128xf32>
    %182 = arith.addf %155, %181 : vector<4x4x128xf32>
    %183 = vector.extract_strided_slice %182 {offsets = [0, 0, 6], sizes = [4, 4, 122], strides = [1, 1, 1]} : vector<4x4x128xf32> to vector<4x4x122xf32>
    %184 = vector.extract_strided_slice %182 {offsets = [0, 0, 0], sizes = [4, 4, 6], strides = [1, 1, 1]} : vector<4x4x128xf32> to vector<4x4x6xf32>
    %185 = tpu.concatenate %183, %184 in 2 : vector<4x4x122xf32>, vector<4x4x6xf32> -> vector<4x4x128xf32>
    %186 = vector.extract_strided_slice %182 {offsets = [0, 0, 126], sizes = [4, 4, 2], strides = [1, 1, 1]} : vector<4x4x128xf32> to vector<4x4x2xf32>
    %187 = vector.extract_strided_slice %182 {offsets = [0, 0, 0], sizes = [4, 4, 126], strides = [1, 1, 1]} : vector<4x4x128xf32> to vector<4x4x126xf32>
    %188 = tpu.concatenate %186, %187 in 2 : vector<4x4x2xf32>, vector<4x4x126xf32> -> vector<4x4x128xf32>
    %c2_i32_54 = arith.constant 2 : i32
    %189 = vector.broadcast %c2_i32_54 : i32 to vector<4x4x128xi32>
    %190 = arith.cmpi slt, %172, %189 : vector<4x4x128xi32>
    %191 = arith.select %190, %185, %188 : vector<4x4x128xi1>, vector<4x4x128xf32>
    %192 = arith.addf %182, %191 : vector<4x4x128xf32>
    %193 = vector.extract_strided_slice %192 {offsets = [0, 0, 4], sizes = [4, 4, 124], strides = [1, 1, 1]} : vector<4x4x128xf32> to vector<4x4x124xf32>
    %194 = vector.extract_strided_slice %192 {offsets = [0, 0, 0], sizes = [4, 4, 4], strides = [1, 1, 1]} : vector<4x4x128xf32> to vector<4x4x4xf32>
    %195 = tpu.concatenate %193, %194 in 2 : vector<4x4x124xf32>, vector<4x4x4xf32> -> vector<4x4x128xf32>
    %196 = vector.extract_strided_slice %192 {offsets = [0, 0, 124], sizes = [4, 4, 4], strides = [1, 1, 1]} : vector<4x4x128xf32> to vector<4x4x4xf32>
    %197 = vector.extract_strided_slice %192 {offsets = [0, 0, 0], sizes = [4, 4, 124], strides = [1, 1, 1]} : vector<4x4x128xf32> to vector<4x4x124xf32>
    %198 = tpu.concatenate %196, %197 in 2 : vector<4x4x4xf32>, vector<4x4x124xf32> -> vector<4x4x128xf32>
    %c4_i32_55 = arith.constant 4 : i32
    %199 = vector.broadcast %c4_i32_55 : i32 to vector<4x4x128xi32>
    %200 = arith.cmpi slt, %172, %199 : vector<4x4x128xi32>
    %201 = arith.select %200, %195, %198 : vector<4x4x128xi1>, vector<4x4x128xf32>
    %202 = arith.addf %192, %201 : vector<4x4x128xf32>
    %203 = math.sqrt %202 : vector<4x4x128xf32>
    %204 = math.exp %203 : vector<4x4x128xf32>
    %cst_56 = arith.constant 9.99999968E-21 : f32
    %205 = vector.broadcast %cst_56 : f32 to vector<4x4x128xf32>
    %206 = arith.addf %204, %205 : vector<4x4x128xf32>
    %cst_57 = arith.constant 1.000000e+00 : f32
    %207 = vector.broadcast %cst_57 : f32 to vector<4x4x128xf32>
    %208 = arith.divf %207, %206 : vector<4x4x128xf32>
    %cst_58 = arith.constant 1.000000e+00 : f32
    %209 = vector.broadcast %cst_58 : f32 to vector<4x4x128xf32>
    %210 = arith.subf %209, %208 : vector<4x4x128xf32>
    %211 = arith.mulf %210, %154 : vector<4x4x128xf32>
    %cst_59 = arith.constant 9.99999968E-21 : f32
    %212 = vector.broadcast %cst_59 : f32 to vector<4x4x128xf32>
    %213 = arith.addf %203, %212 : vector<4x4x128xf32>
    %214 = arith.divf %211, %213 : vector<4x4x128xf32>
    %c0_60 = arith.constant 0 : index
    %c0_61 = arith.constant 0 : index
    %c0_62 = arith.constant 0 : index
    %215 = vector.load %arg8[%c0_60, %c0_61, %c0_62] : memref<4x4x128xf32, #tpu.memory_space<vmem>>, vector<4x4x128xf32>
    tpu.vector_store %arg8[%c0_60, %c0_61, %c0_62], %214 {strides = array<i32>} : memref<4x4x128xf32, #tpu.memory_space<vmem>>, vector<4x4x128xf32>,
    %c0_i32_63 = arith.constant 0 : i32
    %c4_i32_64 = arith.constant 4 : i32
    %216 = arith.addi %c0_i32_63, %c4_i32_64 : i32
    %c1_i32_65 = arith.constant 1 : i32
    scf.for %arg9 = %c0_i32_63 to %216 step %c1_i32_65  : i32 {
      %c1_i32_67 = arith.constant 1 : i32
      %217 = arith.muli %arg9, %c1_i32_67 : i32
      %c0_i32_68 = arith.constant 0 : i32
      %218 = arith.addi %c0_i32_68, %217 : i32
      %219 = arith.index_cast %218 : i32 to index
      %c0_69 = arith.constant 0 : index
      %c0_70 = arith.constant 0 : index
      %220 = vector.load %arg8[%219, %c0_69, %c0_70] : memref<4x4x128xf32, #tpu.memory_space<vmem>>, vector<1x4x128xf32>
      %221 = vector.shape_cast %220 : vector<1x4x128xf32> to vector<4x128xf32>
      %222 = arith.mulf %221, %221 : vector<4x128xf32>
      %223 = vector.shape_cast %222 : vector<4x128xf32> to vector<4x1x128xf32>
      %c0_71 = arith.constant 0 : index
      %c0_72 = arith.constant 0 : index
      %224 = vector.load %arg5[%c0_71, %c0_72] : memref<32x128xf32, #tpu.memory_space<vmem>>, vector<32x128xf32>
      %225 = vector.shape_cast %224 : vector<32x128xf32> to vector<1x32x128xf32>
      %226 = vector.broadcast %223 : vector<4x1x128xf32> to vector<4x32x128xf32>
      %227 = vector.broadcast %225 : vector<1x32x128xf32> to vector<4x32x128xf32>
      %228 = arith.mulf %226, %227 : vector<4x32x128xf32>
      %229 = vector.extract_strided_slice %228 {offsets = [0, 0, 120], sizes = [4, 32, 8], strides = [1, 1, 1]} : vector<4x32x128xf32> to vector<4x32x8xf32>
      %230 = vector.extract_strided_slice %228 {offsets = [0, 0, 0], sizes = [4, 32, 120], strides = [1, 1, 1]} : vector<4x32x128xf32> to vector<4x32x120xf32>
      %231 = tpu.concatenate %229, %230 in 2 : vector<4x32x8xf32>, vector<4x32x120xf32> -> vector<4x32x128xf32>
      %232 = arith.addf %228, %231 : vector<4x32x128xf32>
      %233 = vector.extract_strided_slice %232 {offsets = [0, 0, 112], sizes = [4, 32, 16], strides = [1, 1, 1]} : vector<4x32x128xf32> to vector<4x32x16xf32>
      %234 = vector.extract_strided_slice %232 {offsets = [0, 0, 0], sizes = [4, 32, 112], strides = [1, 1, 1]} : vector<4x32x128xf32> to vector<4x32x112xf32>
      %235 = tpu.concatenate %233, %234 in 2 : vector<4x32x16xf32>, vector<4x32x112xf32> -> vector<4x32x128xf32>
      %236 = arith.addf %232, %235 : vector<4x32x128xf32>
      %237 = vector.extract_strided_slice %236 {offsets = [0, 0, 96], sizes = [4, 32, 32], strides = [1, 1, 1]} : vector<4x32x128xf32> to vector<4x32x32xf32>
      %238 = vector.extract_strided_slice %236 {offsets = [0, 0, 0], sizes = [4, 32, 96], strides = [1, 1, 1]} : vector<4x32x128xf32> to vector<4x32x96xf32>
      %239 = tpu.concatenate %237, %238 in 2 : vector<4x32x32xf32>, vector<4x32x96xf32> -> vector<4x32x128xf32>
      %240 = arith.addf %236, %239 : vector<4x32x128xf32>
      %241 = vector.extract_strided_slice %240 {offsets = [0, 0, 64], sizes = [4, 32, 64], strides = [1, 1, 1]} : vector<4x32x128xf32> to vector<4x32x64xf32>
      %242 = vector.extract_strided_slice %240 {offsets = [0, 0, 0], sizes = [4, 32, 64], strides = [1, 1, 1]} : vector<4x32x128xf32> to vector<4x32x64xf32>
      %243 = tpu.concatenate %241, %242 in 2 : vector<4x32x64xf32>, vector<4x32x64xf32> -> vector<4x32x128xf32>
      %244 = arith.addf %240, %243 : vector<4x32x128xf32>
      %c0_73 = arith.constant 0 : index
      %c0_74 = arith.constant 0 : index
      %245 = vector.load %arg6[%c0_73, %c0_74] : memref<32x128xf32, #tpu.memory_space<vmem>>, vector<32x128xf32>
      %246 = vector.shape_cast %245 : vector<32x128xf32> to vector<1x32x128xf32>
      %247 = vector.broadcast %246 : vector<1x32x128xf32> to vector<4x32x128xf32>
      %248 = arith.mulf %244, %247 : vector<4x32x128xf32>
      %249 = math.exp %248 : vector<4x32x128xf32>
      %250 = vector.extract_strided_slice %249 {offsets = [0, 0, 120], sizes = [4, 32, 8], strides = [1, 1, 1]} : vector<4x32x128xf32> to vector<4x32x8xf32>
      %251 = vector.extract_strided_slice %249 {offsets = [0, 0, 0], sizes = [4, 32, 120], strides = [1, 1, 1]} : vector<4x32x128xf32> to vector<4x32x120xf32>
      %252 = tpu.concatenate %250, %251 in 2 : vector<4x32x8xf32>, vector<4x32x120xf32> -> vector<4x32x128xf32>
      %253 = arith.addf %249, %252 : vector<4x32x128xf32>
      %254 = vector.extract_strided_slice %253 {offsets = [0, 0, 112], sizes = [4, 32, 16], strides = [1, 1, 1]} : vector<4x32x128xf32> to vector<4x32x16xf32>
      %255 = vector.extract_strided_slice %253 {offsets = [0, 0, 0], sizes = [4, 32, 112], strides = [1, 1, 1]} : vector<4x32x128xf32> to vector<4x32x112xf32>
      %256 = tpu.concatenate %254, %255 in 2 : vector<4x32x16xf32>, vector<4x32x112xf32> -> vector<4x32x128xf32>
      %257 = arith.addf %253, %256 : vector<4x32x128xf32>
      %258 = vector.extract_strided_slice %257 {offsets = [0, 0, 96], sizes = [4, 32, 32], strides = [1, 1, 1]} : vector<4x32x128xf32> to vector<4x32x32xf32>
      %259 = vector.extract_strided_slice %257 {offsets = [0, 0, 0], sizes = [4, 32, 96], strides = [1, 1, 1]} : vector<4x32x128xf32> to vector<4x32x96xf32>
      %260 = tpu.concatenate %258, %259 in 2 : vector<4x32x32xf32>, vector<4x32x96xf32> -> vector<4x32x128xf32>
      %261 = arith.addf %257, %260 : vector<4x32x128xf32>
      %262 = vector.extract_strided_slice %261 {offsets = [0, 0, 64], sizes = [4, 32, 64], strides = [1, 1, 1]} : vector<4x32x128xf32> to vector<4x32x64xf32>
      %263 = vector.extract_strided_slice %261 {offsets = [0, 0, 0], sizes = [4, 32, 64], strides = [1, 1, 1]} : vector<4x32x128xf32> to vector<4x32x64xf32>
      %264 = tpu.concatenate %262, %263 in 2 : vector<4x32x64xf32>, vector<4x32x64xf32> -> vector<4x32x128xf32>
      %265 = arith.addf %261, %264 : vector<4x32x128xf32>
      %266 = tpu.reciprocal %265 {approx = true} : vector<4x32x128xf32> -> vector<4x32x128xf32>
      %267 = arith.mulf %249, %266 : vector<4x32x128xf32>
      %c0_75 = arith.constant 0 : index
      %c0_76 = arith.constant 0 : index
      %268 = vector.load %arg4[%c0_75, %c0_76] : memref<32x128xf32, #tpu.memory_space<vmem>>, vector<32x128xf32>
      %269 = vector.shape_cast %268 : vector<32x128xf32> to vector<1x32x128xf32>
      %270 = vector.shape_cast %221 : vector<4x128xf32> to vector<4x1x128xf32>
      %271 = vector.broadcast %270 : vector<4x1x128xf32> to vector<4x32x128xf32>
      %272 = arith.mulf %271, %267 : vector<4x32x128xf32>
      %273 = vector.broadcast %269 : vector<1x32x128xf32> to vector<4x32x128xf32>
      %274 = arith.mulf %273, %272 : vector<4x32x128xf32>
      %cst_77 = arith.constant dense<0.000000e+00> : vector<4x32xf32>
      %275 = vector.multi_reduction <add>, %274, %cst_77 [2] : vector<4x32x128xf32> to vector<4x32xf32>
      %cst_78 = arith.constant 9.99999974E-5 : f32
      %276 = vector.broadcast %cst_78 : f32 to vector<4x32xf32>
      %277 = arith.addf %275, %276 : vector<4x32xf32>
      %278 = arith.mulf %277, %277 : vector<4x32xf32>
      %279 = tpu.iota {dimensions = array<i32: 1>} : vector<4x32xi32>
      %c16_i32 = arith.constant 16 : i32
      %c0_i32_79 = arith.constant 0 : i32
      %280 = arith.cmpi eq, %c16_i32, %c0_i32_79 : i32
      %c1_i32_80 = arith.constant 1 : i32
      %281 = arith.select %280, %c1_i32_80, %c16_i32 : i32
      %282 = vector.broadcast %281 : i32 to vector<4x32xi32>
      %283 = arith.remsi %279, %282 : vector<4x32xi32>
      %c0_i32_81 = arith.constant 0 : i32
      %284 = vector.broadcast %c0_i32_81 : i32 to vector<4x32xi32>
      %285 = arith.cmpi ne, %283, %284 : vector<4x32xi32>
      %c0_i32_82 = arith.constant 0 : i32
      %286 = vector.broadcast %c0_i32_82 : i32 to vector<4x32xi32>
      %287 = arith.cmpi slt, %283, %286 : vector<4x32xi32>
      %c0_i32_83 = arith.constant 0 : i32
      %288 = arith.cmpi slt, %281, %c0_i32_83 : i32
      %289 = vector.broadcast %288 : i1 to vector<4x32xi1>
      %290 = vector.broadcast %289 : vector<4x32xi1> to vector<4x32xi1>
      %291 = arith.xori %287, %290 : vector<4x32xi1>
      %292 = arith.andi %291, %285 : vector<4x32xi1>
      %293 = vector.broadcast %281 : i32 to vector<4x32xi32>
      %294 = arith.addi %283, %293 : vector<4x32xi32>
      %295 = arith.select %292, %294, %283 : vector<4x32xi1>, vector<4x32xi32>
      %296 = vector.extract_strided_slice %278 {offsets = [0, 15], sizes = [4, 17], strides = [1, 1]} : vector<4x32xf32> to vector<4x17xf32>
      %297 = vector.extract_strided_slice %278 {offsets = [0, 0], sizes = [4, 15], strides = [1, 1]} : vector<4x32xf32> to vector<4x15xf32>
      %298 = tpu.concatenate %296, %297 in 1 : vector<4x17xf32>, vector<4x15xf32> -> vector<4x32xf32>
      %299 = vector.extract_strided_slice %278 {offsets = [0, 31], sizes = [4, 1], strides = [1, 1]} : vector<4x32xf32> to vector<4x1xf32>
      %300 = vector.extract_strided_slice %278 {offsets = [0, 0], sizes = [4, 31], strides = [1, 1]} : vector<4x32xf32> to vector<4x31xf32>
      %301 = tpu.concatenate %299, %300 in 1 : vector<4x1xf32>, vector<4x31xf32> -> vector<4x32xf32>
      %c1_i32_84 = arith.constant 1 : i32
      %302 = vector.broadcast %c1_i32_84 : i32 to vector<4x32xi32>
      %303 = arith.cmpi slt, %295, %302 : vector<4x32xi32>
      %304 = arith.select %303, %298, %301 : vector<4x32xi1>, vector<4x32xf32>
      %305 = arith.addf %278, %304 : vector<4x32xf32>
      %306 = vector.extract_strided_slice %305 {offsets = [0, 14], sizes = [4, 18], strides = [1, 1]} : vector<4x32xf32> to vector<4x18xf32>
      %307 = vector.extract_strided_slice %305 {offsets = [0, 0], sizes = [4, 14], strides = [1, 1]} : vector<4x32xf32> to vector<4x14xf32>
      %308 = tpu.concatenate %306, %307 in 1 : vector<4x18xf32>, vector<4x14xf32> -> vector<4x32xf32>
      %309 = vector.extract_strided_slice %305 {offsets = [0, 30], sizes = [4, 2], strides = [1, 1]} : vector<4x32xf32> to vector<4x2xf32>
      %310 = vector.extract_strided_slice %305 {offsets = [0, 0], sizes = [4, 30], strides = [1, 1]} : vector<4x32xf32> to vector<4x30xf32>
      %311 = tpu.concatenate %309, %310 in 1 : vector<4x2xf32>, vector<4x30xf32> -> vector<4x32xf32>
      %c2_i32_85 = arith.constant 2 : i32
      %312 = vector.broadcast %c2_i32_85 : i32 to vector<4x32xi32>
      %313 = arith.cmpi slt, %295, %312 : vector<4x32xi32>
      %314 = arith.select %313, %308, %311 : vector<4x32xi1>, vector<4x32xf32>
      %315 = arith.addf %305, %314 : vector<4x32xf32>
      %316 = vector.extract_strided_slice %315 {offsets = [0, 12], sizes = [4, 20], strides = [1, 1]} : vector<4x32xf32> to vector<4x20xf32>
      %317 = vector.extract_strided_slice %315 {offsets = [0, 0], sizes = [4, 12], strides = [1, 1]} : vector<4x32xf32> to vector<4x12xf32>
      %318 = tpu.concatenate %316, %317 in 1 : vector<4x20xf32>, vector<4x12xf32> -> vector<4x32xf32>
      %319 = vector.extract_strided_slice %315 {offsets = [0, 28], sizes = [4, 4], strides = [1, 1]} : vector<4x32xf32> to vector<4x4xf32>
      %320 = vector.extract_strided_slice %315 {offsets = [0, 0], sizes = [4, 28], strides = [1, 1]} : vector<4x32xf32> to vector<4x28xf32>
      %321 = tpu.concatenate %319, %320 in 1 : vector<4x4xf32>, vector<4x28xf32> -> vector<4x32xf32>
      %c4_i32_86 = arith.constant 4 : i32
      %322 = vector.broadcast %c4_i32_86 : i32 to vector<4x32xi32>
      %323 = arith.cmpi slt, %295, %322 : vector<4x32xi32>
      %324 = arith.select %323, %318, %321 : vector<4x32xi1>, vector<4x32xf32>
      %325 = arith.addf %315, %324 : vector<4x32xf32>
      %326 = vector.extract_strided_slice %325 {offsets = [0, 8], sizes = [4, 24], strides = [1, 1]} : vector<4x32xf32> to vector<4x24xf32>
      %327 = vector.extract_strided_slice %325 {offsets = [0, 0], sizes = [4, 8], strides = [1, 1]} : vector<4x32xf32> to vector<4x8xf32>
      %328 = tpu.concatenate %326, %327 in 1 : vector<4x24xf32>, vector<4x8xf32> -> vector<4x32xf32>
      %329 = vector.extract_strided_slice %325 {offsets = [0, 24], sizes = [4, 8], strides = [1, 1]} : vector<4x32xf32> to vector<4x8xf32>
      %330 = vector.extract_strided_slice %325 {offsets = [0, 0], sizes = [4, 24], strides = [1, 1]} : vector<4x32xf32> to vector<4x24xf32>
      %331 = tpu.concatenate %329, %330 in 1 : vector<4x8xf32>, vector<4x24xf32> -> vector<4x32xf32>
      %c8_i32_87 = arith.constant 8 : i32
      %332 = vector.broadcast %c8_i32_87 : i32 to vector<4x32xi32>
      %333 = arith.cmpi slt, %295, %332 : vector<4x32xi32>
      %334 = arith.select %333, %328, %331 : vector<4x32xi1>, vector<4x32xf32>
      %335 = arith.addf %325, %334 : vector<4x32xf32>
      %336 = math.sqrt %335 : vector<4x32xf32>
      %cst_88 = arith.constant 1.000000e+00 : f32
      %337 = vector.broadcast %cst_88 : f32 to vector<4x32xf32>
      %338 = arith.addf %337, %335 : vector<4x32xf32>
      %339 = tpu.reciprocal %338 {approx = true} : vector<4x32xf32> -> vector<4x32xf32>
      %340 = arith.mulf %335, %339 : vector<4x32xf32>
      %341 = arith.mulf %340, %277 : vector<4x32xf32>
      %cst_89 = arith.constant 9.99999968E-21 : f32
      %342 = vector.broadcast %cst_89 : f32 to vector<4x32xf32>
      %343 = arith.addf %336, %342 : vector<4x32xf32>
      %344 = tpu.reciprocal %343 {approx = true} : vector<4x32xf32> -> vector<4x32xf32>
      %345 = arith.mulf %341, %344 : vector<4x32xf32>
      %c4_i32_90 = arith.constant 4 : i32
      %346 = arith.muli %218, %c4_i32_90 : i32
      %347 = tpu.assume_multiple %346, 4 : i32
      %c0_91 = arith.constant 0 : index
      %348 = arith.index_cast %347 : i32 to index
      %c0_92 = arith.constant 0 : index
      %349 = vector.load %arg7[%c0_91, %348, %c0_92] : memref<1x16x32xf32, #tpu.memory_space<vmem>>, vector<1x4x32xf32>
      %350 = vector.shape_cast %349 : vector<1x4x32xf32> to vector<4x32xf32>
      %351 = vector.shape_cast %345 : vector<4x32xf32> to vector<1x4x32xf32>
      tpu.vector_store %arg7[%c0_91, %348, %c0_92], %351 {strides = array<i32>} : memref<1x16x32xf32, #tpu.memory_space<vmem>>, vector<1x4x32xf32>,
    }
    %c4_i32_66 = arith.constant 4 : i32
    return
  }
  func.func @transform_0(%arg0: i32) -> (i32, i32, i32, i32) {
    %c0_i32 = arith.constant 0 : i32
    %c0_i32_0 = arith.constant 0 : i32
    %c0_i32_1 = arith.constant 0 : i32
    %c0_i32_2 = arith.constant 0 : i32
    return %arg0, %c0_i32, %c0_i32_0, %c0_i32_1 : i32, i32, i32, i32
  }
  func.func @transform_1(%arg0: i32) -> (i32, i32) {
    %c0_i32 = arith.constant 0 : i32
    %c0_i32_0 = arith.constant 0 : i32
    %c0_i32_1 = arith.constant 0 : i32
    return %c0_i32, %c0_i32_0 : i32, i32
  }
  func.func @transform_2(%arg0: i32) -> (i32, i32) {
    %c0_i32 = arith.constant 0 : i32
    %c0_i32_0 = arith.constant 0 : i32
    %c0_i32_1 = arith.constant 0 : i32
    return %c0_i32, %c0_i32_0 : i32, i32
  }
  func.func @transform_3(%arg0: i32) -> (i32, i32) {
    %c0_i32 = arith.constant 0 : i32
    %c0_i32_0 = arith.constant 0 : i32
    %c0_i32_1 = arith.constant 0 : i32
    return %c0_i32, %c0_i32_0 : i32, i32
  }
  func.func @transform_4(%arg0: i32) -> (i32, i32) {
    %c0_i32 = arith.constant 0 : i32
    %c0_i32_0 = arith.constant 0 : i32
    %c0_i32_1 = arith.constant 0 : i32
    return %c0_i32, %c0_i32_0 : i32, i32
  }
  func.func @transform_5(%arg0: i32) -> (i32, i32) {
    %c0_i32 = arith.constant 0 : i32
    %c0_i32_0 = arith.constant 0 : i32
    %c0_i32_1 = arith.constant 0 : i32
    return %c0_i32, %c0_i32_0 : i32, i32
  }
  func.func @transform_6(%arg0: i32) -> (i32, i32, i32) {
    %c0_i32 = arith.constant 0 : i32
    %c0_i32_0 = arith.constant 0 : i32
    %c0_i32_1 = arith.constant 0 : i32
    return %arg0, %c0_i32, %c0_i32_0 : i32, i32, i32
  }
}

</mosaic_0001>

<bundles_post_ra>
// kernel: efficient_capsnet_forward.1
= control target key start
LH: loop header
LB: loop body
LE: loop exit
PB: predicated region body
PF: predicated region fallthrough
CT: control target
= control target key end

     0   :  { %s3994_s21 = smov 0   ;;  %s5735_s0 = inlined_call_operand.vmem [shape: f32[2,6,6,128], index: 0, kind: input, shape index: {}]   ;;  %s5736_s1 = inlined_call_operand.vmem [shape: f32[9,128], index: 1, kind: input, shape index: {}]   ;;  %s5737_s2 = inlined_call_operand.vmem [shape: f32[1,128], index: 2, kind: input, shape index: {}]   ;;  %s5738_s3 = inlined_call_operand.vmem [shape: f32[32,128], index: 3, kind: input, shape index: {}]   ;;  %s5739_s4 = inlined_call_operand.vmem [shape: f32[32,128], index: 4, kind: input, shape index: {}]   ;;  %s5740_s5 = inlined_call_operand.vmem [shape: f32[32,128], index: 5, kind: input, shape index: {}]   ;;  %s5741_s6 = inlined_call_operand.vmem [shape: f32[2,16,32], index: 6, kind: output, shape index: {}]  }
   0x1 LB: > { %s3660_s22 = sadd.s32 4294967295, %s3940_s21   ;;  %p3664_p0 = scmp.ge.s32.totalorder %s3940_s21, 1  ;;  %s3940_s21 = sphi %s3994_s21, %s16_s21  }
   0x2   : > { %p212_p1 = scmp.lt.s32.totalorder %s3940_s21, 3 }
   0x4   : > { %p213_p2 = pnand %p3664_p0, %p212_p1 }
   0x5   : > { %p242_p3 = scmp.lt.s32.totalorder (!%p213_p2), %s3660_s22, 1  ;;  %v266_v0 = vlaneseq (!%p213_p2)  ;;  %v252_v2 = vld [vmem:[%s5736_s1] sm:$0xff] (!%p213_p2)  ;;  %s3946_s13 = smov (!%p213_p2), 127   ;;  %vm408_vm0 = vcmask (!%p213_p2), 1043456  }
   0x6   : > { %216 = sbr.rel (%p213_p2) target bundleno = 3051 (0xbeb), region = 44  ;;  %v4031_v7 = vld [vmem:[%s5737_s2] ss:$0 sm:$0xff] (!%p213_p2)  ;;  %s3947_s14 = smov (!%p213_p2), 1  }
   0x7   : > { %v4003_v1 = vshrl.u32 (!%p213_p2), %v266_v0, 7  ;;  %s3948_s15 = smov (!%p213_p2), 121   ;;  %s3949_s16 = smov (!%p213_p2), 122  }
   0x8   : > { %s3950_s17 = smov (!%p213_p2), 2   ;;  %s3951_s18 = smov (!%p213_p2), 124  }
   0x9   : > { %v4009_v3 = vsub.s32 (!%p213_p2), 0, %v4003_v1  ;;  %v4012_v4 = vsub.s32 (!%p213_p2), 1, %v4003_v1  ;;  %v4015_v5 = vsub.s32 (!%p213_p2), 2, %v4003_v1  ;;  %v5742_v6 = vsub.s32 (!%p213_p2), 3, %v4003_v1  ;;  %s3952_s19 = smov (!%p213_p2), 4   ;;  %s4285_s20 = smov (!%p213_p2), 0  }
   0xa   : > { %v5744_v11 = vsub.s32 (!%p213_p2), 4, %v4003_v1  ;;  %v5743_v18 = vsub.s32 (!%p213_p2), 5, %v4003_v1  ;;  %v4049_v20 = vsub.s32 (!%p213_p2), 6, %v4003_v1  ;;  %v4062_v28 = vsub.s32 (!%p213_p2), 7, %v4003_v1 }
   0xb   : > { %v269_v8 = vrot.slane (!%p213_p2), %v252_v2, %v4009_v3  ;;  %v285_v9 = vrot.slane (!%p213_p2), %v252_v2, %v4012_v4  ;;  %v4036_v10 = vrot.slane (!%p213_p2), %v252_v2, %v4015_v5  ;;  %v4044_v17 = vrot.slane (!%p213_p2), %v252_v2, %v5742_v6 }
   0xc   : > { %v4055_v23 = vrot.slane (!%p213_p2), %v252_v2, %v5744_v11  ;;  %v4068_v34 = vrot.slane (!%p213_p2), %v252_v2, %v5743_v18  ;;  %v4072_v36 = vrot.slane (!%p213_p2), %v252_v2, %v4049_v20  ;;  %v4083_v48 = vrot.slane (!%p213_p2), %v252_v2, %v4062_v28 }
   0xd   : > { %s5790_s22 = smov (!%p242_p3, %s3660_s22), 1 }
   0xe   : > { %s3698_s25 = smul.u32 48, %s5790_s22  ;;  %s3697_s26 = sshll.u32 %s5790_s22, 4 }
   0xf   : > { %s4021_s29 = scalar_lea.vmem %s5741_s6, %s3697_s26 }
  0x10   : > { %s4026_s8 = scalar_lea.vmem %s5735_s0, %s3698_s25 }
  0x11   : > { %v263_v12 = vld [vmem:[%s4026_s8 + $0x8] sm:$0xf]  ;;  %v3670_v19 = vld [vmem:[%s4026_s8 + $0x10] sm:$0xf]  ;;  %v262_v24 = vld [vmem:[%s4026_s8] sm:$0xf] }
  0x12   : > { %v279_v13 = vld [vmem:[%s4026_s8 + $0x9] sm:$0xf]  ;;  %v271_v15 = vmul.f32 %v269_v8, %v263_v12  ;;  %v278_v25 = vld [vmem:[%s4026_s8 + $0x1] sm:$0xf]  ;;  %v3674_v27 = vld [vmem:[%s4026_s8 + $0x11] sm:$0xf]  ;;  %v270_v29 = vmul.f32 %v269_v8, %v262_v24  ;;  %v320_v32 = vmul.f32 %v3670_v19, %v4044_v17 }
  0x13   : > { %v295_v14 = vld [vmem:[%s4026_s8 + $0xa] sm:$0xf]  ;;  %v287_v16 = vmul.f32 %v285_v9, %v279_v13  ;;  %v294_v26 = vld [vmem:[%s4026_s8 + $0x2] sm:$0xf]  ;;  %v286_v30 = vmul.f32 %v285_v9, %v278_v25  ;;  %v3678_v33 = vld [vmem:[%s4026_s8 + $0x12] sm:$0xf]  ;;  %v336_v43 = vmul.f32 %v3674_v27, %v4055_v23 }
  0x14   : > { %v275_v21 = vadd.f32 %v4031_v7, %v271_v15  ;;  %v303_v22 = vmul.f32 %v4036_v10, %v295_v14  ;;  %v3669_v35 = vld [vmem:[%s4026_s8 + $0x8] sm:$0xf]  ;;  %v274_v37 = vadd.f32 %v4031_v7, %v270_v29  ;;  %v302_v38 = vmul.f32 %v4036_v10, %v294_v26  ;;  %v264_v39 = vld [vmem:[%s4026_s8 + $0x10] sm:$0xf]  ;;  %v3682_v47 = vld [vmem:[%s4026_s8 + $0x18] sm:$0xf] }
  0x15   : > { %v280_v40 = vld [vmem:[%s4026_s8 + $0x11] sm:$0xf]  ;;  %v3673_v44 = vld [vmem:[%s4026_s8 + $0x9] sm:$0xf]  ;;  %v272_v45 = vmul.f32 %v269_v8, %v264_v39  ;;  %v319_v50 = vmul.f32 %v3669_v35, %v4044_v17  ;;  %v3671_v52 = vld [vmem:[%s4026_s8 + $0x18] sm:$0xf]  ;;  %v352_v54 = vmul.f32 %v3678_v33, %v4068_v34  ;;  %v369_v14 = vmul.f32 %v3682_v47, %v4072_v36 }
  0x16   : > { %v291_v31 = vadd.f32 %v287_v16, %v275_v21  ;;  %v296_v41 = vld [vmem:[%s4026_s8 + $0x12] sm:$0xf]  ;;  %v288_v46 = vmul.f32 %v285_v9, %v280_v40  ;;  %v290_v49 = vadd.f32 %v286_v30, %v274_v37  ;;  %v3677_v51 = vld [vmem:[%s4026_s8 + $0xa] sm:$0xf]  ;;  %v265_v57 = vld [vmem:[%s4026_s8 + $0x18] sm:$0xf]  ;;  %v335_v62 = vmul.f32 %v3673_v44, %v4055_v23 }
  0x17   : > { %v276_v55 = vadd.f32 %v4031_v7, %v272_v45  ;;  %v304_v56 = vmul.f32 %v4036_v10, %v296_v41  ;;  %v281_v58 = vld [vmem:[%s4026_s8 + $0x19] sm:$0xf]  ;;  %v273_v2 = vmul.f32 %v269_v8, %v265_v57  ;;  %v3681_v15 = vld [vmem:[%s4026_s8 + $0x10] sm:$0xf]  ;;  %v321_v19 = vmul.f32 %v3671_v52, %v4044_v17  ;;  %v3672_v21 = vld [vmem:[%s4026_s8 + $0x20] sm:$0xf] }
  0x18   : > { %v307_v42 = vadd.f32 %v303_v22, %v291_v31  ;;  %v297_v59 = vld [vmem:[%s4026_s8 + $0x1a] sm:$0xf]  ;;  %v306_v61 = vadd.f32 %v302_v38, %v290_v49  ;;  %v289_v12 = vmul.f32 %v285_v9, %v281_v58  ;;  %v3693_v22 = vld [vmem:[%s5736_s1 + $0x8] ss:$0 sm:$0xff]  ;;  %v351_v8 = vmul.f32 %v3677_v51, %v4068_v34  ;;  %v3685_v31 = vld [vmem:[%s4026_s8 + $0x11] sm:$0xf] }
  0x19   : > { %v3686_v60 = vld [vmem:[%s4026_s8 + $0x19] sm:$0xf]  ;;  %v292_v16 = vadd.f32 %v288_v46, %v276_v55  ;;  %v277_v26 = vadd.f32 %v4031_v7, %v273_v2  ;;  %v305_v27 = vmul.f32 %v4036_v10, %v297_v59  ;;  %v3676_v35 = vld [vmem:[%s4026_s8 + $0x21] sm:$0xf]  ;;  %v368_v38 = vmul.f32 %v3681_v15, %v4072_v36  ;;  %v3692_v15 = vld [vmem:[%s4026_s8 + $0x2a] sm:$0xf] }
  0x1a   : > { %v324_v53 = vadd.f32 %v320_v32, %v307_v42  ;;  %v3675_v63 = vld [vmem:[%s4026_s8 + $0x19] sm:$0xf]  ;;  %v323_v25 = vadd.f32 %v319_v50, %v306_v61  ;;  %v385_v30 = vmul.f32 %v3686_v60, %v4083_v48  ;;  %v3683_v39 = vld [vmem:[%s4026_s8 + $0x20] sm:$0xf]  ;;  %v322_v7 = vmul.f32 %v3672_v21, %v4044_v17  ;;  %v3689_v42 = vld [vmem:[%s4026_s8 + $0x12] sm:$0xf] }
  0x1b   : > { %v3690_v24 = vld [vmem:[%s4026_s8 + $0x1a] sm:$0xf]  ;;  %v308_v32 = vadd.f32 %v304_v56, %v292_v16  ;;  %v337_v33 = vmul.f32 %v3675_v63, %v4055_v23  ;;  %v293_v40 = vadd.f32 %v289_v12, %v277_v26  ;;  %v3680_v45 = vld [vmem:[%s4026_s8 + $0x22] sm:$0xf]  ;;  %v384_v47 = vmul.f32 %v3685_v31, %v4083_v48  ;;  %v3688_v63 = vld [vmem:[%s4026_s8 + $0x29] sm:$0xf] }
  0x1c   : > { %v340_v13 = vadd.f32 %v336_v43, %v324_v53  ;;  %v3679_v9 = vld [vmem:[%s4026_s8 + $0x1a] sm:$0xf]  ;;  %v339_v37 = vadd.f32 %v335_v62, %v323_v25  ;;  %v401_v10 = vmul.f32 %v3693_v22, %v3690_v24  ;;  %v3687_v49 = vld [vmem:[%s4026_s8 + $0x21] sm:$0xf]  ;;  %v338_v51 = vmul.f32 %v3676_v35, %v4055_v23 }
  0x1d   : > { %v325_v43 = vadd.f32 %v321_v19, %v308_v32  ;;  %v353_v44 = vmul.f32 %v3679_v9, %v4068_v34  ;;  %v309_v50 = vadd.f32 %v305_v27, %v293_v40  ;;  %v370_v17 = vmul.f32 %v3683_v39, %v4072_v36  ;;  %v3691_v57 = vld [vmem:[%s4026_s8 + $0x22] sm:$0xf] }
  0x1e   : > { %v356_v29 = vadd.f32 %v352_v54, %v340_v13  ;;  %v355_v46 = vadd.f32 %v351_v8, %v339_v37  ;;  %v3684_v54 = vld [vmem:[%s4026_s8 + $0x28] sm:$0xf]  ;;  %v400_v56 = vmul.f32 %v3693_v22, %v3689_v42  ;;  %v354_v59 = vmul.f32 %v3680_v45, %v4068_v34 }
  0x1f   : > { %v341_v53 = vadd.f32 %v337_v33, %v325_v43  ;;  %v326_v58 = vadd.f32 %v322_v7, %v309_v50  ;;  %v386_v62 = vmul.f32 %v3687_v49, %v4083_v48  ;;  %v371_v12 = vmul.f32 %v3684_v54, %v4072_v36 }
  0x20   : > { %v373_v41 = vadd.f32 %v369_v14, %v356_v29  ;;  %v372_v55 = vadd.f32 %v368_v38, %v355_v46  ;;  %v402_v14 = vmul.f32 %v3693_v22, %v3691_v57  ;;  %v387_v34 = vmul.f32 %v3688_v63, %v4083_v48 }
  0x21   : > { %v357_v61 = vadd.f32 %v353_v44, %v341_v53  ;;  %v342_v23 = vadd.f32 %v338_v51, %v326_v58  ;;  %v403_v25 = vmul.f32 %v3693_v22, %v3692_v15 }
  0x22   : > { %v389_v52 = vadd.f32 %v385_v30, %v373_v41  ;;  %v388_v2 = vadd.f32 %v384_v47, %v372_v55 }
  0x23   : > { %v374_v13 = vadd.f32 %v370_v17, %v357_v61  ;;  %v358_v19 = vadd.f32 %v354_v59, %v342_v23 }
  0x24   : > { %v4126_v60 = vadd.f32 %v401_v10, %v389_v52  ;;  %v4133_v16 = vadd.f32 %v400_v56, %v388_v2 }
  0x25   : > { %v390_v21 = vadd.f32 %v386_v62, %v374_v13  ;;  %v375_v24 = vadd.f32 %v371_v12, %v358_v19 }
  0x26   : > { %432 = vrot.lane.b32.xlu1 %v4126_v60, %s3946_s13  ;;  %430 = vrot.lane.b32.xlu0 %v4133_v16, %s3946_s13  ;;  %v409_v26 = vsel %vm408_vm0, %v4133_v16, 0.0  ;;  %v412_v48 = vsel %vm408_vm0, %v4126_v60, 0.0 }
  0x27   : > { %v4137_v8 = vadd.f32 %v402_v14, %v390_v21  ;;  %v391_v9 = vadd.f32 %v387_v34, %v375_v24 }
  0x29   : > { %v4140_v36 = vadd.f32 %v403_v25, %v391_v9  ;;  %v415_v27 = vsel %vm408_vm0, %v4137_v8, 0.0 }
  0x2a   : > { %434 = vrot.lane.b32.xlu1 %v4137_v8, %s3946_s13 }
  0x2b   : > { %v418_v22 = vsel %vm408_vm0, %v4140_v36, 0.0 }
  0x2e   : > { %436 = vrot.lane.b32.xlu1 %v4140_v36, %s3946_s13 }
  0x45   : > { %410 = vadd.xlane.f32.xlu0 %v409_v26 }
  0x49   : > { %413 = vadd.xlane.f32.xlu0 %v412_v48 }
  0x52   : > { %416 = vadd.xlane.f32.xlu1 %v415_v27 }
  0x56   : > { %419 = vadd.xlane.f32.xlu1 %v418_v22 }
  0x5f   : > { %466 = vrot.lane.b32.xlu0 %v4133_v16, %s3947_s14 }
  0x63   : > { %470 = vrot.lane.b32.xlu0 %v4137_v8, %s3947_s14 }
  0x67   : > { %468 = vrot.lane.b32.xlu1 %v4126_v60, %s3947_s14 }
  0x6b   : > { %472 = vrot.lane.b32.xlu1 %v4140_v36, %s3947_s14 }
  0x98   : > { %v433_v29 = vpop.permute.xlu1 %432  ;;  %v431_v30 = vpop.permute.xlu0 %430 }
  0x9c   : > { %v435_v33 = vpop.permute.xlu1 %434 }
  0xa0   : > { %v437_v10 = vpop.permute.xlu1 %436 }
  0xd2   : > { %v411_v31 = vpop.xlane.xlu0 %410 }
  0xd3   : > { %v422_v32 = vmul.f32 0.0078125, %v411_v31 }
  0xd5   : > { %v442_v35 = vsub.f32 %v431_v30, %v422_v32  ;;  %v454_v37 = vsub.f32 %v4133_v16, %v422_v32 }
  0xd6   : > { %v414_v38 = vpop.xlane.xlu0 %413 }
  0xd7   : > { %v446_v39 = vand.u32 2147483647, %v442_v35  ;;  %v458_v7 = vand.u32 2147483647, %v454_v37  ;;  %v423_v41 = vmul.f32 0.0078125, %v414_v38 }
  0xd9   : > { %v450_v40 = vadd.f32 3e-05, %v446_v39  ;;  %v443_v44 = vsub.f32 %v433_v29, %v423_v41  ;;  %v455_v51 = vsub.f32 %v4126_v60, %v423_v41 }
  0xda   : > { %v467_v42 = vpop.permute.xlu0 %466 }
  0xdb   : > { %v479_v43 = vsub.f32 %v467_v42, %v422_v32  ;;  %v462_v45 = vadd.f32 %v458_v7, %v450_v40  ;;  %v447_v53 = vand.u32 2147483647, %v443_v44  ;;  %v459_v58 = vand.u32 2147483647, %v455_v51 }
  0xdd   : > { %v483_v46 = vand.u32 2147483647, %v479_v43  ;;  %v451_v61 = vadd.f32 3e-05, %v447_v53 }
  0xde   : > { %v471_v52 = vpop.permute.xlu0 %470 }
  0xdf   : > { %v417_v47 = vpop.xlane.xlu1 %416  ;;  %v487_v49 = vadd.f32 %v483_v46, %v462_v45  ;;  %v463_v21 = vadd.f32 %v459_v58, %v451_v61 }
  0xe0   : > { %v424_v50 = vmul.f32 0.0078125, %v417_v47 }
  0xe1   : > { %3728 = vrcp.f32 %v487_v49 }
  0xe2   : > { %v444_v17 = vsub.f32 %v435_v33, %v424_v50  ;;  %v456_v54 = vsub.f32 %v4137_v8, %v424_v50  ;;  %v481_v57 = vsub.f32 %v471_v52, %v424_v50 }
  0xe3   : > { %v420_v55 = vpop.xlane.xlu1 %419 }
  0xe4   : > { %v448_v56 = vand.u32 2147483647, %v444_v17  ;;  %v425_v59 = vmul.f32 0.0078125, %v420_v55  ;;  %v460_v63 = vand.u32 2147483647, %v456_v54 }
  0xe5   : > { %v485_v13 = vand.u32 2147483647, %v481_v57 }
  0xe6   : > { %v452_v62 = vadd.f32 3e-05, %v448_v56  ;;  %v445_v2 = vsub.f32 %v437_v10, %v425_v59  ;;  %v457_v14 = vsub.f32 %v4140_v36, %v425_v59 }
  0xe7   : > { %v469_v23 = vpop.permute.xlu1 %468 }
  0xe8   : > { %v464_v12 = vadd.f32 %v460_v63, %v452_v62  ;;  %v480_v15 = vsub.f32 %v469_v23, %v423_v41  ;;  %v449_v19 = vand.u32 2147483647, %v445_v2  ;;  %v461_v48 = vand.u32 2147483647, %v457_v14 }
  0xea   : > { %v489_v34 = vadd.f32 %v485_v13, %v464_v12  ;;  %v484_v24 = vand.u32 2147483647, %v480_v15  ;;  %v453_v25 = vadd.f32 3e-05, %v449_v19 }
  0xeb   : > { %v473_v9 = vpop.permute.xlu1 %472  ;;  %v3729_v26 = vpop.eup %3728 }
  0xec   : > { %3730 = vrcp.f32 %v489_v34  ;;  %v488_v27 = vadd.f32 %v484_v24, %v463_v21  ;;  %v482_v22 = vsub.f32 %v473_v9, %v425_v59  ;;  %v4160_v29 = vmul.f32 %v3729_v26, %v4133_v16 }
  0xed   : > { %v465_v30 = vadd.f32 %v461_v48, %v453_v25 }
  0xee   : > { %3732 = vrcp.f32 %v488_v27  ;;  %v486_v31 = vand.u32 2147483647, %v482_v22  ;;  %v626_v32 = vmul.f32 %v4160_v29, %v4160_v29 }
  0xf0   : > { %v490_v33 = vadd.f32 %v486_v31, %v465_v30  ;;  %634 = vrot.lane.b32.xlu0 %v626_v32, %s3948_s15 }
  0xf2   : > { %3734 = vrcp.f32 %v490_v33 }
  0xf6   : > { %v3731_v35 = vpop.eup %3730 }
  0xf7   : > { %v496_v37 = vmul.f32 %v3731_v35, %v4137_v8 }
  0xf8   : > { %v3733_v38 = vpop.eup %3732 }
  0xf9   : > { %v628_v39 = vmul.f32 %v496_v37, %v496_v37  ;;  %v4166_v40 = vmul.f32 %v3733_v38, %v4126_v60  ;;  %v4190_v60 = vand.u32 127, %v266_v0 }
  0xfb   : > { %638 = vrot.lane.b32.xlu0 %v628_v39, %s3948_s15  ;;  %v627_v16 = vmul.f32 %v4166_v40, %v4166_v40 }
  0xfc   : > { %v3735_v7 = vpop.eup %3734 }
  0xfd   : > { %636 = vrot.lane.b32.xlu1 %v627_v16, %s3948_s15  ;;  %v4171_v41 = vmul.f32 %v3735_v7, %v4140_v36  ;;  %v4193_v36 = vand.u32 7, %v4190_v60 }
  0xff   : > { %646 = vrot.lane.b32.xlu0 %v626_v32, %s3947_s14  ;;  %v629_v10 = vmul.f32 %v4171_v41, %v4171_v41  ;;  %vm541_vm1 = vcmp.lt.s32.totalorder %v4193_v36, 1  ;;  %vm579_vm2 = vcmp.lt.s32.totalorder %v4193_v36, 2  ;;  %vm617_vm6 = vcmp.lt.s32.totalorder %v4193_v36, 4 }
 0x101   : > { %640 = vrot.lane.b32.xlu1 %v629_v10, %s3948_s15 }
 0x103   : > { %650 = vrot.lane.b32.xlu0 %v628_v39, %s3947_s14 }
 0x105   : > { %648 = vrot.lane.b32.xlu1 %v627_v16, %s3947_s14 }
 0x107   : > { %517 = vrot.lane.b32.xlu0 %v4160_v29, %s3948_s15 }
 0x109   : > { %652 = vrot.lane.b32.xlu1 %v629_v10, %s3947_s14 }
 0x10b   : > { %521 = vrot.lane.b32.xlu0 %v496_v37, %s3948_s15 }
 0x10d   : > { %519 = vrot.lane.b32.xlu1 %v4166_v40, %s3948_s15 }
 0x10f   : > { %529 = vrot.lane.b32.xlu0 %v4160_v29, %s3947_s14 }
 0x111   : > { %523 = vrot.lane.b32.xlu1 %v4171_v41, %s3948_s15 }
 0x113   : > { %533 = vrot.lane.b32.xlu0 %v496_v37, %s3947_s14 }
 0x115   : > { %531 = vrot.lane.b32.xlu1 %v4166_v40, %s3947_s14 }
 0x119   : > { %535 = vrot.lane.b32.xlu1 %v4171_v41, %s3947_s14 }
 0x162   : > { %v635_v8 = vpop.permute.xlu0 %634 }
 0x16d   : > { %v639_v42 = vpop.permute.xlu0 %638 }
 0x16f   : > { %v637_v43 = vpop.permute.xlu1 %636 }
 0x171   : > { %v647_v44 = vpop.permute.xlu0 %646 }
 0x172   : > { %v658_v45 = vsel %vm541_vm1, %v635_v8, %v647_v44 }
 0x173   : > { %v662_v46 = vadd.f32 %v658_v45, %v626_v32  ;;  %v641_v47 = vpop.permute.xlu1 %640 }
 0x175   : > { %670 = vrot.lane.b32.xlu0 %v662_v46, %s3949_s16  ;;  %v651_v49 = vpop.permute.xlu0 %650 }
 0x176   : > { %v660_v0 = vsel %vm541_vm1, %v639_v42, %v651_v49 }
 0x177   : > { %v664_v50 = vadd.f32 %v660_v0, %v628_v39  ;;  %v649_v51 = vpop.permute.xlu1 %648 }
 0x178   : > { %v659_v52 = vsel %vm541_vm1, %v637_v43, %v649_v51 }
 0x179   : > { %v663_v53 = vadd.f32 %v659_v52, %v627_v16  ;;  %674 = vrot.lane.b32.xlu0 %v664_v50, %s3949_s16  ;;  %v518_v17 = vpop.permute.xlu0 %517 }
 0x17b   : > { %672 = vrot.lane.b32.xlu1 %v663_v53, %s3949_s16  ;;  %v653_v54 = vpop.permute.xlu1 %652 }
 0x17c   : > { %v661_v55 = vsel %vm541_vm1, %v641_v47, %v653_v54 }
 0x17d   : > { %v665_v56 = vadd.f32 %v661_v55, %v629_v10  ;;  %682 = vrot.lane.b32.xlu0 %v662_v46, %s3950_s17  ;;  %v522_v57 = vpop.permute.xlu0 %521 }
 0x17f   : > { %676 = vrot.lane.b32.xlu1 %v665_v56, %s3949_s16  ;;  %v520_v58 = vpop.permute.xlu1 %519 }
 0x181   : > { %686 = vrot.lane.b32.xlu0 %v664_v50, %s3950_s17  ;;  %v530_v59 = vpop.permute.xlu0 %529 }
 0x182   : > { %v542_v61 = vsel %vm541_vm1, %v518_v17, %v530_v59 }
 0x183   : > { %v546_v62 = vadd.f32 %v542_v61, %v4160_v29  ;;  %684 = vrot.lane.b32.xlu1 %v663_v53, %s3950_s17  ;;  %v524_v63 = vpop.permute.xlu1 %523 }
 0x185   : > { %554 = vrot.lane.b32.xlu0 %v546_v62, %s3949_s16  ;;  %v534_v2 = vpop.permute.xlu0 %533 }
 0x186   : > { %v544_v23 = vsel %vm541_vm1, %v522_v57, %v534_v2 }
 0x187   : > { %v548_v12 = vadd.f32 %v544_v23, %v496_v37  ;;  %688 = vrot.lane.b32.xlu1 %v665_v56, %s3950_s17  ;;  %v532_v13 = vpop.permute.xlu1 %531 }
 0x188   : > { %v543_v14 = vsel %vm541_vm1, %v520_v58, %v532_v13 }
 0x189   : > { %v547_v15 = vadd.f32 %v543_v14, %v4166_v40  ;;  %558 = vrot.lane.b32.xlu0 %v548_v12, %s3949_s16 }
 0x18b   : > { %556 = vrot.lane.b32.xlu1 %v547_v15, %s3949_s16  ;;  %v536_v19 = vpop.permute.xlu1 %535 }
 0x18c   : > { %v545_v34 = vsel %vm541_vm1, %v524_v63, %v536_v19 }
 0x18d   : > { %v549_v21 = vadd.f32 %v545_v34, %v4171_v41  ;;  %566 = vrot.lane.b32.xlu0 %v546_v62, %s3950_s17 }
 0x18f   : > { %560 = vrot.lane.b32.xlu1 %v549_v21, %s3949_s16 }
 0x191   : > { %570 = vrot.lane.b32.xlu0 %v548_v12, %s3950_s17 }
 0x193   : > { %568 = vrot.lane.b32.xlu1 %v547_v15, %s3950_s17 }
 0x197   : > { %572 = vrot.lane.b32.xlu1 %v549_v21, %s3950_s17 }
 0x1e7   : > { %v671_v24 = vpop.permute.xlu0 %670 }
 0x1eb   : > { %v675_v25 = vpop.permute.xlu0 %674 }
 0x1ed   : > { %v673_v9 = vpop.permute.xlu1 %672 }
 0x1ef   : > { %v683_v26 = vpop.permute.xlu0 %682 }
 0x1f0   : > { %v694_v48 = vsel %vm579_vm2, %v671_v24, %v683_v26 }
 0x1f1   : > { %v698_v27 = vadd.f32 %v694_v48, %v662_v46  ;;  %v677_v22 = vpop.permute.xlu1 %676 }
 0x1f3   : > { %706 = vrot.lane.b32.xlu0 %v698_v27, %s3951_s18  ;;  %v687_v29 = vpop.permute.xlu0 %686 }
 0x1f4   : > { %v696_v30 = vsel %vm579_vm2, %v675_v25, %v687_v29 }
 0x1f5   : > { %v700_v31 = vadd.f32 %v696_v30, %v664_v50  ;;  %v685_v32 = vpop.permute.xlu1 %684 }
 0x1f6   : > { %v695_v33 = vsel %vm579_vm2, %v673_v9, %v685_v32 }
 0x1f7   : > { %v699_v35 = vadd.f32 %v695_v33, %v663_v53  ;;  %710 = vrot.lane.b32.xlu0 %v700_v31, %s3951_s18  ;;  %v555_v37 = vpop.permute.xlu0 %554 }
 0x1f9   : > { %708 = vrot.lane.b32.xlu1 %v699_v35, %s3951_s18  ;;  %v689_v38 = vpop.permute.xlu1 %688 }
 0x1fa   : > { %v697_v39 = vsel %vm579_vm2, %v677_v22, %v689_v38 }
 0x1fb   : > { %v701_v40 = vadd.f32 %v697_v39, %v665_v56  ;;  %718 = vrot.lane.b32.xlu0 %v698_v27, %s3952_s19  ;;  %v559_v16 = vpop.permute.xlu0 %558 }
 0x1fd   : > { %712 = vrot.lane.b32.xlu1 %v701_v40, %s3951_s18  ;;  %v557_v7 = vpop.permute.xlu1 %556 }
 0x1ff   : > { %722 = vrot.lane.b32.xlu0 %v700_v31, %s3952_s19  ;;  %v567_v41 = vpop.permute.xlu0 %566 }
 0x200   : > { %v580_v10 = vsel %vm579_vm2, %v555_v37, %v567_v41 }
 0x201   : > { %v4238_v8 = vadd.f32 %v580_v10, %v546_v62  ;;  %720 = vrot.lane.b32.xlu1 %v699_v35, %s3952_s19  ;;  %v561_v42 = vpop.permute.xlu1 %560 }
 0x203   : > { %592 = vrot.lane.b32.xlu0 %v4238_v8, %s3951_s18  ;;  %v571_v43 = vpop.permute.xlu0 %570 }
 0x204   : > { %v582_v44 = vsel %vm579_vm2, %v559_v16, %v571_v43 }
 0x205   : > { %v4244_v45 = vadd.f32 %v582_v44, %v548_v12  ;;  %724 = vrot.lane.b32.xlu1 %v701_v40, %s3952_s19  ;;  %v569_v46 = vpop.permute.xlu1 %568 }
 0x206   : > { %v581_v47 = vsel %vm579_vm2, %v557_v7, %v569_v46 }
 0x207   : > { %v4248_v49 = vadd.f32 %v581_v47, %v547_v15  ;;  %596 = vrot.lane.b32.xlu0 %v4244_v45, %s3951_s18 }
 0x209   : > { %594 = vrot.lane.b32.xlu1 %v4248_v49, %s3951_s18  ;;  %v573_v0 = vpop.permute.xlu1 %572 }
 0x20a   : > { %v583_v50 = vsel %vm579_vm2, %v561_v42, %v573_v0 }
 0x20b   : > { %v4256_v51 = vadd.f32 %v583_v50, %v549_v21  ;;  %604 = vrot.lane.b32.xlu0 %v4238_v8, %s3952_s19 }
 0x20d   : > { %598 = vrot.lane.b32.xlu1 %v4256_v51, %s3951_s18 }
 0x20f   : > { %608 = vrot.lane.b32.xlu0 %v4244_v45, %s3952_s19 }
 0x211   : > { %606 = vrot.lane.b32.xlu1 %v4248_v49, %s3952_s19 }
 0x215   : > { %610 = vrot.lane.b32.xlu1 %v4256_v51, %s3952_s19 }
 0x265   : > { %v707_v52 = vpop.permute.xlu0 %706 }
 0x269   : > { %v711_v53 = vpop.permute.xlu0 %710 }
 0x26b   : > { %v709_v17 = vpop.permute.xlu1 %708 }
 0x26d   : > { %v719_v54 = vpop.permute.xlu0 %718 }
 0x26e   : > { %v730_v55 = vsel %vm617_vm6, %v707_v52, %v719_v54 }
 0x26f   : > { %v734_v56 = vadd.f32 %v730_v55, %v698_v27  ;;  %v713_v57 = vpop.permute.xlu1 %712 }
 0x271   : > { %3736 = vrsqrt.f32 %v734_v56  ;;  %v723_v58 = vpop.permute.xlu0 %722  ;;  %vm740_vm7 = vcmp.eq.f32.partialorder %v734_v56, inf  ;;  %v743_v19 = vand.u32 2147483648, %v734_v56  ;;  %vm742_vm8 = vcmp.eq.f32.partialorder %v734_v56, 0.0 }
 0x272   : > { %v732_v59 = vsel %vm617_vm6, %v711_v53, %v723_v58 }
 0x273   : > { %v736_v61 = vadd.f32 %v732_v59, %v700_v31  ;;  %v721_v62 = vpop.permute.xlu1 %720 }
 0x274   : > { %v731_v63 = vsel %vm617_vm6, %v709_v17, %v721_v62 }
 0x275   : > { %3738 = vrsqrt.f32 %v736_v61  ;;  %v735_v2 = vadd.f32 %v731_v63, %v699_v35  ;;  %vm754_vm9 = vcmp.eq.f32.partialorder %v736_v61, inf  ;;  %v757_v48 = vand.u32 2147483648, %v736_v61  ;;  %v593_v37 = vpop.permute.xlu0 %592 }
 0x276   : > { %vm756_vm10 = vcmp.eq.f32.partialorder %v736_v61, 0.0 }
 0x277   : > { %3740 = vrsqrt.f32 %v735_v2  ;;  %v725_v23 = vpop.permute.xlu1 %724  ;;  %vm747_vm11 = vcmp.eq.f32.partialorder %v735_v2, inf  ;;  %v750_v30 = vand.u32 2147483648, %v735_v2  ;;  %vm749_vm12 = vcmp.eq.f32.partialorder %v735_v2, 0.0 }
 0x278   : > { %v733_v12 = vsel %vm617_vm6, %v713_v57, %v725_v23 }
 0x279   : > { %v737_v13 = vadd.f32 %v733_v12, %v701_v40  ;;  %v597_v42 = vpop.permute.xlu0 %596 }
 0x27b   : > { %v3737_v14 = vpop.eup %3736  ;;  %3742 = vrsqrt.f32 %v737_v13  ;;  %vm761_vm13 = vcmp.eq.f32.partialorder %v737_v13, inf  ;;  %v764_v40 = vand.u32 2147483648, %v737_v13  ;;  %vm763_vm14 = vcmp.eq.f32.partialorder %v737_v13, 0.0  ;;  %v595_v43 = vpop.permute.xlu1 %594 }
 0x27c   : > { %v739_v15 = vmul.f32 %v3737_v14, %v734_v56 }
 0x27d   : > { %v605_v52 = vpop.permute.xlu0 %604 }
 0x27e   : > { %v741_v34 = vsel %vm740_vm7, %v734_v56, %v739_v15  ;;  %v618_v57 = vsel %vm617_vm6, %v593_v37, %v605_v52 }
 0x27f   : > { %v3739_v21 = vpop.eup %3738  ;;  %v744_v24 = vsel %vm742_vm8, %v743_v19, %v741_v34  ;;  %v599_v53 = vpop.permute.xlu1 %598  ;;  %v622_v23 = vadd.f32 %v618_v57, %v4238_v8 }
 0x280   : > { %v753_v25 = vmul.f32 %v3739_v21, %v736_v61  ;;  %v766_v9 = vmul.f32 1.442695, %v744_v24  ;;  %v794_v46 = vadd.f32 1e-20, %v744_v24 }
 0x281   : > { %v3741_v26 = vpop.eup %3740  ;;  %v609_v59 = vpop.permute.xlu0 %608 }
 0x282   : > { %v746_v27 = vmul.f32 %v3741_v26, %v735_v2  ;;  %3744 = vpow2.f32 %v766_v9  ;;  %v755_v22 = vsel %vm754_vm9, %v736_v61, %v753_v25  ;;  %v620_v12 = vsel %vm617_vm6, %v597_v42, %v609_v59 }
 0x283   : > { %v758_v29 = vsel %vm756_vm10, %v757_v48, %v755_v22  ;;  %v607_v61 = vpop.permute.xlu1 %606  ;;  %v624_v24 = vadd.f32 %v620_v12, %v4244_v45 }
 0x284   : > { %v770_v31 = vmul.f32 1.442695, %v758_v29  ;;  %v748_v32 = vsel %vm747_vm11, %v735_v2, %v746_v27  ;;  %v796_v17 = vadd.f32 1e-20, %v758_v29  ;;  %v619_v19 = vsel %vm617_vm6, %v595_v43, %v607_v61 }
 0x285   : > { %v3743_v33 = vpop.eup %3742  ;;  %v751_v35 = vsel %vm749_vm12, %v750_v30, %v748_v32  ;;  %v623_v8 = vadd.f32 %v619_v19, %v4248_v49 }
 0x286   : > { %v760_v38 = vmul.f32 %v3743_v33, %v737_v13  ;;  %3746 = vpow2.f32 %v770_v31  ;;  %v768_v39 = vmul.f32 1.442695, %v751_v35  ;;  %v795_v55 = vadd.f32 1e-20, %v751_v35 }
 0x287   : > { %v611_v25 = vpop.permute.xlu1 %610 }
 0x288   : > { %3748 = vpow2.f32 %v768_v39  ;;  %v762_v16 = vsel %vm761_vm13, %v737_v13, %v760_v38  ;;  %v621_v22 = vsel %vm617_vm6, %v599_v53, %v611_v25 }
 0x289   : > { %v765_v7 = vsel %vm763_vm14, %v764_v40, %v762_v16  ;;  %v625_v45 = vadd.f32 %v621_v22, %v4256_v51 }
 0x28a   : > { %v772_v41 = vmul.f32 1.442695, %v765_v7  ;;  %v797_v63 = vadd.f32 1e-20, %v765_v7 }
 0x28c   : > { %v3745_v10 = vpop.eup %3744  ;;  %3750 = vpow2.f32 %v772_v41 }
 0x28d   : > { %v774_v44 = vadd.f32 1e-20, %v3745_v10 }
 0x28f   : > { %3752 = vrcp.f32 %v774_v44 }
 0x290   : > { %v3747_v47 = vpop.eup %3746  ;;  %3754 = vrcp.f32 %v794_v46 }
 0x291   : > { %v776_v0 = vadd.f32 1e-20, %v3747_v47 }
 0x292   : > { %v3749_v50 = vpop.eup %3748 }
 0x293   : > { %3756 = vrcp.f32 %v776_v0  ;;  %v775_v54 = vadd.f32 1e-20, %v3749_v50 }
 0x295   : > { %3758 = vrcp.f32 %v775_v54 }
 0x296   : > { %v3751_v56 = vpop.eup %3750  ;;  %3760 = vrcp.f32 %v796_v17 }
 0x297   : > { %v777_v58 = vadd.f32 1e-20, %v3751_v56  ;;  %3762 = vrcp.f32 %v795_v55 }
 0x299   : > { %v3753_v62 = vpop.eup %3752  ;;  %3764 = vrcp.f32 %v777_v58 }
 0x29a   : > { %v786_v2 = vsub.f32 1.0, %v3753_v62  ;;  %v3755_v13 = vpop.eup %3754  ;;  %3766 = vrcp.f32 %v797_v63 }
 0x29c   : > { %v790_v14 = vmul.f32 %v786_v2, %v622_v23 }
 0x29d   : > { %v3757_v15 = vpop.eup %3756 }
 0x29e   : > { %v799_v34 = vmul.f32 %v3755_v13, %v790_v14  ;;  %v788_v21 = vsub.f32 1.0, %v3757_v15 }
 0x29f   : > { %v3759_v9 = vpop.eup %3758 }
 0x2a0   : > { %806 = vst [vmem:[#allocation2] sm:$0xf] %v799_v34  ;;  %v792_v26 = vmul.f32 %v788_v21, %v624_v24  ;;  %v787_v48 = vsub.f32 1.0, %v3759_v9  ;;  %v3761_v27 = vpop.eup %3760 }
 0x2a1   : > { %v3763_v29 = vpop.eup %3762 }
 0x2a2   : > { %v803_v30 = vmul.f32 %v3761_v27, %v792_v26  ;;  %v791_v31 = vmul.f32 %v787_v48, %v623_v8 }
 0x2a3   : > { %v3765_v32 = vpop.eup %3764 }
 0x2a4   : > { %808 = vst [vmem:[#allocation2 + $0x8] sm:$0xf] %v803_v30  ;;  %v801_v33 = vmul.f32 %v3763_v29, %v791_v31  ;;  %v789_v35 = vsub.f32 1.0, %v3765_v32  ;;  %v3767_v38 = vpop.eup %3766 }
 0x2a6   : > { %807 = vst [vmem:[#allocation2 + $0x4] sm:$0xf] %v801_v33  ;;  %v793_v37 = vmul.f32 %v789_v35, %v625_v45 }
 0x2a8   : > { %v805_v39 = vmul.f32 %v3767_v38, %v793_v37 }
 0x2aa   : > { %809 = vst [vmem:[#allocation2 + $0xc] sm:$0xf] %v805_v39 }
 0x2ab LB: >> { %v3953_v36 = vmov 1966171168   ;;  %s3694_s22 = sshll.u32 %s3944_s20, 2  ;;  %v846_v43 = vld [vmem:[%s5739_s4 + $0x8] sm:$0xff]  ;;  %v845_v44 = vld [vmem:[%s5739_s4] sm:$0xff]  ;;  %s3954_s28 = smov 8   ;;  %s3944_s20 = sphi %s4285_s20, %s815_s20  }
 0x2ac   : >> { %v822_v49 = vunpack.c.l.s4 %v3953_v36  ;;  %s817_s23 = scalar_lea.vmem [#allocation2], %s3694_s22  ;;  %v847_v59 = vld [vmem:[%s5739_s4 + $0x10] sm:$0xff]  ;;  %v848_v12 = vld [vmem:[%s5739_s4 + $0x18] sm:$0xff]  ;;  %s3955_s10 = smov 16   ;;  %vm1789_vm15 = vcmask 72712   ;;  %vm1796_vm0 = vcmask 138312  }
 0x2ad   : >> { %s3956_s11 = smov 32   ;;  %s3957_s12 = smov 64   ;;  %vm1916_vm1 = vcmask 203912   ;;  %vm1860_vm2 = vcmask 269512   ;;  %vm1840_vm6 = vcmask 1041409   ;;  %vm1842_vm7 = vcmask 1042434  }
 0x2ae   : >> { %v823_v40 = vunpack.c.0.s8 %v822_v49  ;;  %vm1893_vm8 = vcmask 138240   ;;  %vm5770_vm3 = vcmask 7168   ;;  %vm2164_vm10 = vcmask 146512   ;;  %s3593_s9 = scalar_lea.vmem %s4021_s29, %s3694_s22  ;;  %s815_s20 = sadd.s32 1, %s3944_s20  }
 0x2af   : >> { %vm2239_vm11 = vcmask 277712   ;;  %vm2157_vm12 = vcmask 80912   ;;  %vm2308_vm13 = vcmask 212112   ;;  %vm2208_vm14 = vcmask 1047559   ;;  %p812_p4 = scmp.ge.s32.totalorder %s815_s20, 4  }
 0x2b0   : >> { %v4298_v7 = vsub.s32 %v823_v40, %v4003_v1  ;;  %vm5771_vm4 = vcmask 15360   ;;  %vm5772_vm5 = vcmask 31744  }
 0x2b1   : >> { %v4293_v51 = vld [vmem:[%s817_s23] sm:$0xf] }
 0x2b2   : >> { %v819_v16 = vmul.f32 %v4293_v51, %v4293_v51 }
 0x2b4   : >> { %v827_v41 = vrot.slane %v819_v16, %v4298_v7 }
 0x2b6   : >> { %v835_v10 = vrot.slane %v827_v41, %v4298_v7  ;;  %v828_v42 = vcombine.high %v827_v41, %v827_v41 }
 0x2b8   : >> { %v852_v46 = vrot.slane %v835_v10, %v4009_v3  ;;  %v843_v47 = vcombine.high %v835_v10, %v835_v10  ;;  %v842_v0 = vrot.slane %v828_v42, %v4298_v7 }
 0x2ba   : >> { %v870_v50 = vmul.f32 %v852_v46, %v846_v43  ;;  %v869_v52 = vmul.f32 %v852_v46, %v845_v44  ;;  %v860_v53 = vrot.slane %v843_v47, %v4009_v3  ;;  %v856_v17 = vrot.slane %v842_v0, %v4009_v3 }
 0x2bb   : >> { %v844_v58 = vcombine.high %v842_v0, %v842_v0  ;;  %v871_v15 = vmul.f32 %v852_v46, %v847_v59  ;;  %v872_v21 = vmul.f32 %v852_v46, %v848_v12 }
 0x2bc   : >> { %903 = vrot.lane.b32.xlu1 %v870_v50, %s3954_s28  ;;  %901 = vrot.lane.b32.xlu0 %v869_v52, %s3954_s28  ;;  %v877_v54 = vmul.f32 %v860_v53, %v845_v44  ;;  %v873_v55 = vmul.f32 %v856_v17, %v845_v44  ;;  %v4316_v56 = vmul.f32 %v860_v53, %v846_v43 }
 0x2bd   : >> { %v874_v57 = vmul.f32 %v856_v17, %v846_v43  ;;  %v879_v61 = vmul.f32 %v860_v53, %v847_v59  ;;  %v875_v62 = vmul.f32 %v856_v17, %v847_v59  ;;  %v864_v63 = vrot.slane %v844_v58, %v4009_v3 }
 0x2be   : >> { %v880_v13 = vmul.f32 %v860_v53, %v848_v12  ;;  %v876_v14 = vmul.f32 %v856_v17, %v848_v12 }
 0x2bf   : >> { %v882_v2 = vmul.f32 %v864_v63, %v846_v43  ;;  %v881_v23 = vmul.f32 %v864_v63, %v845_v44  ;;  %v883_v19 = vmul.f32 %v864_v63, %v847_v59  ;;  %v884_v34 = vmul.f32 %v864_v63, %v848_v12 }
 0x2c0   : >> { %917 = vrot.lane.b32.xlu1 %v877_v54, %s3954_s28  ;;  %909 = vrot.lane.b32.xlu0 %v873_v55, %s3954_s28 }
 0x2c4   : >> { %919 = vrot.lane.b32.xlu1 %v4316_v56, %s3954_s28  ;;  %911 = vrot.lane.b32.xlu0 %v874_v57, %s3954_s28 }
 0x2c8   : >> { %921 = vrot.lane.b32.xlu1 %v879_v61, %s3954_s28  ;;  %913 = vrot.lane.b32.xlu0 %v875_v62, %s3954_s28 }
 0x2cc   : >> { %927 = vrot.lane.b32.xlu1 %v882_v2, %s3954_s28  ;;  %925 = vrot.lane.b32.xlu0 %v881_v23, %s3954_s28 }
 0x2d0   : >> { %923 = vrot.lane.b32.xlu1 %v880_v13, %s3954_s28  ;;  %915 = vrot.lane.b32.xlu0 %v876_v14, %s3954_s28 }
 0x2d4   : >> { %905 = vrot.lane.b32.xlu1 %v871_v15, %s3954_s28  ;;  %929 = vrot.lane.b32.xlu0 %v883_v19, %s3954_s28 }
 0x2d8   : >> { %931 = vrot.lane.b32.xlu0 %v884_v34, %s3954_s28  ;;  %907 = vrot.lane.b32.xlu1 %v872_v21, %s3954_s28 }
 0x32e   : >> { %v904_v24 = vpop.permute.xlu1 %903  ;;  %v902_v25 = vpop.permute.xlu0 %901 }
 0x32f   : >> { %v951_v9 = vadd.f32 %v904_v24, %v870_v50  ;;  %v950_v26 = vadd.f32 %v902_v25, %v869_v52 }
 0x331   : >> { %984 = vrot.lane.b32.xlu1 %v951_v9, %s3955_s10  ;;  %982 = vrot.lane.b32.xlu0 %v950_v26, %s3955_s10 }
 0x332   : >> { %v918_v48 = vpop.permute.xlu1 %917  ;;  %v910_v8 = vpop.permute.xlu0 %909 }
 0x333   : >> { %v954_v27 = vadd.f32 %v910_v8, %v873_v55  ;;  %v958_v30 = vadd.f32 %v918_v48, %v877_v54 }
 0x335   : >> { %990 = vrot.lane.b32.xlu0 %v954_v27, %s3955_s10 }
 0x336   : >> { %v920_v22 = vpop.permute.xlu1 %919  ;;  %v912_v29 = vpop.permute.xlu0 %911 }
 0x337   : >> { %v955_v41 = vadd.f32 %v912_v29, %v874_v57  ;;  %v959_v44 = vadd.f32 %v920_v22, %v4316_v56 }
 0x339   : >> { %998 = vrot.lane.b32.xlu0 %v958_v30, %s3955_s10 }
 0x33a   : >> { %v922_v31 = vpop.permute.xlu1 %921  ;;  %v914_v32 = vpop.permute.xlu0 %913 }
 0x33b   : >> { %v956_v33 = vadd.f32 %v914_v32, %v875_v62  ;;  %v960_v46 = vadd.f32 %v922_v31, %v879_v61 }
 0x33d   : >> { %994 = vrot.lane.b32.xlu0 %v956_v33, %s3955_s10 }
 0x33e   : >> { %v928_v35 = vpop.permute.xlu1 %927  ;;  %v926_v45 = vpop.permute.xlu0 %925 }
 0x33f   : >> { %v962_v36 = vadd.f32 %v926_v45, %v881_v23  ;;  %v963_v50 = vadd.f32 %v928_v35, %v882_v2 }
 0x342   : >> { %v924_v37 = vpop.permute.xlu1 %923  ;;  %v916_v38 = vpop.permute.xlu0 %915 }
 0x343   : >> { %v957_v39 = vadd.f32 %v916_v38, %v876_v14  ;;  %v961_v47 = vadd.f32 %v924_v37, %v880_v13 }
 0x345   : >> { %996 = vrot.lane.b32.xlu0 %v957_v39, %s3955_s10 }
 0x346   : >> { %v906_v49 = vpop.permute.xlu1 %905  ;;  %v930_v40 = vpop.permute.xlu0 %929 }
 0x347   : >> { %v952_v16 = vadd.f32 %v906_v49, %v871_v15  ;;  %v964_v10 = vadd.f32 %v930_v40, %v883_v19 }
 0x349   : >> { %986 = vrot.lane.b32.xlu1 %v952_v16, %s3955_s10  ;;  %1006 = vrot.lane.b32.xlu0 %v962_v36, %s3955_s10 }
 0x34a   : >> { %v932_v42 = vpop.permute.xlu0 %931  ;;  %v908_v0 = vpop.permute.xlu1 %907 }
 0x34b   : >> { %v965_v43 = vadd.f32 %v932_v42, %v884_v34  ;;  %v953_v52 = vadd.f32 %v908_v0, %v872_v21 }
 0x34d   : >> { %992 = vrot.lane.b32.xlu1 %v955_v41, %s3955_s10  ;;  %1010 = vrot.lane.b32.xlu0 %v964_v10, %s3955_s10 }
 0x351   : >> { %1000 = vrot.lane.b32.xlu1 %v959_v44, %s3955_s10  ;;  %1012 = vrot.lane.b32.xlu0 %v965_v43, %s3955_s10 }
 0x355   : >> { %1002 = vrot.lane.b32.xlu1 %v960_v46, %s3955_s10 }
 0x359   : >> { %1004 = vrot.lane.b32.xlu1 %v961_v47, %s3955_s10 }
 0x35d   : >> { %1008 = vrot.lane.b32.xlu1 %v963_v50, %s3955_s10 }
 0x361   : >> { %988 = vrot.lane.b32.xlu1 %v953_v52, %s3955_s10 }
 0x3a3   : >> { %v985_v53 = vpop.permute.xlu1 %984  ;;  %v983_v17 = vpop.permute.xlu0 %982 }
 0x3a4   : >> { %v1031_v54 = vadd.f32 %v985_v53, %v951_v9  ;;  %v1030_v55 = vadd.f32 %v983_v17, %v950_v26 }
 0x3a6   : >> { %1064 = vrot.lane.b32.xlu1 %v1031_v54, %s3956_s11  ;;  %1062 = vrot.lane.b32.xlu0 %v1030_v55, %s3956_s11 }
 0x3a7   : >> { %v991_v56 = vpop.permute.xlu0 %990 }
 0x3a8   : >> { %v1034_v57 = vadd.f32 %v991_v56, %v954_v27 }
 0x3aa   : >> { %1070 = vrot.lane.b32.xlu0 %v1034_v57, %s3956_s11 }
 0x3ab   : >> { %v999_v58 = vpop.permute.xlu0 %998 }
 0x3ac   : >> { %v1038_v59 = vadd.f32 %v999_v58, %v958_v30 }
 0x3ae   : >> { %1078 = vrot.lane.b32.xlu0 %v1038_v59, %s3956_s11 }
 0x3af   : >> { %v995_v61 = vpop.permute.xlu0 %994 }
 0x3b0   : >> { %v1036_v62 = vadd.f32 %v995_v61, %v956_v33 }
 0x3b2   : >> { %1074 = vrot.lane.b32.xlu0 %v1036_v62, %s3956_s11 }
 0x3b7   : >> { %v997_v63 = vpop.permute.xlu0 %996 }
 0x3b8   : >> { %v1037_v2 = vadd.f32 %v997_v63, %v957_v39 }
 0x3ba   : >> { %1076 = vrot.lane.b32.xlu0 %v1037_v2, %s3956_s11 }
 0x3bb   : >> { %v987_v23 = vpop.permute.xlu1 %986  ;;  %v1007_v12 = vpop.permute.xlu0 %1006 }
 0x3bc   : >> { %v1032_v13 = vadd.f32 %v987_v23, %v952_v16  ;;  %v1042_v14 = vadd.f32 %v1007_v12, %v962_v36  ;;  %v4423_v23 = vld [vmem:[%s5740_s5 + $0x8] sm:$0xff] }
 0x3be   : >> { %1066 = vrot.lane.b32.xlu1 %v1032_v13, %s3956_s11  ;;  %1086 = vrot.lane.b32.xlu0 %v1042_v14, %s3956_s11 }
 0x3bf   : >> { %v993_v15 = vpop.permute.xlu1 %992  ;;  %v1011_v19 = vpop.permute.xlu0 %1010 }
 0x3c0   : >> { %v1035_v34 = vadd.f32 %v993_v15, %v955_v41  ;;  %v1044_v21 = vadd.f32 %v1011_v19, %v964_v10 }
 0x3c2   : >> { %1072 = vrot.lane.b32.xlu1 %v1035_v34, %s3956_s11  ;;  %1090 = vrot.lane.b32.xlu0 %v1044_v21, %s3956_s11 }
 0x3c3   : >> { %v1001_v24 = vpop.permute.xlu1 %1000  ;;  %v1013_v25 = vpop.permute.xlu0 %1012 }
 0x3c4   : >> { %v1039_v9 = vadd.f32 %v1001_v24, %v959_v44  ;;  %v1045_v26 = vadd.f32 %v1013_v25, %v965_v43 }
 0x3c6   : >> { %1080 = vrot.lane.b32.xlu1 %v1039_v9, %s3956_s11  ;;  %1092 = vrot.lane.b32.xlu0 %v1045_v26, %s3956_s11 }
 0x3c7   : >> { %v1003_v48 = vpop.permute.xlu1 %1002 }
 0x3c8   : >> { %v1040_v8 = vadd.f32 %v1003_v48, %v960_v46 }
 0x3ca   : >> { %1082 = vrot.lane.b32.xlu1 %v1040_v8, %s3956_s11 }
 0x3cb   : >> { %v1005_v27 = vpop.permute.xlu1 %1004 }
 0x3cc   : >> { %v1041_v22 = vadd.f32 %v1005_v27, %v961_v47 }
 0x3ce   : >> { %1084 = vrot.lane.b32.xlu1 %v1041_v22, %s3956_s11 }
 0x3cf   : >> { %v1009_v29 = vpop.permute.xlu1 %1008 }
 0x3d0   : >> { %v1043_v30 = vadd.f32 %v1009_v29, %v963_v50 }
 0x3d2   : >> { %1088 = vrot.lane.b32.xlu1 %v1043_v30, %s3956_s11 }
 0x3d3   : >> { %v989_v31 = vpop.permute.xlu1 %988 }
 0x3d4   : >> { %v1033_v32 = vadd.f32 %v989_v31, %v953_v52 }
 0x3d6   : >> { %1068 = vrot.lane.b32.xlu1 %v1033_v32, %s3956_s11 }
 0x418   : >> { %v1065_v33 = vpop.permute.xlu1 %1064  ;;  %v1063_v35 = vpop.permute.xlu0 %1062 }
 0x419   : >> { %v1111_v45 = vadd.f32 %v1065_v33, %v1031_v54  ;;  %v1110_v37 = vadd.f32 %v1063_v35, %v1030_v55 }
 0x41b   : >> { %1144 = vrot.lane.b32.xlu1 %v1111_v45, %s3957_s12  ;;  %1142 = vrot.lane.b32.xlu0 %v1110_v37, %s3957_s12 }
 0x41c   : >> { %v1071_v38 = vpop.permute.xlu0 %1070 }
 0x41d   : >> { %v1114_v39 = vadd.f32 %v1071_v38, %v1034_v57 }
 0x41f   : >> { %1150 = vrot.lane.b32.xlu0 %v1114_v39, %s3957_s12 }
 0x420   : >> { %v1079_v36 = vpop.permute.xlu0 %1078 }
 0x421   : >> { %v1118_v49 = vadd.f32 %v1079_v36, %v1038_v59 }
 0x423   : >> { %1158 = vrot.lane.b32.xlu0 %v1118_v49, %s3957_s12 }
 0x424   : >> { %v1075_v40 = vpop.permute.xlu0 %1074 }
 0x425   : >> { %v1116_v16 = vadd.f32 %v1075_v40, %v1036_v62 }
 0x427   : >> { %1154 = vrot.lane.b32.xlu0 %v1116_v16, %s3957_s12 }
 0x42c   : >> { %v1077_v41 = vpop.permute.xlu0 %1076 }
 0x42d   : >> { %v4376_v10 = vadd.f32 %v1077_v41, %v1037_v2 }
 0x42f   : >> { %1156 = vrot.lane.b32.xlu0 %v4376_v10, %s3957_s12 }
 0x430   : >> { %v1067_v42 = vpop.permute.xlu1 %1066  ;;  %v1087_v43 = vpop.permute.xlu0 %1086 }
 0x431   : >> { %v4380_v44 = vadd.f32 %v1067_v42, %v1032_v13  ;;  %v4382_v46 = vadd.f32 %v1087_v43, %v1042_v14  ;;  %v1206_v13 = vld [vmem:[%s5740_s5] sm:$0xff] }
 0x433   : >> { %1146 = vrot.lane.b32.xlu1 %v4380_v44, %s3957_s12  ;;  %1166 = vrot.lane.b32.xlu0 %v4382_v46, %s3957_s12 }
 0x434   : >> { %v1073_v47 = vpop.permute.xlu1 %1072  ;;  %v1091_v0 = vpop.permute.xlu0 %1090 }
 0x435   : >> { %v4388_v50 = vadd.f32 %v1073_v47, %v1035_v34  ;;  %v4390_v52 = vadd.f32 %v1091_v0, %v1044_v21 }
 0x437   : >> { %1152 = vrot.lane.b32.xlu1 %v4388_v50, %s3957_s12  ;;  %1170 = vrot.lane.b32.xlu0 %v4390_v52, %s3957_s12 }
 0x438   : >> { %v1081_v53 = vpop.permute.xlu1 %1080  ;;  %v1093_v17 = vpop.permute.xlu0 %1092 }
 0x439   : >> { %v4396_v54 = vadd.f32 %v1081_v53, %v1039_v9  ;;  %v4398_v55 = vadd.f32 %v1093_v17, %v1045_v26 }
 0x43b   : >> { %1160 = vrot.lane.b32.xlu1 %v4396_v54, %s3957_s12  ;;  %1172 = vrot.lane.b32.xlu0 %v4398_v55, %s3957_s12 }
 0x43c   : >> { %v1083_v56 = vpop.permute.xlu1 %1082 }
 0x43d   : >> { %v4404_v57 = vadd.f32 %v1083_v56, %v1040_v8 }
 0x43f   : >> { %1162 = vrot.lane.b32.xlu1 %v4404_v57, %s3957_s12 }
 0x440   : >> { %v1085_v58 = vpop.permute.xlu1 %1084 }
 0x441   : >> { %v4408_v59 = vadd.f32 %v1085_v58, %v1041_v22 }
 0x443   : >> { %1164 = vrot.lane.b32.xlu1 %v4408_v59, %s3957_s12 }
 0x444   : >> { %v1089_v61 = vpop.permute.xlu1 %1088 }
 0x445   : >> { %v4412_v62 = vadd.f32 %v1089_v61, %v1043_v30  ;;  %v1208_v30 = vld [vmem:[%s5740_s5 + $0x10] sm:$0xff] }
 0x447   : >> { %1168 = vrot.lane.b32.xlu1 %v4412_v62, %s3957_s12 }
 0x448   : >> { %v1069_v63 = vpop.permute.xlu1 %1068 }
 0x449   : >> { %v4416_v2 = vadd.f32 %v1069_v63, %v1033_v32 }
 0x44b   : >> { %1148 = vrot.lane.b32.xlu1 %v4416_v2, %s3957_s12 }
 0x48d   : >> { %v1145_v12 = vpop.permute.xlu1 %1144  ;;  %v1143_v14 = vpop.permute.xlu0 %1142 }
 0x48e   : >> { %v1191_v15 = vadd.f32 %v1145_v12, %v1111_v45  ;;  %v1190_v19 = vadd.f32 %v1143_v14, %v1110_v37 }
 0x490   : >> { %v1211_v34 = vmul.f32 %v4423_v23, %v1191_v15  ;;  %v1210_v21 = vmul.f32 %v1206_v13, %v1190_v19 }
 0x491   : >> { %v1151_v24 = vpop.permute.xlu0 %1150 }
 0x492   : >> { %v1228_v25 = vmul.f32 1.442695, %v1211_v34  ;;  %v1226_v9 = vmul.f32 1.442695, %v1210_v21  ;;  %v1194_v26 = vadd.f32 %v1151_v24, %v1114_v39  ;;  %v4443_v39 = vld [vmem:[%s5740_s5 + $0x18] sm:$0xff] }
 0x494   : >> { %3770 = vpow2.f32 %v1228_v25  ;;  %v1214_v48 = vmul.f32 %v1206_v13, %v1194_v26 }
 0x495   : >> { %3772 = vpow2.f32 %v1226_v9  ;;  %v1159_v8 = vpop.permute.xlu0 %1158 }
 0x496   : >> { %v1234_v27 = vmul.f32 1.442695, %v1214_v48  ;;  %v1198_v22 = vadd.f32 %v1159_v8, %v1118_v49 }
 0x498   : >> { %3774 = vpow2.f32 %v1234_v27  ;;  %v1218_v29 = vmul.f32 %v1206_v13, %v1198_v22 }
 0x499   : >> { %v1155_v31 = vpop.permute.xlu0 %1154 }
 0x49a   : >> { %v1242_v32 = vmul.f32 1.442695, %v1218_v29  ;;  %v1196_v33 = vadd.f32 %v1155_v31, %v1116_v16 }
 0x49c   : >> { %3776 = vpow2.f32 %v1242_v32  ;;  %v1216_v35 = vmul.f32 %v1208_v30, %v1196_v33 }
 0x49e   : >> { %v4432_v45 = vpop.eup %3770  ;;  %v1238_v37 = vmul.f32 1.442695, %v1216_v35 }
 0x49f   : >> { %v4434_v38 = vpop.eup %3772  ;;  %1276 = vrot.lane.b32.xlu1 %v4432_v45, %s3954_s28 }
 0x4a0   : >> { %3778 = vpow2.f32 %v1238_v37  ;;  %1274 = vrot.lane.b32.xlu0 %v4434_v38, %s3954_s28 }
 0x4a1   : >> { %v1157_v36 = vpop.permute.xlu0 %1156 }
 0x4a2   : >> { %v4445_v49 = vpop.eup %3774  ;;  %v1197_v40 = vadd.f32 %v1157_v36, %v4376_v10 }
 0x4a4   : >> { %v1217_v16 = vmul.f32 %v4443_v39, %v1197_v40  ;;  %1282 = vrot.lane.b32.xlu0 %v4445_v49, %s3954_s28 }
 0x4a5   : >> { %v1147_v41 = vpop.permute.xlu1 %1146  ;;  %v1167_v42 = vpop.permute.xlu0 %1166 }
 0x4a6   : >> { %v4451_v43 = vpop.eup %3776  ;;  %v1240_v47 = vmul.f32 1.442695, %v1217_v16  ;;  %v1192_v0 = vadd.f32 %v1147_v41, %v4380_v44  ;;  %v1202_v53 = vadd.f32 %v1167_v42, %v4382_v46 }
 0x4a8   : >> { %3780 = vpow2.f32 %v1240_v47  ;;  %v1212_v17 = vmul.f32 %v1208_v30, %v1192_v0  ;;  %v1222_v56 = vmul.f32 %v1206_v13, %v1202_v53  ;;  %1290 = vrot.lane.b32.xlu0 %v4451_v43, %s3954_s28 }
 0x4a9   : >> { %v1153_v10 = vpop.permute.xlu1 %1152  ;;  %v1171_v58 = vpop.permute.xlu0 %1170 }
 0x4aa   : >> { %v4457_v61 = vpop.eup %3778  ;;  %v1230_v63 = vmul.f32 1.442695, %v1212_v17  ;;  %v1250_v12 = vmul.f32 1.442695, %v1222_v56  ;;  %v1195_v14 = vadd.f32 %v1153_v10, %v4388_v50  ;;  %v1204_v15 = vadd.f32 %v1171_v58, %v4390_v52 }
 0x4ac   : >> { %3782 = vpow2.f32 %v1230_v63  ;;  %v1215_v44 = vmul.f32 %v4423_v23, %v1195_v14  ;;  %v1224_v46 = vmul.f32 %v1208_v30, %v1204_v15  ;;  %1286 = vrot.lane.b32.xlu0 %v4457_v61, %s3954_s28 }
 0x4ad   : >> { %3784 = vpow2.f32 %v1250_v12  ;;  %v1161_v13 = vpop.permute.xlu1 %1160  ;;  %v1173_v19 = vpop.permute.xlu0 %1172 }
 0x4ae   : >> { %v1236_v34 = vmul.f32 1.442695, %v1215_v44  ;;  %v1254_v21 = vmul.f32 1.442695, %v1224_v46  ;;  %v1199_v24 = vadd.f32 %v1161_v13, %v4396_v54  ;;  %v1205_v25 = vadd.f32 %v1173_v19, %v4398_v55 }
 0x4b0   : >> { %3786 = vpow2.f32 %v1236_v34  ;;  %v1219_v50 = vmul.f32 %v4423_v23, %v1199_v24  ;;  %v1225_v52 = vmul.f32 %v4443_v39, %v1205_v25 }
 0x4b1   : >> { %3788 = vpow2.f32 %v1254_v21  ;;  %v1163_v9 = vpop.permute.xlu1 %1162 }
 0x4b2   : >> { %v4468_v26 = vpop.eup %3780  ;;  %v1244_v48 = vmul.f32 1.442695, %v1219_v50  ;;  %v1256_v8 = vmul.f32 1.442695, %v1225_v52  ;;  %v1200_v27 = vadd.f32 %v1163_v9, %v4404_v57 }
 0x4b3   : >> { %1288 = vrot.lane.b32.xlu0 %v4468_v26, %s3954_s28 }
 0x4b4   : >> { %3790 = vpow2.f32 %v1244_v48  ;;  %v1220_v54 = vmul.f32 %v1208_v30, %v1200_v27 }
 0x4b5   : >> { %3792 = vpow2.f32 %v1256_v8  ;;  %v1165_v55 = vpop.permute.xlu1 %1164 }
 0x4b6   : >> { %v4473_v22 = vpop.eup %3782  ;;  %v1246_v29 = vmul.f32 1.442695, %v1220_v54  ;;  %v1201_v31 = vadd.f32 %v1165_v55, %v4408_v59 }
 0x4b7   : >> { %v4476_v32 = vpop.eup %3784  ;;  %1278 = vrot.lane.b32.xlu1 %v4473_v22, %s3954_s28 }
 0x4b8   : >> { %3794 = vpow2.f32 %v1246_v29  ;;  %v1221_v57 = vmul.f32 %v4443_v39, %v1201_v31  ;;  %1298 = vrot.lane.b32.xlu0 %v4476_v32, %s3954_s28 }
 0x4b9   : >> { %v1169_v33 = vpop.permute.xlu1 %1168 }
 0x4ba   : >> { %v4483_v30 = vpop.eup %3786  ;;  %v1248_v35 = vmul.f32 1.442695, %v1221_v57  ;;  %v1203_v37 = vadd.f32 %v1169_v33, %v4412_v62 }
 0x4bb   : >> { %v4486_v36 = vpop.eup %3788  ;;  %1284 = vrot.lane.b32.xlu1 %v4483_v30, %s3954_s28 }
 0x4bc   : >> { %3796 = vpow2.f32 %v1248_v35  ;;  %v1223_v59 = vmul.f32 %v4423_v23, %v1203_v37  ;;  %1302 = vrot.lane.b32.xlu0 %v4486_v36, %s3954_s28 }
 0x4bd   : >> { %v1149_v40 = vpop.permute.xlu1 %1148 }
 0x4be   : >> { %v4493_v16 = vpop.eup %3790  ;;  %v1252_v41 = vmul.f32 1.442695, %v1223_v59  ;;  %v1193_v42 = vadd.f32 %v1149_v40, %v4416_v2 }
 0x4bf   : >> { %v4496_v47 = vpop.eup %3792  ;;  %1292 = vrot.lane.b32.xlu1 %v4493_v16, %s3954_s28 }
 0x4c0   : >> { %3798 = vpow2.f32 %v1252_v41  ;;  %v1213_v62 = vmul.f32 %v4443_v39, %v1193_v42  ;;  %1304 = vrot.lane.b32.xlu0 %v4496_v47, %s3954_s28 }
 0x4c2   : >> { %v4503_v23 = vpop.eup %3794  ;;  %v1232_v0 = vmul.f32 1.442695, %v1213_v62 }
 0x4c3   : >> { %1294 = vrot.lane.b32.xlu1 %v4503_v23, %s3954_s28 }
 0x4c4   : >> { %3800 = vpow2.f32 %v1232_v0 }
 0x4c6   : >> { %v4507_v53 = vpop.eup %3796 }
 0x4c7   : >> { %1296 = vrot.lane.b32.xlu1 %v4507_v53, %s3954_s28 }
 0x4ca   : >> { %v4511_v2 = vpop.eup %3798 }
 0x4cb   : >> { %1300 = vrot.lane.b32.xlu1 %v4511_v2, %s3954_s28 }
 0x4ce   : >> { %v4515_v39 = vpop.eup %3800 }
 0x4cf   : >> { %1280 = vrot.lane.b32.xlu1 %v4515_v39, %s3954_s28 }
 0x511   : >> { %v1277_v17 = vpop.permute.xlu1 %1276 }
 0x512   : >> { %v1323_v56 = vadd.f32 %v4432_v45, %v1277_v17  ;;  %v1275_v10 = vpop.permute.xlu0 %1274 }
 0x513   : >> { %v1322_v58 = vadd.f32 %v4434_v38, %v1275_v10 }
 0x514   : >> { %1356 = vrot.lane.b32.xlu1 %v1323_v56, %s3955_s10 }
 0x515   : >> { %1354 = vrot.lane.b32.xlu0 %v1322_v58, %s3955_s10 }
 0x516   : >> { %v1283_v63 = vpop.permute.xlu0 %1282 }
 0x517   : >> { %v1326_v12 = vadd.f32 %v4445_v49, %v1283_v63 }
 0x519   : >> { %1362 = vrot.lane.b32.xlu0 %v1326_v12, %s3955_s10 }
 0x51a   : >> { %v1291_v14 = vpop.permute.xlu0 %1290 }
 0x51b   : >> { %v1330_v15 = vadd.f32 %v4451_v43, %v1291_v14 }
 0x51d   : >> { %1370 = vrot.lane.b32.xlu0 %v1330_v15, %s3955_s10 }
 0x51e   : >> { %v1287_v44 = vpop.permute.xlu0 %1286 }
 0x51f   : >> { %v1328_v46 = vadd.f32 %v4457_v61, %v1287_v44 }
 0x521   : >> { %1366 = vrot.lane.b32.xlu0 %v1328_v46, %s3955_s10 }
 0x525   : >> { %v1289_v13 = vpop.permute.xlu0 %1288 }
 0x526   : >> { %v1329_v19 = vadd.f32 %v4468_v26, %v1289_v13 }
 0x528   : >> { %1368 = vrot.lane.b32.xlu0 %v1329_v19, %s3955_s10 }
 0x529   : >> { %v1279_v34 = vpop.permute.xlu1 %1278 }
 0x52a   : >> { %v1324_v21 = vadd.f32 %v4473_v22, %v1279_v34  ;;  %v1299_v24 = vpop.permute.xlu0 %1298 }
 0x52b   : >> { %v1334_v25 = vadd.f32 %v4476_v32, %v1299_v24 }
 0x52c   : >> { %1358 = vrot.lane.b32.xlu1 %v1324_v21, %s3955_s10 }
 0x52d   : >> { %1378 = vrot.lane.b32.xlu0 %v1334_v25, %s3955_s10  ;;  %v1285_v50 = vpop.permute.xlu1 %1284 }
 0x52e   : >> { %v1327_v52 = vadd.f32 %v4483_v30, %v1285_v50  ;;  %v1303_v9 = vpop.permute.xlu0 %1302 }
 0x52f   : >> { %v1336_v48 = vadd.f32 %v4486_v36, %v1303_v9 }
 0x530   : >> { %1364 = vrot.lane.b32.xlu1 %v1327_v52, %s3955_s10 }
 0x531   : >> { %1382 = vrot.lane.b32.xlu0 %v1336_v48, %s3955_s10  ;;  %v1293_v8 = vpop.permute.xlu1 %1292 }
 0x532   : >> { %v1331_v27 = vadd.f32 %v4493_v16, %v1293_v8  ;;  %v1305_v54 = vpop.permute.xlu0 %1304 }
 0x533   : >> { %v1337_v55 = vadd.f32 %v4496_v47, %v1305_v54 }
 0x534   : >> { %1372 = vrot.lane.b32.xlu1 %v1331_v27, %s3955_s10 }
 0x535   : >> { %1384 = vrot.lane.b32.xlu0 %v1337_v55, %s3955_s10  ;;  %v1295_v29 = vpop.permute.xlu1 %1294 }
 0x536   : >> { %v1332_v31 = vadd.f32 %v4503_v23, %v1295_v29 }
 0x538   : >> { %1374 = vrot.lane.b32.xlu1 %v1332_v31, %s3955_s10 }
 0x539   : >> { %v1297_v57 = vpop.permute.xlu1 %1296 }
 0x53a   : >> { %v1333_v33 = vadd.f32 %v4507_v53, %v1297_v57 }
 0x53c   : >> { %1376 = vrot.lane.b32.xlu1 %v1333_v33, %s3955_s10 }
 0x53d   : >> { %v1301_v35 = vpop.permute.xlu1 %1300 }
 0x53e   : >> { %v1335_v37 = vadd.f32 %v4511_v2, %v1301_v35 }
 0x540   : >> { %1380 = vrot.lane.b32.xlu1 %v1335_v37, %s3955_s10 }
 0x541   : >> { %v1281_v59 = vpop.permute.xlu1 %1280 }
 0x542   : >> { %v1325_v40 = vadd.f32 %v4515_v39, %v1281_v59 }
 0x544   : >> { %1360 = vrot.lane.b32.xlu1 %v1325_v40, %s3955_s10 }
 0x586   : >> { %v1357_v41 = vpop.permute.xlu1 %1356 }
 0x587   : >> { %v1403_v42 = vadd.f32 %v1357_v41, %v1323_v56  ;;  %v1355_v62 = vpop.permute.xlu0 %1354 }
 0x588   : >> { %v1402_v0 = vadd.f32 %v1355_v62, %v1322_v58 }
 0x589   : >> { %1436 = vrot.lane.b32.xlu1 %v1403_v42, %s3956_s11 }
 0x58a   : >> { %1434 = vrot.lane.b32.xlu0 %v1402_v0, %s3956_s11 }
 0x58b   : >> { %v1363_v17 = vpop.permute.xlu0 %1362 }
 0x58c   : >> { %v1406_v10 = vadd.f32 %v1363_v17, %v1326_v12 }
 0x58e   : >> { %1442 = vrot.lane.b32.xlu0 %v1406_v10, %s3956_s11 }
 0x58f   : >> { %v1371_v63 = vpop.permute.xlu0 %1370 }
 0x590   : >> { %v1410_v14 = vadd.f32 %v1371_v63, %v1330_v15 }
 0x592   : >> { %1450 = vrot.lane.b32.xlu0 %v1410_v14, %s3956_s11 }
 0x593   : >> { %v1367_v44 = vpop.permute.xlu0 %1366 }
 0x594   : >> { %v1408_v13 = vadd.f32 %v1367_v44, %v1328_v46 }
 0x596   : >> { %1446 = vrot.lane.b32.xlu0 %v1408_v13, %s3956_s11 }
 0x59a   : >> { %v1369_v34 = vpop.permute.xlu0 %1368 }
 0x59b   : >> { %v1409_v56 = vadd.f32 %v1369_v34, %v1329_v19 }
 0x59d   : >> { %1448 = vrot.lane.b32.xlu0 %v1409_v56, %s3956_s11 }
 0x59e   : >> { %v1359_v58 = vpop.permute.xlu1 %1358 }
 0x59f   : >> { %v1404_v24 = vadd.f32 %v1359_v58, %v1324_v21  ;;  %v1379_v50 = vpop.permute.xlu0 %1378 }
 0x5a0   : >> { %v1414_v9 = vadd.f32 %v1379_v50, %v1334_v25 }
 0x5a1   : >> { %1438 = vrot.lane.b32.xlu1 %v1404_v24, %s3956_s11 }
 0x5a2   : >> { %1458 = vrot.lane.b32.xlu0 %v1414_v9, %s3956_s11  ;;  %v1365_v12 = vpop.permute.xlu1 %1364 }
 0x5a3   : >> { %v1407_v15 = vadd.f32 %v1365_v12, %v1327_v52  ;;  %v1383_v8 = vpop.permute.xlu0 %1382 }
 0x5a4   : >> { %v1416_v54 = vadd.f32 %v1383_v8, %v1336_v48 }
 0x5a5   : >> { %1444 = vrot.lane.b32.xlu1 %v1407_v15, %s3956_s11 }
 0x5a6   : >> { %1462 = vrot.lane.b32.xlu0 %v1416_v54, %s3956_s11  ;;  %v1373_v46 = vpop.permute.xlu1 %1372 }
 0x5a7   : >> { %v1411_v19 = vadd.f32 %v1373_v46, %v1331_v27  ;;  %v1385_v29 = vpop.permute.xlu0 %1384 }
 0x5a8   : >> { %v1417_v57 = vadd.f32 %v1385_v29, %v1337_v55 }
 0x5a9   : >> { %1452 = vrot.lane.b32.xlu1 %v1411_v19, %s3956_s11 }
 0x5aa   : >> { %1464 = vrot.lane.b32.xlu0 %v1417_v57, %s3956_s11  ;;  %v1375_v21 = vpop.permute.xlu1 %1374 }
 0x5ab   : >> { %v1412_v25 = vadd.f32 %v1375_v21, %v1332_v31 }
 0x5ad   : >> { %1454 = vrot.lane.b32.xlu1 %v1412_v25, %s3956_s11 }
 0x5ae   : >> { %v1377_v35 = vpop.permute.xlu1 %1376 }
 0x5af   : >> { %v1413_v52 = vadd.f32 %v1377_v35, %v1333_v33 }
 0x5b1   : >> { %1456 = vrot.lane.b32.xlu1 %v1413_v52, %s3956_s11 }
 0x5b2   : >> { %v1381_v48 = vpop.permute.xlu1 %1380 }
 0x5b3   : >> { %v1415_v59 = vadd.f32 %v1381_v48, %v1335_v37 }
 0x5b5   : >> { %1460 = vrot.lane.b32.xlu1 %v1415_v59, %s3956_s11 }
 0x5b6   : >> { %v1361_v41 = vpop.permute.xlu1 %1360 }
 0x5b7   : >> { %v1405_v27 = vadd.f32 %v1361_v41, %v1325_v40 }
 0x5b9   : >> { %1440 = vrot.lane.b32.xlu1 %v1405_v27, %s3956_s11 }
 0x5fb   : >> { %v1437_v55 = vpop.permute.xlu1 %1436 }
 0x5fc   : >> { %v1483_v62 = vadd.f32 %v1437_v55, %v1403_v42  ;;  %v1435_v17 = vpop.permute.xlu0 %1434 }
 0x5fd   : >> { %v1482_v63 = vadd.f32 %v1435_v17, %v1402_v0 }
 0x5fe   : >> { %1516 = vrot.lane.b32.xlu1 %v1483_v62, %s3957_s12 }
 0x5ff   : >> { %1514 = vrot.lane.b32.xlu0 %v1482_v63, %s3957_s12 }
 0x600   : >> { %v1443_v31 = vpop.permute.xlu0 %1442 }
 0x601   : >> { %v4569_v33 = vadd.f32 %v1443_v31, %v1406_v10  ;;  %v1621_v31 = vrot.slane %v4293_v51, %v4298_v7 }
 0x603   : >> { %1522 = vrot.lane.b32.xlu0 %v4569_v33, %s3957_s12 }
 0x604   : >> { %v1451_v37 = vpop.permute.xlu0 %1450 }
 0x605   : >> { %v4573_v44 = vadd.f32 %v1451_v37, %v1410_v14  ;;  %v1629_v37 = vrot.slane %v1621_v31, %v4298_v7 }
 0x607   : >> { %1530 = vrot.lane.b32.xlu0 %v4573_v44, %s3957_s12 }
 0x608   : >> { %v1447_v40 = vpop.permute.xlu0 %1446 }
 0x609   : >> { %v4577_v42 = vadd.f32 %v1447_v40, %v1408_v13 }
 0x60b   : >> { %1526 = vrot.lane.b32.xlu0 %v4577_v42, %s3957_s12 }
 0x60f   : >> { %v1449_v0 = vpop.permute.xlu0 %1448 }
 0x610   : >> { %v4581_v34 = vadd.f32 %v1449_v0, %v1409_v56  ;;  %v4620_v0 = vrot.slane %v1629_v37, %v4009_v3 }
 0x612   : >> { %1528 = vrot.lane.b32.xlu0 %v4581_v34, %s3957_s12 }
 0x613   : >> { %v1439_v10 = vpop.permute.xlu1 %1438 }
 0x614   : >> { %v1484_v58 = vadd.f32 %v1439_v10, %v1404_v24  ;;  %v1459_v50 = vpop.permute.xlu0 %1458 }
 0x615   : >> { %v4585_v14 = vadd.f32 %v1459_v50, %v1414_v9 }
 0x616   : >> { %1518 = vrot.lane.b32.xlu1 %v1484_v58, %s3957_s12 }
 0x617   : >> { %1538 = vrot.lane.b32.xlu0 %v4585_v14, %s3957_s12  ;;  %v1445_v13 = vpop.permute.xlu1 %1444 }
 0x618   : >> { %v1487_v12 = vadd.f32 %v1445_v13, %v1407_v15  ;;  %v1463_v8 = vpop.permute.xlu0 %1462 }
 0x619   : >> { %v4590_v46 = vadd.f32 %v1463_v8, %v1416_v54  ;;  %v4633_v8 = vld [vmem:[%s5738_s3] sm:$0xff] }
 0x61a   : >> { %1524 = vrot.lane.b32.xlu1 %v1487_v12, %s3957_s12 }
 0x61b   : >> { %1542 = vrot.lane.b32.xlu0 %v4590_v46, %s3957_s12  ;;  %v1453_v56 = vpop.permute.xlu1 %1452 }
 0x61c   : >> { %v1491_v24 = vadd.f32 %v1453_v56, %v1411_v19  ;;  %v1465_v29 = vpop.permute.xlu0 %1464 }
 0x61d   : >> { %v4595_v9 = vadd.f32 %v1465_v29, %v1417_v57 }
 0x61e   : >> { %1532 = vrot.lane.b32.xlu1 %v1491_v24, %s3957_s12 }
 0x61f   : >> { %1544 = vrot.lane.b32.xlu0 %v4595_v9, %s3957_s12  ;;  %v1455_v21 = vpop.permute.xlu1 %1454 }
 0x620   : >> { %v4600_v15 = vadd.f32 %v1455_v21, %v1412_v25 }
 0x622   : >> { %1534 = vrot.lane.b32.xlu1 %v4600_v15, %s3957_s12 }
 0x623   : >> { %v1457_v54 = vpop.permute.xlu1 %1456 }
 0x624   : >> { %v4604_v35 = vadd.f32 %v1457_v54, %v1413_v52 }
 0x626   : >> { %1536 = vrot.lane.b32.xlu1 %v4604_v35, %s3957_s12 }
 0x627   : >> { %v1461_v19 = vpop.permute.xlu1 %1460 }
 0x628   : >> { %v4608_v57 = vadd.f32 %v1461_v19, %v1415_v59 }
 0x62a   : >> { %1540 = vrot.lane.b32.xlu1 %v4608_v57, %s3957_s12 }
 0x62b   : >> { %v1441_v48 = vpop.permute.xlu1 %1440 }
 0x62c   : >> { %v4612_v41 = vadd.f32 %v1441_v48, %v1405_v27 }
 0x62e   : >> { %1520 = vrot.lane.b32.xlu1 %v4612_v41, %s3957_s12 }
 0x670   : >> { %v1517_v25 = vpop.permute.xlu1 %1516 }
 0x671   : >> { %v1563_v55 = vadd.f32 %v1517_v25, %v1483_v62  ;;  %v1515_v17 = vpop.permute.xlu0 %1514  ;;  %v4626_v62 = vld [vmem:[%s5738_s3 + $0x8] sm:$0xff] }
 0x672   : >> { %v1562_v52 = vadd.f32 %v1515_v17, %v1482_v63 }
 0x673   : >> { %3802 = vrcp.f32 %v1563_v55 }
 0x674   : >> { %3804 = vrcp.f32 %v1562_v52 }
 0x675   : >> { %v1523_v59 = vpop.permute.xlu0 %1522 }
 0x676   : >> { %v1566_v21 = vadd.f32 %v1523_v59, %v4569_v33 }
 0x678   : >> { %3806 = vrcp.f32 %v1566_v21 }
 0x679   : >> { %v1531_v40 = vpop.permute.xlu0 %1530 }
 0x67d   : >> { %v3803_v27 = vpop.eup %3802  ;;  %v1527_v51 = vpop.permute.xlu0 %1526 }
 0x67e   : >> { %v3805_v10 = vpop.eup %3804  ;;  %v1595_v50 = vmul.f32 %v3803_v27, %v4432_v45  ;;  %v1568_v48 = vadd.f32 %v1527_v51, %v4577_v42  ;;  %v1637_v51 = vcombine.high %v1629_v37, %v1629_v37 }
 0x67f   : >> { %v1594_v63 = vmul.f32 %v3805_v10, %v4434_v38  ;;  %v1570_v38 = vadd.f32 %v1531_v40, %v4573_v44  ;;  %v1622_v10 = vcombine.high %v1621_v31, %v1621_v31 }
 0x680   : >> { %v1660_v13 = vmul.f32 %v4620_v0, %v1595_v50 }
 0x681   : >> { %v1659_v56 = vmul.f32 %v4620_v0, %v1594_v63  ;;  %v1636_v40 = vrot.slane %v1622_v10, %v4298_v7 }
 0x682   : >> { %v1676_v29 = vmul.f32 %v1660_v13, %v4626_v62  ;;  %v3807_v42 = vpop.eup %3806 }
 0x683   : >> { %v1675_v45 = vmul.f32 %v1659_v56, %v4633_v8 }
 0x684   : >> { %1693 = vadd.xlane.f32.xlu0 %v1676_v29  ;;  %v1529_v54 = vpop.permute.xlu0 %1528 }
 0x685   : >> { %1691 = vadd.xlane.f32.xlu1 %v1675_v45  ;;  %v1569_v52 = vadd.f32 %v1529_v54, %v4581_v34 }
 0x688   : >> { %v1519_v19 = vpop.permute.xlu1 %1518 }
 0x689   : >> { %v1564_v25 = vadd.f32 %v1519_v19, %v1484_v58  ;;  %v1539_v55 = vpop.permute.xlu0 %1538 }
 0x68a   : >> { %v1574_v33 = vadd.f32 %v1539_v55, %v4585_v14  ;;  %v1598_v14 = vmul.f32 %v3807_v42, %v4445_v49  ;;  %v1612_v49 = vld [vmem:[%s5738_s3 + $0x10] sm:$0xff] }
 0x68b   : >> { %3808 = vrcp.f32 %v1564_v25 }
 0x68c   : >> { %3810 = vrcp.f32 %v1570_v38  ;;  %v1525_v17 = vpop.permute.xlu1 %1524 }
 0x68d   : >> { %3812 = vrcp.f32 %v1568_v48  ;;  %v1567_v27 = vadd.f32 %v1525_v17, %v1487_v12  ;;  %v1543_v59 = vpop.permute.xlu0 %1542  ;;  %v1646_v12 = vrot.slane %v1636_v40, %v4009_v3 }
 0x68e   : >> { %v1576_v58 = vadd.f32 %v1543_v59, %v4590_v46  ;;  %v1650_v46 = vrot.slane %v1637_v51, %v4009_v3 }
 0x68f   : >> { %3814 = vrcp.f32 %v1567_v27  ;;  %v1663_v54 = vmul.f32 %v1646_v12, %v1598_v14 }
 0x690   : >> { %v1533_v50 = vpop.permute.xlu1 %1532  ;;  %3816 = vrcp.f32 %v1569_v52 }
 0x691   : >> { %v1571_v44 = vadd.f32 %v1533_v50, %v1491_v24  ;;  %v1545_v56 = vpop.permute.xlu0 %1544  ;;  %v1679_v27 = vmul.f32 %v1663_v54, %v4633_v8 }
 0x692   : >> { %v1577_v21 = vadd.f32 %v1545_v56, %v4595_v9  ;;  %v1638_v9 = vcombine.high %v1636_v40, %v1636_v40 }
 0x693   : >> { %3818 = vrcp.f32 %v1571_v44 }
 0x694   : >> { %3820 = vrcp.f32 %v1574_v33  ;;  %v1535_v63 = vpop.permute.xlu1 %1534 }
 0x695   : >> { %v3809_v13 = vpop.eup %3808  ;;  %v1572_v34 = vadd.f32 %v1535_v63, %v4600_v15 }
 0x696   : >> { %v3811_v31 = vpop.eup %3810  ;;  %v1596_v24 = vmul.f32 %v3809_v13, %v4473_v22 }
 0x697   : >> { %v3813_v29 = vpop.eup %3812  ;;  %3822 = vrcp.f32 %v1572_v34  ;;  %v1602_v22 = vmul.f32 %v3811_v31, %v4451_v43 }
 0x698   : >> { %3824 = vrcp.f32 %v1576_v58  ;;  %v1537_v7 = vpop.permute.xlu1 %1536  ;;  %v1661_v45 = vmul.f32 %v4620_v0, %v1596_v24  ;;  %v1600_v48 = vmul.f32 %v3813_v29, %v4457_v61  ;;  %v1654_v58 = vrot.slane %v1638_v9, %v4009_v3 }
 0x699   : >> { %v3815_v37 = vpop.eup %3814  ;;  %v1573_v15 = vadd.f32 %v1537_v7, %v4604_v35  ;;  %v1667_v10 = vmul.f32 %v1650_v46, %v1602_v22  ;;  %v1855_v9 = vadd.s32 4294967271, %v4190_v60 }
 0x69a   : >> { %v1677_v38 = vmul.f32 %v1661_v45, %v1612_v49  ;;  %v1599_v19 = vmul.f32 %v3815_v37, %v4483_v30  ;;  %v3817_v25 = vpop.eup %3816  ;;  %v1665_v59 = vmul.f32 %v1646_v12, %v1600_v48 }
 0x69b   : >> { %3826 = vrcp.f32 %v1573_v15  ;;  %v1601_v61 = vmul.f32 %v3817_v25, %v4468_v26  ;;  %v1613_v26 = vld [vmem:[%s5738_s3 + $0x18] sm:$0xff] }
 0x69c   : >> { %v1541_v55 = vpop.permute.xlu1 %1540  ;;  %1695 = vadd.xlane.f32.xlu0 %v1677_v38  ;;  %v1664_v17 = vmul.f32 %v1646_v12, %v1599_v19  ;;  %3828 = vrcp.f32 %v1577_v21  ;;  %v1681_v51 = vmul.f32 %v1665_v59, %v1612_v49  ;;  %v4696_v59 = vsub.s32 %v1855_v9, %v4003_v1 }
 0x69d   : >> { %v3819_v52 = vpop.eup %3818  ;;  %v1575_v35 = vadd.f32 %v1541_v55, %v4608_v57  ;;  %v1683_v57 = vmul.f32 %v1667_v10, %v4633_v8  ;;  %v1666_v34 = vmul.f32 %v1646_v12, %v1601_v61 }
 0x69e   : >> { %v3821_v33 = vpop.eup %3820  ;;  %v1680_v43 = vmul.f32 %v1664_v17, %v4626_v62  ;;  %v1603_v30 = vmul.f32 %v3819_v52, %v4493_v16 }
 0x69f   : >> { %3830 = vrcp.f32 %v1575_v35  ;;  %v1606_v42 = vmul.f32 %v3821_v33, %v4476_v32  ;;  %v1682_v56 = vmul.f32 %v1666_v34, %v1613_v26  ;;  %v1779_v33 = vadd.s32 7, %v4190_v60 }
 0x6a0   : >> { %v1521_v50 = vpop.permute.xlu1 %1520  ;;  %1701 = vadd.xlane.f32.xlu1 %v1680_v43  ;;  %1699 = vadd.xlane.f32.xlu0 %v1679_v27  ;;  %v1668_v13 = vmul.f32 %v1650_v46, %v1603_v30 }
 0x6a1   : >> { %v3823_v44 = vpop.eup %3822  ;;  %v1565_v40 = vadd.f32 %v1521_v50, %v4612_v41  ;;  %v1671_v14 = vmul.f32 %v1654_v58, %v1606_v42 }
 0x6a2   : >> { %v3825_v63 = vpop.eup %3824  ;;  %v1604_v16 = vmul.f32 %v3823_v44, %v4503_v23  ;;  %v1684_v32 = vmul.f32 %v1668_v13, %v4626_v62  ;;  %v4723_v13 = vsub.s32 %v1779_v33, %v4003_v1 }
 0x6a3   : >> { %3832 = vrcp.f32 %v1565_v40  ;;  %v1608_v31 = vmul.f32 %v3825_v63, %v4486_v36  ;;  %v1687_v7 = vmul.f32 %v1671_v14, %v4633_v8 }
 0x6a4   : >> { %1707 = vadd.xlane.f32.xlu0 %v1683_v57  ;;  %1703 = vadd.xlane.f32.xlu1 %v1681_v51  ;;  %v1669_v24 = vmul.f32 %v1650_v46, %v1604_v16 }
 0x6a5   : >> { %v3827_v41 = vpop.eup %3826  ;;  %v1673_v45 = vmul.f32 %v1654_v58, %v1608_v31 }
 0x6a6   : >> { %v1605_v29 = vmul.f32 %v3827_v41, %v4507_v53  ;;  %v3829_v12 = vpop.eup %3828  ;;  %v1685_v37 = vmul.f32 %v1669_v24, %v1612_v49 }
 0x6a7   : >> { %v1609_v54 = vmul.f32 %v3829_v12, %v4496_v47  ;;  %v1689_v22 = vmul.f32 %v1673_v45, %v1612_v49  ;;  %v1791_v49 = vadd.s32 4294967287, %v4190_v60 }
 0x6a8   : >> { %1709 = vadd.xlane.f32.xlu0 %v1684_v32  ;;  %1705 = vadd.xlane.f32.xlu1 %v1682_v56  ;;  %v1670_v21 = vmul.f32 %v1650_v46, %v1605_v29 }
 0x6a9   : >> { %v3831_v23 = vpop.eup %3830  ;;  %v1674_v53 = vmul.f32 %v1654_v58, %v1609_v54  ;;  %v4693_v43 = vsub.s32 %v1791_v49, %v4003_v1 }
 0x6aa   : >> { %v1607_v15 = vmul.f32 %v3831_v23, %v4511_v2  ;;  %v1686_v38 = vmul.f32 %v1670_v21, %v1613_v26 }
 0x6ab   : >> { %v1690_v25 = vmul.f32 %v1674_v53, %v1613_v26 }
 0x6ac   : >> { %1711 = vadd.xlane.f32.xlu0 %v1685_v37  ;;  %1715 = vadd.xlane.f32.xlu1 %v1687_v7  ;;  %v1672_v19 = vmul.f32 %v1654_v58, %v1607_v15  ;;  %v4762_v15 = vand.u32 15, %v4190_v60 }
 0x6ad   : >> { %v3833_v36 = vpop.eup %3832 }
 0x6ae   : >> { %v1597_v48 = vmul.f32 %v3833_v36, %v4515_v39  ;;  %v1688_v8 = vmul.f32 %v1672_v19, %v4626_v62  ;;  %v1850_v39 = vadd.s32 4294967279, %v4190_v60  ;;  %vm1986_vm9 = vcmp.lt.s32.totalorder %v4762_v15, 1 }
 0x6b0   : >> { %1713 = vadd.xlane.f32.xlu0 %v1686_v38  ;;  %1719 = vadd.xlane.f32.xlu1 %v1689_v22  ;;  %v1662_v46 = vmul.f32 %v4620_v0, %v1597_v48  ;;  %v1784_v0 = vadd.s32 4294967295, %v4190_v60  ;;  %v4703_v61 = vsub.s32 %v1850_v39, %v4003_v1 }
 0x6b2   : >> { %v1678_v2 = vmul.f32 %v1662_v46, %v1613_v26  ;;  %v4714_v58 = vsub.s32 %v1784_v0, %v4003_v1 }
 0x6b4   : >> { %1717 = vadd.xlane.f32.xlu0 %v1688_v8  ;;  %1721 = vadd.xlane.f32.xlu1 %v1690_v25 }
 0x6b8   : >> { %1697 = vadd.xlane.f32.xlu0 %v1678_v2 }
 0x711   : >> { %v1694_v47 = vpop.xlane.xlu0 %1693 }
 0x712   : >> { %v1692_v55 = vpop.xlane.xlu1 %1691  ;;  %v4683_v52 = vadd.f32 0.0001, %v1694_v47 }
 0x713   : >> { %v4686_v35 = vadd.f32 0.0001, %v1692_v55 }
 0x714   : >> { %v4700_v30 = vmul.f32 %v4683_v52, %v4683_v52 }
 0x715   : >> { %v4707_v50 = vmul.f32 %v4686_v35, %v4686_v35 }
 0x716   : >> { %v1859_v34 = vrot.slane %v4700_v30, %v4696_v59  ;;  %v1910_v16 = vrot.slane %v4700_v30, %v4693_v43  ;;  %v1783_v45 = vrot.slane %v4700_v30, %v4723_v13 }
 0x717   : >> { %v1854_v26 = vrot.slane %v4707_v50, %v4703_v61  ;;  %v1906_v24 = vrot.slane %v4707_v50, %v4714_v58 }
 0x719   : >> { %v1911_v48 = vsel %vm1796_vm0, %v1910_v16, %v1906_v24  ;;  %v4783_v46 = vsel %vm1860_vm2, %v1859_v34, %v1854_v26 }
 0x729   : >> { %v1696_v17 = vpop.xlane.xlu0 %1695 }
 0x72a   : >> { %v4689_v10 = vadd.f32 0.0001, %v1696_v17 }
 0x72c   : >> { %5758 = vst [vmem:[#allocation3_spill] sm:$0xff] %v4689_v10  ;;  %v4718_v63 = vmul.f32 %v4689_v10, %v4689_v10 }
 0x72d   : >> { %v1702_v62 = vpop.xlane.xlu1 %1701  ;;  %v1700_v27 = vpop.xlane.xlu0 %1699 }
 0x72e   : >> { %v4709_v44 = vadd.f32 0.0001, %v1702_v62  ;;  %v4711_v40 = vadd.f32 0.0001, %v1700_v27  ;;  %v1788_v29 = vrot.slane %v4718_v63, %v4714_v58  ;;  %v1915_v37 = vrot.slane %v4718_v63, %v4703_v61 }
 0x730   : >> { %v4733_v41 = vmul.f32 %v4709_v44, %v4709_v44  ;;  %v4737_v14 = vmul.f32 %v4711_v40, %v4711_v40  ;;  %v4778_v8 = vsel %vm1789_vm15, %v1788_v29, %v1783_v45  ;;  %v4794_v49 = vsel %vm1916_vm1, %v1915_v37, %v1911_v48 }
 0x731   : >> { %v1704_v57 = vpop.xlane.xlu1 %1703  ;;  %v1708_v42 = vpop.xlane.xlu0 %1707 }
 0x732   : >> { %v4720_v51 = vadd.f32 0.0001, %v1704_v57  ;;  %v4739_v31 = vadd.f32 0.0001, %v1708_v42  ;;  %v1930_v54 = vrot.slane %v4733_v41, %v4693_v43  ;;  %v1926_v36 = vrot.slane %v4737_v14, %v4714_v58 }
 0x733   : >> { %v1869_v25 = vrot.slane %v4733_v41, %v4696_v59  ;;  %v1865_v2 = vrot.slane %v4737_v14, %v4703_v61  ;;  %v1801_v9 = vrot.slane %v4733_v41, %v4723_v13 }
 0x734   : >> { %5759 = vst [vmem:[#allocation4_spill] sm:$0xff] %v4720_v51  ;;  %5760 = vst [vmem:[#allocation5_spill] sm:$0xff] %v4739_v31  ;;  %v4751_v7 = vmul.f32 %v4720_v51, %v4720_v51  ;;  %v4770_v22 = vmul.f32 %v4739_v31, %v4739_v31  ;;  %v1931_v27 = vsel %vm1796_vm0, %v1930_v54, %v1926_v36 }
 0x735   : >> { %v1706_v32 = vpop.xlane.xlu1 %1705  ;;  %v1710_v56 = vpop.xlane.xlu0 %1709  ;;  %v1870_v24 = vsel %vm1860_vm2, %v1869_v25, %v1865_v2 }
 0x736   : >> { %v4745_v12 = vadd.f32 0.0001, %v1706_v32  ;;  %v4747_v23 = vadd.f32 0.0001, %v1710_v56  ;;  %v1805_v47 = vrot.slane %v4751_v7, %v4714_v58  ;;  %v1935_v55 = vrot.slane %v4751_v7, %v4703_v61 }
 0x737   : >> { %v1874_v0 = vrot.slane %v4770_v22, %v4703_v61  ;;  %v1945_v37 = vrot.slane %v4770_v22, %v4714_v58 }
 0x738   : >> { %5761 = vst [vmem:[#allocation6_spill] sm:$0xff] %v4745_v12  ;;  %5762 = vst [vmem:[#allocation7_spill] sm:$0xff] %v4747_v23  ;;  %v4759_v21 = vmul.f32 %v4747_v23, %v4747_v23  ;;  %v4774_v38 = vmul.f32 %v4745_v12, %v4745_v12  ;;  %v1806_v29 = vsel %vm1789_vm15, %v1805_v47, %v1801_v9 }
 0x739   : >> { %v1716_v19 = vpop.xlane.xlu1 %1715  ;;  %v1712_v53 = vpop.xlane.xlu0 %1711  ;;  %v1936_v45 = vsel %vm1916_vm1, %v1935_v55, %v1931_v27 }
 0x73a   : >> { %v4791_v17 = vadd.f32 0.0001, %v1712_v53  ;;  %v1878_v39 = vrot.slane %v4759_v21, %v4696_v59  ;;  %v4800_v62 = vadd.f32 0.0001, %v1716_v19  ;;  %v1810_v33 = vrot.slane %v4774_v38, %v4693_v43 }
 0x73b   : >> { %v1940_v16 = vrot.slane %v4774_v38, %v4696_v59  ;;  %v1949_v26 = vrot.slane %v4759_v21, %v4693_v43  ;;  %v1896_v54 = vrot.slane %v4774_v38, 7  ;;  %v1815_v25 = vrot.slane %v4759_v21, %v4723_v13 }
 0x73c   : >> { %5763 = vst [vmem:[#allocation8_spill] sm:$0xff] %v4791_v17  ;;  %5764 = vst [vmem:[#allocation9_spill] sm:$0xff] %v4800_v62  ;;  %v4809_v57 = vmul.f32 %v4791_v17, %v4791_v17  ;;  %v1879_v36 = vsel %vm1860_vm2, %v1878_v39, %v1874_v0  ;;  %v4828_v19 = vmul.f32 %v4800_v62, %v4800_v62 }
 0x73d   : >> { %v1720_v42 = vpop.xlane.xlu1 %1719  ;;  %v1714_v34 = vpop.xlane.xlu0 %1713  ;;  %v1811_v48 = vsel %vm1796_vm0, %v1810_v33, %v1806_v29  ;;  %v1941_v39 = vsel %vm1860_vm2, %v1940_v16, %v1936_v45  ;;  %v1950_v27 = vsel %vm1796_vm0, %v1949_v26, %v1945_v37  ;;  %v1889_v16 = vsel %vm1840_vm6, %v1879_v36, %v1870_v24 }
 0x73e   : >> { %v4815_v32 = vadd.f32 0.0001, %v1720_v42  ;;  %v4817_v56 = vadd.f32 0.0001, %v1714_v34  ;;  %v1819_v2 = vrot.slane %v4809_v57, %v4714_v58  ;;  %v1954_v47 = vrot.slane %v4809_v57, %v4703_v61 }
 0x73f   : >> { %v1883_v26 = vrot.slane %v4828_v19, %v4703_v61  ;;  %v1964_v45 = vrot.slane %v4828_v19, %v4714_v58  ;;  %v3958_v36 = vmov 0  }
 0x740   : >> { %5765 = vst [vmem:[#allocation10_spill] sm:$0xff] %v4815_v32  ;;  %5766 = vst [vmem:[#allocation11_spill] sm:$0xff] %v4817_v56  ;;  %v4832_v53 = vmul.f32 %v4817_v56, %v4817_v56  ;;  %v4845_v0 = vmul.f32 %v4815_v32, %v4815_v32  ;;  %v1820_v6 = vsel %vm1789_vm15, %v1819_v2, %v1815_v25  ;;  %3769 = vset.pattern.permute.xlu1 %v3958_v36 }
 0x741   : >> { %v1722_v55 = vpop.xlane.xlu1 %1721  ;;  %v1718_v9 = vpop.xlane.xlu0 %1717  ;;  %v1955_v18 = vsel %vm1916_vm1, %v1954_v47, %v1950_v27  ;;  %3768 = vset.pattern.permute.xlu0 %v3958_v36 }
 0x742   : >> { %v1824_v33 = vrot.slane %v4832_v53, %v4693_v43  ;;  %v1959_v42 = vrot.slane %v4832_v53, %v4696_v59  ;;  %v4851_v34 = vadd.f32 0.0001, %v1722_v55  ;;  %v4853_v29 = vadd.f32 0.0001, %v1718_v9 }
 0x743   : >> { %v1897_v37 = vrot.slane %v4832_v53, 6  ;;  %v1833_v11 = vrot.slane %v4845_v0, %v4714_v58  ;;  %v1973_v47 = vrot.slane %v4845_v0, %v4703_v61 }
 0x744   : >> { %5767 = vst [vmem:[#allocation12_spill] sm:$0xff] %v4851_v34  ;;  %5768 = vst [vmem:[#allocation13_spill] sm:$0xff] %v4853_v29  ;;  %v4866_v55 = vmul.f32 %v4851_v34, %v4851_v34  ;;  %v4870_v9 = vmul.f32 %v4853_v29, %v4853_v29  ;;  %v1825_v32 = vsel %vm1796_vm0, %v1824_v33, %v1820_v6 }
 0x745   : >> { %v1698_v24 = vpop.xlane.xlu0 %1697  ;;  %v1960_v25 = vsel %vm1860_vm2, %v1959_v42, %v1955_v18  ;;  %v1898_v33 = vsel %vm1840_vm6, %v1897_v37, %v1896_v54 }
 0x746   : >> { %v4876_v2 = vadd.f32 0.0001, %v1698_v24  ;;  %v1838_v27 = vrot.slane %v4866_v55, %v4693_v43  ;;  %v1899_v34 = vrot.slane %v4866_v55, 5  ;;  %v1829_v29 = vrot.slane %v4870_v9, %v4723_v13 }
 0x747   : >> { %v1887_v58 = vrot.slane %v4870_v9, %v4696_v59  ;;  %v1968_v6 = vrot.slane %v4870_v9, %v4693_v43  ;;  %v1978_v61 = vrot.slane %v4866_v55, %v4696_v59  ;;  %v1841_v24 = vsel %vm1840_vm6, %v1825_v32, %v1811_v48 }
 0x748   : >> { %5769 = vst [vmem:[#allocation14_spill] sm:$0xff] %v4876_v2  ;;  %v1742_v18 = vmul.f32 %v4876_v2, %v4876_v2  ;;  %v1834_v42 = vsel %vm1789_vm15, %v1833_v11, %v1829_v29  ;;  %v1980_v13 = vsel %vm1840_vm6, %v1960_v25, %v1941_v39  ;;  %v1900_v37 = vsel %vm1842_vm7, %v1899_v34, %v1898_v33 }
 0x749   : >> { %v1888_v36 = vsel %vm1860_vm2, %v1887_v58, %v1883_v26  ;;  %v1969_v56 = vsel %vm1796_vm0, %v1968_v6, %v1964_v45  ;;  %v1839_v2 = vsel %vm1796_vm0, %v1838_v27, %v1834_v42  ;;  %vm2272_vm15 = vcmask 146432  }
 0x74a   : >> { %v1795_v17 = vrot.slane %v1742_v18, %v4693_v43  ;;  %v1921_v62 = vrot.slane %v1742_v18, %v4696_v59  ;;  %v1890_v54 = vsel %vm1842_vm7, %v1888_v36, %v1889_v16  ;;  %v1974_v11 = vsel %vm1916_vm1, %v1973_v47, %v1969_v56 }
 0x74b   : >> { %v1843_v39 = vsel %vm1842_vm7, %v1839_v2, %v1841_v24  ;;  %v1979_v43 = vsel %vm1860_vm2, %v1978_v61, %v1974_v11  ;;  %vm2556_vm1 = vcmask 162912  }
 0x74c   : >> { %v1797_v32 = vsel %vm1796_vm0, %v1795_v17, %v4778_v8  ;;  %v1922_v48 = vsel %vm1860_vm2, %v1921_v62, %v4794_v49  ;;  %v1895_v16 = vsel %vm1893_vm8, %v1843_v39, %v1890_v54  ;;  %v1981_v34 = vsel %vm1842_vm7, %v1979_v43, %v1980_v13 }
 0x74d   : >> { %v1894_v59 = vsel %vm1893_vm8, %v1797_v32, %v4783_v46  ;;  %v1984_v29 = vsel %vm5770_vm3, %v1742_v18, %v1922_v48  ;;  %v1985_v8 = vsel %vm5770_vm3, %v1900_v37, %v1981_v34  ;;  %vm2378_vm0 = vcmp.lt.s32.totalorder %v4762_v15, 2 }
 0x74e   : >> { %v1987_v56 = vsel %vm1986_vm9, %v1894_v59, %v1984_v29  ;;  %v1988_v49 = vsel %vm1986_vm9, %v1895_v16, %v1985_v8  ;;  %v2234_v16 = vadd.s32 4294967270, %v4190_v60  ;;  %v2152_v8 = vadd.s32 4294967294, %v4190_v60 }
 0x74f   : >> { %v1994_v17 = vrot.slane %v1987_v56, %v4062_v28  ;;  %v2013_v46 = vrot.slane %v1988_v49, %v4009_v3  ;;  %v2032_v62 = vrot.slane %v1988_v49, %v4012_v4  ;;  %v2051_v26 = vrot.slane %v1988_v49, %v4015_v5 }
 0x750   : >> { %v4996_v49 = vsub.s32 %v2234_v16, %v4003_v1  ;;  %vm2632_vm2 = vcmask 294112   ;;  %vm2600_vm8 = vcmask 1045509   ;;  %vm2549_vm9 = vcmask 97312  }
 0x751   : >> { %2000 = vbcast.lane.b32.xlu0 %v1994_v17, 264  ;;  %1996 = vbcast.lane.b32.xlu1 %v1994_v17, 256 }
 0x755   : >> { %2004 = vbcast.lane.b32.xlu0 %v1994_v17, 272  ;;  %2015 = vbcast.lane.b32.xlu1 %v2013_v46, 256 }
 0x759   : >> { %2008 = vbcast.lane.b32.xlu0 %v1994_v17, 280  ;;  %2019 = vbcast.lane.b32.xlu1 %v2013_v46, 264  ;;  %v2229_v17 = vadd.s32 4294967278, %v4190_v60 }
 0x75d   : >> { %2034 = vbcast.lane.b32.xlu0 %v2032_v62, 256  ;;  %2023 = vbcast.lane.b32.xlu1 %v2013_v46, 272 }
 0x761   : >> { %2053 = vbcast.lane.b32.xlu0 %v2051_v26, 256  ;;  %2038 = vbcast.lane.b32.xlu1 %v2032_v62, 264 }
 0x765   : >> { %2042 = vbcast.lane.b32.xlu0 %v2032_v62, 272  ;;  %2057 = vbcast.lane.b32.xlu1 %v2051_v26, 264 }
 0x769   : >> { %2046 = vbcast.lane.b32.xlu0 %v2032_v62, 280  ;;  %2027 = vbcast.lane.b32.xlu1 %v2013_v46, 280 }
 0x76d   : >> { %2061 = vbcast.lane.b32.xlu1 %v2051_v26, 272 }
 0x771   : >> { %2065 = vbcast.lane.b32.xlu1 %v2051_v26, 280 }
 0x7c3   : >> { %v2001_v45 = vpop.permute.xlu0 %2000  ;;  %v1997_v25 = vpop.permute.xlu1 %1996 }
 0x7c4   : >> { %v4926_v2 = vadd.f32 %v2001_v45, %v4700_v30  ;;  %v4929_v47 = vadd.f32 %v1997_v25, %v4707_v50  ;;  %v5004_v45 = vsub.s32 %v2152_v8, %v4003_v1  ;;  %v5007_v25 = vsub.s32 %v2229_v17, %v4003_v1 }
 0x7c6   : >> { %2112 = vperm.xlu0 %3768, %v4926_v2   ;;  %2218 = vperm.xlu1 %3769, %v4929_v47  }
 0x7c7   : >> { %v2005_v27 = vpop.permute.xlu0 %2004  ;;  %v2016_v58 = vpop.permute.xlu1 %2015 }
 0x7c8   : >> { %v4934_v6 = vadd.f32 %v2005_v27, %v4718_v63  ;;  %v4937_v33 = vadd.f32 %v2016_v58, %v4737_v14 }
 0x7ca   : >> { %2115 = vperm.xlu1 %3769, %v4934_v6   ;;  %2221 = vperm.xlu0 %3768, %v4937_v33  }
 0x7cb   : >> { %v2009_v30 = vpop.permute.xlu0 %2008  ;;  %v2020_v61 = vpop.permute.xlu1 %2019 }
 0x7cc   : >> { %v4941_v50 = vadd.f32 %v2009_v30, %v1742_v18  ;;  %v4945_v13 = vadd.f32 %v2020_v61, %v4733_v41 }
 0x7ce   : >> { %2118 = vperm.xlu1 %3769, %v4941_v50  }
 0x7cf   : >> { %v2035_v42 = vpop.permute.xlu0 %2034  ;;  %v2024_v24 = vpop.permute.xlu1 %2023 }
 0x7d0   : >> { %v4948_v63 = vadd.f32 %v2024_v24, %v4751_v7  ;;  %v4957_v11 = vadd.f32 %v2035_v42, %v4770_v22 }
 0x7d2   : >> { %2121 = vperm.xlu1 %3769, %v4945_v13   ;;  %2124 = vperm.xlu0 %3768, %v4948_v63  }
 0x7d3   : >> { %v2054_v14 = vpop.permute.xlu0 %2053  ;;  %v2039_v36 = vpop.permute.xlu1 %2038 }
 0x7d4   : >> { %v4953_v54 = vadd.f32 %v2039_v36, %v4759_v21  ;;  %v4965_v32 = vadd.f32 %v2054_v14, %v4828_v19 }
 0x7d6   : >> { %2130 = vperm.xlu1 %3769, %v4953_v54  }
 0x7d7   : >> { %v2043_v18 = vpop.permute.xlu0 %2042  ;;  %v2058_v37 = vpop.permute.xlu1 %2057 }
 0x7d8   : >> { %v4960_v41 = vadd.f32 %v2058_v37, %v4870_v9  ;;  %v4968_v21 = vadd.f32 %v2043_v18, %v4809_v57 }
 0x7da   : >> { %2224 = vperm.xlu1 %3769, %v4957_v11   ;;  %2139 = vperm.xlu0 %3768, %v4960_v41  }
 0x7db   : >> { %v2028_v7 = vpop.permute.xlu1 %2027  ;;  %v2047_v48 = vpop.permute.xlu0 %2046 }
 0x7dc   : >> { %v4973_v9 = vadd.f32 %v2047_v48, %v4832_v53  ;;  %v4976_v39 = vadd.f32 %v2028_v7, %v4774_v38 }
 0x7de   : >> { %2133 = vperm.xlu1 %3769, %v4968_v21   ;;  %2227 = vperm.xlu0 %3768, %v4965_v32  }
 0x7df   : >> { %v2062_v22 = vpop.permute.xlu1 %2061 }
 0x7e0   : >> { %v4981_v19 = vadd.f32 %v2062_v22, %v4845_v0  ;;  %v2159_v0 = vadd.s32 4294967286, %v4190_v60 }
 0x7e2   : >> { %2136 = vperm.xlu1 %3769, %v4973_v9   ;;  %2127 = vperm.xlu0 %3768, %v4976_v39   ;;  %v5001_v26 = vsub.s32 %v2159_v0, %v4003_v1 }
 0x7e3   : >> { %v2066_v57 = vpop.permute.xlu1 %2065 }
 0x7e4   : >> { %v4985_v43 = vadd.f32 %v2066_v57, %v4866_v55  ;;  %v2147_v55 = vadd.s32 6, %v4190_v60 }
 0x7e6   : >> { %2142 = vperm.xlu0 %3768, %v4981_v19   ;;  %v5010_v27 = vsub.s32 %v2147_v55, %v4003_v1 }
 0x7ea   : >> { %2145 = vperm.xlu0 %3768, %v4985_v43  }
 0x845   : >> { %v2219_v53 = vpop.permute.xlu1 %2218  ;;  %v2113_v29 = vpop.permute.xlu0 %2112 }
 0x846   : >> { %v2238_v58 = vrot.slane %v2113_v29, %v4996_v49  ;;  %v2302_v24 = vrot.slane %v2113_v29, %v5001_v26  ;;  %v2233_v14 = vrot.slane %v2219_v53, %v5007_v25  ;;  %v2298_v36 = vrot.slane %v2219_v53, %v5004_v45 }
 0x847   : >> { %v2151_v8 = vrot.slane %v2113_v29, %v5010_v27 }
 0x848   : >> { %v2240_v23 = vsel %vm2239_vm11, %v2238_v58, %v2233_v14 }
 0x849   : >> { %v2116_v59 = vpop.permute.xlu1 %2115  ;;  %v2222_v34 = vpop.permute.xlu0 %2221 }
 0x84a   : >> { %v2244_v37 = vrot.slane %v2222_v34, %v5007_v25  ;;  %v2318_v7 = vrot.slane %v2222_v34, %v5004_v45  ;;  %v2156_v48 = vrot.slane %v2116_v59, %v5004_v45  ;;  %v2307_v22 = vrot.slane %v2116_v59, %v5007_v25 }
 0x84b   : >> { %v2303_v59 = vsel %vm2164_vm10, %v2302_v24, %v2298_v36 }
 0x84c   : >> { %v2309_v29 = vsel %vm2308_vm13, %v2307_v22, %v2303_v59 }
 0x84d   : >> { %v4988_v38 = vpop.permute.xlu1 %2118 }
 0x84e   : >> { %v2163_v57 = vrot.slane %v4988_v38, %v5001_v26  ;;  %v2313_v16 = vrot.slane %v4988_v38, %v4996_v49 }
 0x851   : >> { %v2122_v56 = vpop.permute.xlu1 %2121  ;;  %v2125_v46 = vpop.permute.xlu0 %2124 }
 0x852   : >> { %v2248_v30 = vrot.slane %v2122_v56, %v4996_v49  ;;  %v2322_v18 = vrot.slane %v2122_v56, %v5001_v26  ;;  %v2173_v0 = vrot.slane %v2125_v46, %v5004_v45  ;;  %v2169_v53 = vrot.slane %v2122_v56, %v5010_v27 }
 0x853   : >> { %v2327_v17 = vrot.slane %v2125_v46, %v5007_v25  ;;  %v2158_v56 = vsel %vm2157_vm12, %v2156_v48, %v2151_v8  ;;  %v2278_v46 = vrot.slane %v4988_v38, %v5010_v27 }
 0x854   : >> { %v2249_v34 = vsel %vm2239_vm11, %v2248_v30, %v2244_v37  ;;  %v2323_v31 = vsel %vm2164_vm10, %v2322_v18, %v2318_v7  ;;  %v2165_v30 = vsel %vm2164_vm10, %v2163_v57, %v2158_v56  ;;  %v2314_v37 = vsel %vm2239_vm11, %v2313_v16, %v2309_v29 }
 0x855   : >> { %v4998_v62 = vpop.permute.xlu1 %2130  ;;  %v2174_v24 = vsel %vm2157_vm12, %v2173_v0, %v2169_v53  ;;  %v2268_v36 = vsel %vm2208_vm14, %v2249_v34, %v2240_v23  ;;  %v2328_v38 = vsel %vm2308_vm13, %v2327_v17, %v2323_v31 }
 0x856   : >> { %v2183_v18 = vrot.slane %v4998_v62, %v5010_v27  ;;  %v2257_v58 = vrot.slane %v4998_v62, %v4996_v49  ;;  %v2341_v14 = vrot.slane %v4998_v62, %v5001_v26 }
 0x859   : >> { %v5014_v61 = vpop.permute.xlu0 %2139  ;;  %v5016_v42 = vpop.permute.xlu1 %2224 }
 0x85a   : >> { %v2197_v48 = vrot.slane %v5014_v61, %v5010_v27  ;;  %v2266_v16 = vrot.slane %v5014_v61, %v4996_v49  ;;  %v2253_v0 = vrot.slane %v5016_v42, %v5007_v25  ;;  %v2337_v62 = vrot.slane %v5016_v42, %v5004_v45 }
 0x85b   : >> { %v2360_v51 = vrot.slane %v5014_v61, %v5001_v26 }
 0x85d   : >> { %v2228_v55 = vpop.permute.xlu0 %2227  ;;  %v2134_v12 = vpop.permute.xlu1 %2133 }
 0x85e   : >> { %v2262_v31 = vrot.slane %v2228_v55, %v5007_v25  ;;  %v2356_v8 = vrot.slane %v2228_v55, %v5004_v45  ;;  %v2187_v56 = vrot.slane %v2134_v12, %v5004_v45  ;;  %v2346_v29 = vrot.slane %v2134_v12, %v5007_v25 }
 0x860   : >> { %v2267_v61 = vsel %vm2239_vm11, %v2266_v16, %v2262_v31 }
 0x861   : >> { %v2128_v7 = vpop.permute.xlu0 %2127  ;;  %v2137_v53 = vpop.permute.xlu1 %2136 }
 0x862   : >> { %v2178_v22 = vrot.slane %v2128_v7, %v5001_v26  ;;  %v2282_v57 = vrot.slane %v2128_v7, %v5010_v27  ;;  %v2332_v23 = vrot.slane %v2128_v7, %v4996_v49  ;;  %v2192_v55 = vrot.slane %v2137_v53, %v5001_v26 }
 0x864   : >> { %v2179_v17 = vsel %vm2164_vm10, %v2178_v22, %v2174_v24  ;;  %v2291_v34 = vsel %vm2208_vm14, %v2282_v57, %v2278_v46  ;;  %v2333_v59 = vsel %vm2239_vm11, %v2332_v23, %v2328_v38  ;;  %v2351_v38 = vrot.slane %v2137_v53, %v4996_v49 }
 0x865   : >> { %v2209_v7 = vsel %vm2208_vm14, %v2179_v17, %v2165_v30  ;;  %v2143_v10 = vpop.permute.xlu0 %2142  ;;  %v2372_v42 = vsel %vm2208_vm14, %v2333_v59, %v2314_v37  ;;  %v2258_v37 = vsel %vm2239_vm11, %v2257_v58, %v2253_v0  ;;  %v2342_v57 = vsel %vm2164_vm10, %v2341_v14, %v2337_v62 }
 0x866   : >> { %v2273_v24 = vsel %vm2272_vm15, %v2209_v7, %v2268_v36  ;;  %v2376_v46 = vsel %vm5771_vm4, %v2291_v34, %v2372_v42  ;;  %v2201_v22 = vrot.slane %v2143_v10, %v5004_v45  ;;  %v2365_v12 = vrot.slane %v2143_v10, %v5007_v25 }
 0x867   : >> { %v2379_v30 = vsel %vm2378_vm0, %v2273_v24, %v2376_v46  ;;  %v2361_v36 = vsel %vm2164_vm10, %v2360_v51, %v2356_v8  ;;  %v2188_v17 = vsel %vm2157_vm12, %v2187_v56, %v2183_v18  ;;  %v2347_v34 = vsel %vm2308_vm13, %v2346_v29, %v2342_v57 }
 0x868   : >> { %v2386_v23 = vrot.slane %v2379_v30, %v4049_v20  ;;  %v2286_v45 = vrot.slane %v2137_v53, %v5010_v27  ;;  %v2193_v14 = vsel %vm2164_vm10, %v2192_v55, %v2188_v17  ;;  %v2352_v16 = vsel %vm2239_vm11, %v2351_v38, %v2347_v34 }
 0x869   : >> { %v2146_v10 = vpop.permute.xlu0 %2145  ;;  %v2202_v51 = vsel %vm2157_vm12, %v2201_v22, %v2197_v48  ;;  %v2366_v18 = vsel %vm2308_vm13, %v2365_v12, %v2361_v36  ;;  %vm2665_vm12 = vcmask 162816   ;;  %vm2769_vm13 = vcmp.lt.s32.totalorder %v4762_v15, 4 }
 0x86a   : >> { %v2206_v25 = vrot.slane %v2146_v10, %v5001_v26  ;;  %v2290_v59 = vrot.slane %v2146_v10, %v5010_v27  ;;  %v2370_v58 = vrot.slane %v2146_v10, %v4996_v49  ;;  %2392 = vbcast.lane.b32.xlu0 %v2386_v23, 264  ;;  %2388 = vbcast.lane.b32.xlu1 %v2386_v23, 256 }
 0x86b   : >> { %v2405_v27 = vrot.slane %v2379_v30, %v4062_v28  ;;  %v2269_v49 = vsel %vm1840_vm6, %v2267_v61, %v2258_v37 }
 0x86c   : >> { %v2207_v0 = vsel %vm2164_vm10, %v2206_v25, %v2202_v51  ;;  %v2292_v62 = vsel %vm1840_vm6, %v2290_v59, %v2286_v45  ;;  %v2371_v26 = vsel %vm2239_vm11, %v2370_v58, %v2366_v18  ;;  %vm2700_vm10 = vcmask 228512  }
 0x86d   : >> { %v2210_v31 = vsel %vm1840_vm6, %v2207_v0, %v2193_v14  ;;  %v2373_v53 = vsel %vm1840_vm6, %v2371_v26, %v2352_v16  ;;  %v2539_v0 = vadd.s32 4, %v4190_v60  ;;  %v2551_v26 = vadd.s32 4294967284, %v4190_v60 }
 0x86e   : >> { %v2377_v8 = vsel %vm5771_vm4, %v2292_v62, %v2373_v53  ;;  %2411 = vbcast.lane.b32.xlu0 %v2405_v27, 264  ;;  %2407 = vbcast.lane.b32.xlu1 %v2405_v27, 256  ;;  %v2274_v48 = vsel %vm2272_vm15, %v2210_v31, %v2269_v49  ;;  %v2627_v62 = vadd.s32 4294967268, %v4190_v60  ;;  %vm2602_vm11 = vcmask 1046534  }
 0x86f   : >> { %v2380_v56 = vsel %vm2378_vm0, %v2274_v48, %v2377_v8  ;;  %v5190_v53 = vsub.s32 %v2539_v0, %v4003_v1  ;;  %v5196_v48 = vsub.s32 %v2551_v26, %v4003_v1  ;;  %vm2937_vm15 = vcmask 130112  }
 0x870   : >> { %v2424_v29 = vrot.slane %v2380_v56, %v4009_v3  ;;  %v2443_v7 = vrot.slane %v2380_v56, %v4012_v4  ;;  %v5193_v8 = vsub.s32 %v2627_v62, %v4003_v1  ;;  %vm3065_vm0 = vcmask 261312  }
 0x872   : >> { %2415 = vbcast.lane.b32.xlu0 %v2405_v27, 272  ;;  %2396 = vbcast.lane.b32.xlu1 %v2386_v23, 272 }
 0x876   : >> { %2430 = vbcast.lane.b32.xlu0 %v2424_v29, 264  ;;  %2426 = vbcast.lane.b32.xlu1 %v2424_v29, 256 }
 0x87a   : >> { %2419 = vbcast.lane.b32.xlu0 %v2405_v27, 280  ;;  %2400 = vbcast.lane.b32.xlu1 %v2386_v23, 280 }
 0x87e   : >> { %2445 = vbcast.lane.b32.xlu0 %v2443_v7, 256  ;;  %2434 = vbcast.lane.b32.xlu1 %v2424_v29, 272 }
 0x882   : >> { %2438 = vbcast.lane.b32.xlu0 %v2424_v29, 280  ;;  %2449 = vbcast.lane.b32.xlu1 %v2443_v7, 264 }
 0x886   : >> { %2457 = vbcast.lane.b32.xlu0 %v2443_v7, 280  ;;  %2453 = vbcast.lane.b32.xlu1 %v2443_v7, 272 }
 0x8dc   : >> { %v2393_v42 = vpop.permute.xlu0 %2392  ;;  %v2389_v55 = vpop.permute.xlu1 %2388 }
 0x8dd   : >> { %v5113_v24 = vadd.f32 %v2393_v42, %v4926_v2  ;;  %v5117_v22 = vadd.f32 %v2389_v55, %v4929_v47 }
 0x8df   : >> { %2504 = vperm.xlu1 %3769, %v5113_v24  }
 0x8e0   : >> { %v2412_v46 = vpop.permute.xlu0 %2411  ;;  %v2408_v38 = vpop.permute.xlu1 %2407 }
 0x8e1   : >> { %v5120_v12 = vadd.f32 %v2412_v46, %v4945_v13  ;;  %v5125_v57 = vadd.f32 %v2408_v38, %v4937_v33 }
 0x8e3   : >> { %2513 = vperm.xlu0 %3768, %v5120_v12   ;;  %2611 = vperm.xlu1 %3769, %v5117_v22  }
 0x8e4   : >> { %v2416_v30 = vpop.permute.xlu0 %2415  ;;  %v2397_v37 = vpop.permute.xlu1 %2396 }
 0x8e5   : >> { %v5128_v2 = vadd.f32 %v2397_v37, %v4934_v6  ;;  %v5133_v13 = vadd.f32 %v2416_v30, %v4948_v63 }
 0x8e7   : >> { %2614 = vperm.xlu0 %3768, %v5125_v57   ;;  %2507 = vperm.xlu1 %3769, %v5128_v2  }
 0x8e8   : >> { %v2431_v47 = vpop.permute.xlu0 %2430  ;;  %v2427_v61 = vpop.permute.xlu1 %2426 }
 0x8e9   : >> { %v5136_v23 = vadd.f32 %v2431_v47, %v4953_v54  ;;  %v5141_v6 = vadd.f32 %v2427_v61, %v4957_v11 }
 0x8eb   : >> { %2516 = vperm.xlu0 %3768, %v5133_v13   ;;  %2522 = vperm.xlu1 %3769, %v5136_v23  }
 0x8ec   : >> { %v2420_v33 = vpop.permute.xlu0 %2419  ;;  %v2401_v36 = vpop.permute.xlu1 %2400 }
 0x8ed   : >> { %v5144_v17 = vadd.f32 %v2401_v36, %v4941_v50  ;;  %v5149_v54 = vadd.f32 %v2420_v33, %v4976_v39 }
 0x8ef   : >> { %2617 = vperm.xlu0 %3768, %v5141_v6   ;;  %2510 = vperm.xlu1 %3769, %v5144_v17  }
 0x8f0   : >> { %v2446_v63 = vpop.permute.xlu0 %2445  ;;  %v2435_v34 = vpop.permute.xlu1 %2434 }
 0x8f1   : >> { %v5152_v45 = vadd.f32 %v2435_v34, %v4968_v21  ;;  %v5157_v50 = vadd.f32 %v2446_v63, %v4965_v32 }
 0x8f3   : >> { %2519 = vperm.xlu0 %3768, %v5149_v54   ;;  %2525 = vperm.xlu1 %3769, %v5152_v45  }
 0x8f4   : >> { %v2439_v11 = vpop.permute.xlu0 %2438  ;;  %v2450_v10 = vpop.permute.xlu1 %2449 }
 0x8f5   : >> { %v5160_v25 = vadd.f32 %v2450_v10, %v4960_v41  ;;  %v5165_v21 = vadd.f32 %v2439_v11, %v4973_v9  ;;  %v2544_v9 = vadd.s32 4294967292, %v4190_v60 }
 0x8f7   : >> { %2620 = vperm.xlu1 %3769, %v5157_v50   ;;  %2531 = vperm.xlu0 %3768, %v5160_v25   ;;  %v5184_v49 = vsub.s32 %v2544_v9, %v4003_v1 }
 0x8f8   : >> { %v2454_v39 = vpop.permute.xlu1 %2453  ;;  %v2458_v58 = vpop.permute.xlu0 %2457 }
 0x8f9   : >> { %v5168_v59 = vadd.f32 %v2454_v39, %v4981_v19  ;;  %v5173_v32 = vadd.f32 %v2458_v58, %v4985_v43  ;;  %v2622_v19 = vadd.s32 4294967276, %v4190_v60 }
 0x8fb   : >> { %2528 = vperm.xlu0 %3768, %v5165_v21   ;;  %2534 = vperm.xlu1 %3769, %v5168_v59   ;;  %v5187_v31 = vsub.s32 %v2622_v19, %v4003_v1 }
 0x8ff   : >> { %2537 = vperm.xlu0 %3768, %v5173_v32  }
 0x95e   : >> { %v2505_v41 = vpop.permute.xlu1 %2504 }
 0x95f   : >> { %v2543_v55 = vrot.slane %v2505_v41, %v5190_v53  ;;  %v2631_v46 = vrot.slane %v2505_v41, %v5193_v8  ;;  %v2694_v30 = vrot.slane %v2505_v41, %v5196_v48 }
 0x962   : >> { %v2514_v14 = vpop.permute.xlu0 %2513  ;;  %v2612_v16 = vpop.permute.xlu1 %2611 }
 0x963   : >> { %v2626_v7 = vrot.slane %v2612_v16, %v5187_v31  ;;  %v2690_v42 = vrot.slane %v2612_v16, %v5184_v49  ;;  %v2561_v33 = vrot.slane %v2514_v14, %v5190_v53  ;;  %v2641_v36 = vrot.slane %v2514_v14, %v5193_v8 }
 0x964   : >> { %v2714_v63 = vrot.slane %v2514_v14, %v5196_v48 }
 0x965   : >> { %v2633_v39 = vsel %vm2632_vm2, %v2631_v46, %v2626_v7  ;;  %v2695_v58 = vsel %vm2556_vm1, %v2694_v30, %v2690_v42 }
 0x966   : >> { %v2615_v51 = vpop.permute.xlu0 %2614  ;;  %v2508_v18 = vpop.permute.xlu1 %2507 }
 0x967   : >> { %v2637_v38 = vrot.slane %v2615_v51, %v5187_v31  ;;  %v2710_v37 = vrot.slane %v2615_v51, %v5184_v49  ;;  %v2548_v47 = vrot.slane %v2508_v18, %v5184_v49  ;;  %v2699_v61 = vrot.slane %v2508_v18, %v5187_v31 }
 0x969   : >> { %v2642_v51 = vsel %vm2632_vm2, %v2641_v36, %v2637_v38  ;;  %v2715_v19 = vsel %vm2556_vm1, %v2714_v63, %v2710_v37  ;;  %v2550_v0 = vsel %vm2549_vm9, %v2548_v47, %v2543_v55  ;;  %v2701_v62 = vsel %vm2700_vm10, %v2699_v61, %v2695_v58 }
 0x96a   : >> { %v2517_v27 = vpop.permute.xlu0 %2516  ;;  %v5181_v43 = vpop.permute.xlu1 %2522  ;;  %v2661_v30 = vsel %vm2600_vm8, %v2642_v51, %v2633_v39 }
 0x96b   : >> { %v2565_v41 = vrot.slane %v2517_v27, %v5184_v49  ;;  %v2719_v16 = vrot.slane %v2517_v27, %v5187_v31  ;;  %v2650_v18 = vrot.slane %v5181_v43, %v5193_v8  ;;  %v2733_v27 = vrot.slane %v5181_v43, %v5196_v48 }
 0x96c   : >> { %v2575_v47 = vrot.slane %v5181_v43, %v5190_v53 }
 0x96d   : >> { %v2566_v55 = vsel %vm2549_vm9, %v2565_v41, %v2561_v33  ;;  %v2720_v37 = vsel %vm2700_vm10, %v2719_v16, %v2715_v19 }
 0x96e   : >> { %v2618_v56 = vpop.permute.xlu0 %2617  ;;  %v5198_v29 = vpop.permute.xlu1 %2510 }
 0x96f   : >> { %v2646_v34 = vrot.slane %v2618_v56, %v5187_v31  ;;  %v2729_v9 = vrot.slane %v2618_v56, %v5184_v49  ;;  %v2555_v14 = vrot.slane %v5198_v29, %v5196_v48  ;;  %v2705_v26 = vrot.slane %v5198_v29, %v5193_v8 }
 0x970   : >> { %v2670_v63 = vrot.slane %v5198_v29, %v5190_v53 }
 0x971   : >> { %v2651_v7 = vsel %vm2632_vm2, %v2650_v18, %v2646_v34  ;;  %v2734_v61 = vsel %vm2556_vm1, %v2733_v27, %v2729_v9  ;;  %v2557_v36 = vsel %vm2556_vm1, %v2555_v14, %v2550_v0  ;;  %v2706_v39 = vsel %vm2632_vm2, %v2705_v26, %v2701_v62 }
 0x972   : >> { %v2520_v11 = vpop.permute.xlu0 %2519  ;;  %v2526_v10 = vpop.permute.xlu1 %2525  ;;  %v2662_v58 = vsel %vm2602_vm11, %v2651_v7, %v2661_v30 }
 0x973   : >> { %v2570_v42 = vrot.slane %v2520_v11, %v5196_v48  ;;  %v2724_v56 = vrot.slane %v2520_v11, %v5193_v8  ;;  %v2579_v34 = vrot.slane %v2526_v10, %v5184_v49  ;;  %v2674_v33 = vrot.slane %v2520_v11, %v5190_v53 }
 0x974   : >> { %v2738_v41 = vrot.slane %v2526_v10, %v5187_v31 }
 0x975   : >> { %v2571_v43 = vsel %vm2556_vm1, %v2570_v42, %v2566_v55  ;;  %v2725_v16 = vsel %vm2632_vm2, %v2724_v56, %v2720_v37  ;;  %v2580_v0 = vsel %vm2549_vm9, %v2579_v34, %v2575_v47  ;;  %v2683_v42 = vsel %vm2600_vm8, %v2674_v33, %v2670_v63 }
 0x976   : >> { %v2532_v46 = vpop.permute.xlu0 %2531  ;;  %v2621_v38 = vpop.permute.xlu1 %2620  ;;  %v2601_v7 = vsel %vm2600_vm8, %v2571_v43, %v2557_v36  ;;  %v2739_v56 = vsel %vm2700_vm10, %v2738_v41, %v2734_v61  ;;  %v2764_v30 = vsel %vm2600_vm8, %v2725_v16, %v2706_v39  ;;  %vm949_vm8 = vcmask 64512  }
 0x977   : >> { %v2659_v51 = vrot.slane %v2532_v46, %v5193_v8  ;;  %v2655_v29 = vrot.slane %v2621_v38, %v5187_v31  ;;  %v2752_v14 = vrot.slane %v2532_v46, %v5196_v48  ;;  %v2748_v19 = vrot.slane %v2621_v38, %v5184_v49 }
 0x978   : >> { %v2589_v55 = vrot.slane %v2532_v46, %v5190_v53 }
 0x979   : >> { %v2660_v37 = vsel %vm2632_vm2, %v2659_v51, %v2655_v29 }
 0x97a   : >> { %v2529_v18 = vpop.permute.xlu0 %2528  ;;  %v2535_v9 = vpop.permute.xlu1 %2534 }
 0x97b   : >> { %v2584_v11 = vrot.slane %v2529_v18, %v5196_v48  ;;  %v2743_v10 = vrot.slane %v2529_v18, %v5193_v8  ;;  %v2678_v62 = vrot.slane %v2529_v18, %v5190_v53  ;;  %v2593_v26 = vrot.slane %v2535_v9, %v5184_v49 }
 0x97c   : >> { %v2757_v27 = vrot.slane %v2535_v9, %v5187_v31  ;;  %v2753_v49 = vsel %vm2556_vm1, %v2752_v14, %v2748_v19  ;;  %v5773_v14 = vsub.s32 4, %v4003_v1 }
 0x97d   : >> { %v2585_v38 = vsel %vm2556_vm1, %v2584_v11, %v2580_v0  ;;  %v2744_v47 = vsel %vm2632_vm2, %v2743_v10, %v2739_v56  ;;  %v2684_v33 = vsel %vm2602_vm11, %v2678_v62, %v2683_v42  ;;  %v2594_v39 = vsel %vm2549_vm9, %v2593_v26, %v2589_v55 }
 0x97e   : >> { %v2538_v34 = vpop.permute.xlu0 %2537  ;;  %v2603_v61 = vsel %vm2602_vm11, %v2585_v38, %v2601_v7  ;;  %v2758_v46 = vsel %vm2700_vm10, %v2757_v27, %v2753_v49  ;;  %v2765_v41 = vsel %vm2602_vm11, %v2744_v47, %v2764_v30  ;;  %v5774_v11 = vsub.s32 5, %v4003_v1 }
 0x97f   : >> { %v2598_v31 = vrot.slane %v2538_v34, %v5196_v48  ;;  %v2682_v36 = vrot.slane %v2538_v34, %v5190_v53  ;;  %v2762_v63 = vrot.slane %v2538_v34, %v5193_v8  ;;  %v2663_v53 = vsel %vm2208_vm14, %v2660_v37, %v2662_v58 }
 0x980   : >> { %vm3114_vm9 = vcmp.lt.s32.totalorder %v4762_v15, 8 }
 0x981   : >> { %v2599_v43 = vsel %vm2556_vm1, %v2598_v31, %v2594_v39  ;;  %v2685_v16 = vsel %vm2208_vm14, %v2682_v36, %v2684_v33  ;;  %v2763_v48 = vsel %vm2632_vm2, %v2762_v63, %v2758_v46  ;;  %vm5757_vm1 = vcmask 1043459  }
 0x982   : >> { %v2604_v8 = vsel %vm2208_vm14, %v2599_v43, %v2603_v61  ;;  %v2766_v51 = vsel %vm2208_vm14, %v2763_v48, %v2765_v41  ;;  %vm2944_vm14 = vcmask 195712   ;;  %vm3030_vm2 = vcmask 195584  }
 0x983   : >> { %v2666_v29 = vsel %vm2665_vm12, %v2604_v8, %v2663_v53  ;;  %v2768_v18 = vsel %vm5772_vm5, %v2685_v16, %v2766_v51  ;;  %v2932_v53 = vadd.s32 4294967288, %v4190_v60  ;;  %v2939_v8 = vadd.s32 4294967280, %v4190_v60 }
 0x984   : >> { %v2770_v9 = vsel %vm2769_vm13, %v2666_v29, %v2768_v18 }
 0x985   : >> { %v2775_v19 = vrot.slane %v2770_v9, %v5773_v14  ;;  %v2794_v10 = vrot.slane %v2770_v9, %v5774_v11  ;;  %v2813_v58 = vrot.slane %v2770_v9, %v4049_v20  ;;  %v2832_v0 = vrot.slane %v2770_v9, %v4062_v28 }
 0x986   : >> { %v5365_v29 = vsub.s32 %v2932_v53, %v4003_v1  ;;  %v5368_v18 = vsub.s32 %v2939_v8, %v4003_v1  ;;  %v5372_v9 = vsub.s32 %v4190_v60, %v4003_v1 }
 0x987   : >> { %2781 = vbcast.lane.b32.xlu0 %v2775_v19, 264  ;;  %2777 = vbcast.lane.b32.xlu1 %v2775_v19, 256 }
 0x98b   : >> { %2796 = vbcast.lane.b32.xlu0 %v2794_v10, 256  ;;  %2785 = vbcast.lane.b32.xlu1 %v2775_v19, 272 }
 0x98f   : >> { %2804 = vbcast.lane.b32.xlu0 %v2794_v10, 272  ;;  %2800 = vbcast.lane.b32.xlu1 %v2794_v10, 264 }
 0x993   : >> { %2808 = vbcast.lane.b32.xlu0 %v2794_v10, 280  ;;  %2789 = vbcast.lane.b32.xlu1 %v2775_v19, 280 }
 0x997   : >> { %2819 = vbcast.lane.b32.xlu0 %v2813_v58, 264  ;;  %2815 = vbcast.lane.b32.xlu1 %v2813_v58, 256 }
 0x99b   : >> { %2827 = vbcast.lane.b32.xlu0 %v2813_v58, 280  ;;  %2823 = vbcast.lane.b32.xlu1 %v2813_v58, 272 }
 0x99f   : >> { %2838 = vbcast.lane.b32.xlu0 %v2832_v0, 264  ;;  %2834 = vbcast.lane.b32.xlu1 %v2832_v0, 256 }
 0x9a3   : >> { %2846 = vbcast.lane.b32.xlu0 %v2832_v0, 280  ;;  %2842 = vbcast.lane.b32.xlu1 %v2832_v0, 272 }
 0x9f9   : >> { %v2782_v62 = vpop.permute.xlu0 %2781  ;;  %v2778_v26 = vpop.permute.xlu1 %2777 }
 0x9fa   : >> { %v5294_v27 = vadd.f32 %v2782_v62, %v5113_v24  ;;  %v5310_v34 = vadd.f32 %v2778_v26, %v5117_v22 }
 0x9fc   : >> { %2893 = vperm.xlu1 %3769, %v5294_v27  }
 0x9fd   : >> { %v2797_v7 = vpop.permute.xlu0 %2796  ;;  %v2786_v42 = vpop.permute.xlu1 %2785 }
 0x9fe   : >> { %v5298_v56 = vadd.f32 %v2786_v42, %v5128_v2  ;;  %v5313_v2 = vadd.f32 %v2797_v7, %v5125_v57 }
 0xa00   : >> { %2896 = vperm.xlu0 %3768, %v5298_v56  }
 0xa01   : >> { %v2805_v38 = vpop.permute.xlu0 %2804  ;;  %v2801_v30 = vpop.permute.xlu1 %2800 }
 0xa02   : >> { %v5302_v55 = vadd.f32 %v2805_v38, %v5133_v13  ;;  %v5305_v37 = vadd.f32 %v2801_v30, %v5120_v12 }
 0xa04   : >> { %2905 = vperm.xlu0 %3768, %v5302_v55   ;;  %2902 = vperm.xlu1 %3769, %v5305_v37  }
 0xa05   : >> { %v2809_v24 = vpop.permute.xlu0 %2808  ;;  %v2790_v47 = vpop.permute.xlu1 %2789 }
 0xa06   : >> { %v5318_v12 = vadd.f32 %v2809_v24, %v5149_v54  ;;  %v5321_v31 = vadd.f32 %v2790_v47, %v5144_v17 }
 0xa08   : >> { %3001 = vperm.xlu0 %3768, %v5313_v2   ;;  %2998 = vperm.xlu1 %3769, %v5310_v34  }
 0xa09   : >> { %v2820_v13 = vpop.permute.xlu0 %2819  ;;  %v2816_v49 = vpop.permute.xlu1 %2815 }
 0xa0a   : >> { %v5326_v57 = vadd.f32 %v2820_v13, %v5136_v23  ;;  %v5334_v17 = vadd.f32 %v2816_v49, %v5141_v6 }
 0xa0c   : >> { %2908 = vperm.xlu0 %3768, %v5318_v12   ;;  %2899 = vperm.xlu1 %3769, %v5321_v31  }
 0xa0d   : >> { %v2828_v22 = vpop.permute.xlu0 %2827  ;;  %v2824_v36 = vpop.permute.xlu1 %2823 }
 0xa0e   : >> { %v5329_v63 = vadd.f32 %v2824_v36, %v5152_v45  ;;  %v5337_v33 = vadd.f32 %v2828_v22, %v5165_v21 }
 0xa10   : >> { %2911 = vperm.xlu1 %3769, %v5326_v57   ;;  %2914 = vperm.xlu0 %3768, %v5329_v63  }
 0xa11   : >> { %v2839_v54 = vpop.permute.xlu0 %2838  ;;  %v2835_v61 = vpop.permute.xlu1 %2834 }
 0xa12   : >> { %v5342_v45 = vadd.f32 %v2839_v54, %v5160_v25  ;;  %v5350_v6 = vadd.f32 %v2835_v61, %v5157_v50 }
 0xa14   : >> { %3004 = vperm.xlu1 %3769, %v5334_v17   ;;  %2917 = vperm.xlu0 %3768, %v5337_v33  }
 0xa15   : >> { %v2843_v23 = vpop.permute.xlu1 %2842  ;;  %v2847_v46 = vpop.permute.xlu0 %2846 }
 0xa16   : >> { %v5345_v39 = vadd.f32 %v2843_v23, %v5168_v59  ;;  %v5353_v21 = vadd.f32 %v2847_v46, %v5173_v32  ;;  %v3009_v32 = vadd.s32 4294967272, %v4190_v60 }
 0xa18   : >> { %2920 = vperm.xlu1 %3769, %v5342_v45   ;;  %2923 = vperm.xlu0 %3768, %v5345_v39   ;;  %v5376_v10 = vsub.s32 %v3009_v32, %v4003_v1 }
 0xa1c   : >> { %3007 = vperm.xlu1 %3769, %v5350_v6   ;;  %2926 = vperm.xlu0 %3768, %v5353_v21  }
 0xa7b   : >> { %v2894_v25 = vpop.permute.xlu1 %2893 }
 0xa7c   : >> { %v3059_v42 = vrot.slane %v2894_v25, %v5368_v18  ;;  %v2931_v38 = vrot.slane %v2894_v25, %v5372_v9 }
 0xa7f   : >> { %v2897_v41 = vpop.permute.xlu0 %2896 }
 0xa80   : >> { %v2936_v0 = vrot.slane %v2897_v41, %v5365_v29  ;;  %v3064_v22 = vrot.slane %v2897_v41, %v5376_v10 }
 0xa82   : >> { %v2938_v23 = vsel %vm2937_vm15, %v2936_v0, %v2931_v38 }
 0xa83   : >> { %v2906_v43 = vpop.permute.xlu0 %2905  ;;  %v2903_v59 = vpop.permute.xlu1 %2902 }
 0xa84   : >> { %v2953_v62 = vrot.slane %v2906_v43, %v5365_v29  ;;  %v2949_v26 = vrot.slane %v2903_v59, %v5372_v9  ;;  %v3074_v7 = vrot.slane %v2903_v59, %v5368_v18  ;;  %v3079_v36 = vrot.slane %v2906_v43, %v5376_v10 }
 0xa86   : >> { %v2954_v46 = vsel %vm2937_vm15, %v2953_v62, %v2949_v26 }
 0xa87   : >> { %v3002_v16 = vpop.permute.xlu0 %3001  ;;  %v2999_v48 = vpop.permute.xlu1 %2998 }
 0xa88   : >> { %v3070_v14 = vrot.slane %v3002_v16, %v5365_v29  ;;  %v3055_v58 = vrot.slane %v2999_v48, %v5365_v29  ;;  %v3017_v25 = vrot.slane %v3002_v16, %v5376_v10  ;;  %v3013_v59 = vrot.slane %v2999_v48, %v5376_v10 }
 0xa8a   : >> { %v3075_v30 = vsel %vm2944_vm14, %v3074_v7, %v3070_v14  ;;  %v3060_v54 = vsel %vm2944_vm14, %v3059_v42, %v3055_v58 }
 0xa8b   : >> { %v5359_v51 = vpop.permute.xlu0 %2908  ;;  %v5361_v50 = vpop.permute.xlu1 %2899  ;;  %v3080_v53 = vsel %vm3065_vm0, %v3079_v36, %v3075_v30  ;;  %v3066_v32 = vsel %vm3065_vm0, %v3064_v22, %v3060_v54 }
 0xa8c   : >> { %v2958_v24 = vrot.slane %v5359_v51, %v5368_v18  ;;  %v2943_v47 = vrot.slane %v5361_v50, %v5368_v18  ;;  %v3039_v62 = vrot.slane %v5359_v51, %v5372_v9  ;;  %v3035_v26 = vrot.slane %v5361_v50, %v5372_v9 }
 0xa8e   : >> { %v2959_v14 = vsel %vm2944_vm14, %v2958_v24, %v2954_v46  ;;  %v2945_v58 = vsel %vm2944_vm14, %v2943_v47, %v2938_v23  ;;  %v3026_v24 = vsel %vm1840_vm6, %v3017_v25, %v3013_v59  ;;  %v3109_v47 = vsel %vm1840_vm6, %v3080_v53, %v3066_v32 }
 0xa8f   : >> { %v2915_v19 = vpop.permute.xlu0 %2914  ;;  %v2912_v11 = vpop.permute.xlu1 %2911  ;;  %v2988_v51 = vsel %vm1840_vm6, %v2959_v14, %v2945_v58  ;;  %v3048_v53 = vsel %vm1840_vm6, %v3039_v62, %v3035_v26 }
 0xa90   : >> { %v2967_v8 = vrot.slane %v2915_v19, %v5365_v29  ;;  %v2963_v41 = vrot.slane %v2912_v11, %v5372_v9  ;;  %v3088_v43 = vrot.slane %v2912_v11, %v5368_v18  ;;  %v3093_v11 = vrot.slane %v2915_v19, %v5376_v10 }
 0xa92   : >> { %v2968_v50 = vsel %vm2937_vm15, %v2967_v8, %v2963_v41 }
 0xa93   : >> { %v2918_v13 = vpop.permute.xlu0 %2917  ;;  %v3005_v49 = vpop.permute.xlu1 %3004 }
 0xa94   : >> { %v3084_v61 = vrot.slane %v3005_v49, %v5365_v29  ;;  %v2972_v16 = vrot.slane %v2918_v13, %v5368_v18  ;;  %v3021_v42 = vrot.slane %v3005_v49, %v5376_v10  ;;  %v3043_v36 = vrot.slane %v2918_v13, %v5372_v9 }
 0xa96   : >> { %v3089_v7 = vsel %vm2944_vm14, %v3088_v43, %v3084_v61  ;;  %v2973_v22 = vsel %vm2944_vm14, %v2972_v16, %v2968_v50  ;;  %v3027_v8 = vsel %vm1842_vm7, %v3021_v42, %v3026_v24  ;;  %v3049_v16 = vsel %vm1842_vm7, %v3043_v36, %v3048_v53 }
 0xa97   : >> { %v2924_v0 = vpop.permute.xlu0 %2923  ;;  %v2921_v48 = vpop.permute.xlu1 %2920  ;;  %v3094_v19 = vsel %vm3065_vm0, %v3093_v11, %v3089_v7  ;;  %v2989_v43 = vsel %vm1842_vm7, %v2973_v22, %v2988_v51  ;;  %v5775_v51 = vsub.s32 3, %v4003_v1 }
 0xa98   : >> { %v2981_v38 = vrot.slane %v2924_v0, %v5365_v29  ;;  %v2977_v30 = vrot.slane %v2921_v48, %v5372_v9  ;;  %v3102_v49 = vrot.slane %v2921_v48, %v5368_v18  ;;  %v3107_v13 = vrot.slane %v2924_v0, %v5376_v10 }
 0xa99   : >> { %v3110_v48 = vsel %vm1842_vm7, %v3094_v19, %v3109_v47 }
 0xa9a   : >> { %v2982_v41 = vsel %vm2937_vm15, %v2981_v38, %v2977_v30 }
 0xa9b   : >> { %v2927_v54 = vpop.permute.xlu0 %2926  ;;  %v3008_v61 = vpop.permute.xlu1 %3007 }
 0xa9c   : >> { %v2986_v23 = vrot.slane %v2927_v54, %v5368_v18  ;;  %v3047_v46 = vrot.slane %v2927_v54, %v5372_v9  ;;  %v3025_v25 = vrot.slane %v3008_v61, %v5376_v10  ;;  %v3098_v59 = vrot.slane %v3008_v61, %v5365_v29 }
 0xa9e   : >> { %v2987_v32 = vsel %vm2944_vm14, %v2986_v23, %v2982_v41  ;;  %v3028_v14 = vsel %vm5757_vm1, %v3025_v25, %v3027_v8  ;;  %v3103_v58 = vsel %vm2944_vm14, %v3102_v49, %v3098_v59  ;;  %v3050_v0 = vsel %vm5757_vm1, %v3047_v46, %v3049_v16 }
 0xa9f   : >> { %v2991_v62 = vsel %vm5757_vm1, %v2987_v32, %v2989_v43  ;;  %v3108_v26 = vsel %vm3065_vm0, %v3107_v13, %v3103_v58 }
 0xaa0   : >> { %v3031_v7 = vsel %vm3030_vm2, %v2991_v62, %v3028_v14  ;;  %v3111_v11 = vsel %vm5757_vm1, %v3108_v26, %v3110_v48 }
 0xaa1   : >> { %v3113_v42 = vsel %vm949_vm8, %v3050_v0, %v3111_v11 }
 0xaa2   : >> { %v3115_v38 = vsel %vm3114_vm9, %v3031_v7, %v3113_v42 }
 0xaa3   : >> { %v3120_v30 = vrot.slane %v3115_v38, %v4009_v3  ;;  %v3139_v24 = vrot.slane %v3115_v38, %v4012_v4  ;;  %v3158_v47 = vrot.slane %v3115_v38, %v4015_v5  ;;  %v3177_v15 = vrot.slane %v3115_v38, %v5775_v51 }
 0xaa5   : >> { %3126 = vbcast.lane.b32.xlu0 %v3120_v30, 264  ;;  %3122 = vbcast.lane.b32.xlu1 %v3120_v30, 256 }
 0xaa9   : >> { %3145 = vbcast.lane.b32.xlu0 %v3139_v24, 264  ;;  %3141 = vbcast.lane.b32.xlu1 %v3139_v24, 256 }
 0xaad   : >> { %3149 = vbcast.lane.b32.xlu0 %v3139_v24, 272  ;;  %3130 = vbcast.lane.b32.xlu1 %v3120_v30, 272 }
 0xab1   : >> { %3164 = vbcast.lane.b32.xlu0 %v3158_v47, 264  ;;  %3160 = vbcast.lane.b32.xlu1 %v3158_v47, 256 }
 0xab5   : >> { %3153 = vbcast.lane.b32.xlu0 %v3139_v24, 280  ;;  %3134 = vbcast.lane.b32.xlu1 %v3120_v30, 280 }
 0xab9   : >> { %3179 = vbcast.lane.b32.xlu0 %v3177_v15, 256  ;;  %3168 = vbcast.lane.b32.xlu1 %v3158_v47, 272 }
 0xabd   : >> { %3172 = vbcast.lane.b32.xlu0 %v3158_v47, 280  ;;  %3183 = vbcast.lane.b32.xlu1 %v3177_v15, 264 }
 0xac1   : >> { %3191 = vbcast.lane.b32.xlu0 %v3177_v15, 280  ;;  %3187 = vbcast.lane.b32.xlu1 %v3177_v15, 272 }
 0xb17   : >> { %v3127_v50 = vpop.permute.xlu0 %3126  ;;  %v3123_v22 = vpop.permute.xlu1 %3122 }
 0xb18   : >> { %v3210_v36 = vadd.f32 %v3127_v50, %v5294_v27  ;;  %v5453_v19 = vadd.f32 %v3123_v22, %v5310_v34 }
 0xb1a   : >> { %3834 = vrsqrt.f32 %v3210_v36  ;;  %v3338_v61 = vadd.f32 1.0, %v3210_v36  ;;  %v3337_v25 = vadd.f32 1.0, %v5453_v19  ;;  %vm3234_vm10 = vcmp.eq.f32.partialorder %v3210_v36, inf }
 0xb1b   : >> { %3836 = vrsqrt.f32 %v5453_v19  ;;  %v3146_v49 = vpop.permute.xlu0 %3145  ;;  %v3142_v54 = vpop.permute.xlu1 %3141  ;;  %vm3236_vm11 = vcmp.eq.f32.partialorder %v3210_v36, 0.0  ;;  %vm3227_vm12 = vcmp.eq.f32.partialorder %v5453_v19, inf  ;;  %vm3229_vm13 = vcmp.eq.f32.partialorder %v5453_v19, 0.0 }
 0xb1c   : >> { %v5457_v23 = vadd.f32 %v3146_v49, %v5305_v37  ;;  %v5460_v46 = vadd.f32 %v3142_v54, %v5313_v2  ;;  %3838 = vrcp.f32 %v3338_v61  ;;  %v3237_v2 = vand.u32 2147483648, %v3210_v36 }
 0xb1d   : >> { %v3230_v13 = vand.u32 2147483648, %v5453_v19 }
 0xb1e   : >> { %3840 = vrsqrt.f32 %v5457_v23  ;;  %v3342_v59 = vadd.f32 1.0, %v5457_v23  ;;  %v3341_v8 = vadd.f32 1.0, %v5460_v46  ;;  %vm3262_vm2 = vcmp.eq.f32.partialorder %v5457_v23, inf }
 0xb1f   : >> { %3842 = vrsqrt.f32 %v5460_v46  ;;  %v3150_v27 = vpop.permute.xlu0 %3149  ;;  %v3131_v34 = vpop.permute.xlu1 %3130  ;;  %vm3264_vm8 = vcmp.eq.f32.partialorder %v5457_v23, 0.0  ;;  %v3265_v58 = vand.u32 2147483648, %v5457_v23  ;;  %vm3255_vm9 = vcmp.eq.f32.partialorder %v5460_v46, inf }
 0xb20   : >> { %v5467_v53 = vadd.f32 %v3150_v27, %v5302_v55  ;;  %v5470_v37 = vadd.f32 %v3131_v34, %v5298_v56  ;;  %3844 = vrcp.f32 %v3337_v25  ;;  %v3258_v62 = vand.u32 2147483648, %v5460_v46 }
 0xb21   : >> { %3846 = vrcp.f32 %v3342_v59  ;;  %vm3257_vm3 = vcmp.eq.f32.partialorder %v5460_v46, 0.0 }
 0xb22   : >> { %3848 = vrsqrt.f32 %v5467_v53  ;;  %v3343_v41 = vadd.f32 1.0, %v5467_v53  ;;  %v3339_v26 = vadd.f32 1.0, %v5470_v37  ;;  %v3244_v0 = vand.u32 2147483648, %v5470_v37 }
 0xb23   : >> { %3850 = vrsqrt.f32 %v5470_v37  ;;  %v3165_v55 = vpop.permute.xlu0 %3164  ;;  %v3161_v56 = vpop.permute.xlu1 %3160  ;;  %vm3269_vm4 = vcmp.eq.f32.partialorder %v5467_v53, inf  ;;  %vm3241_vm5 = vcmp.eq.f32.partialorder %v5470_v37, inf  ;;  %vm3243_vm1 = vcmp.eq.f32.partialorder %v5470_v37, 0.0 }
 0xb24   : >> { %v3835_v43 = vpop.eup %3834  ;;  %v5482_v32 = vadd.f32 %v3165_v55, %v5326_v57  ;;  %v5485_v14 = vadd.f32 %v3161_v56, %v5334_v17  ;;  %3852 = vrcp.f32 %v3341_v8  ;;  %v3272_v17 = vand.u32 2147483648, %v5467_v53 }
 0xb25   : >> { %v3837_v16 = vpop.eup %3836  ;;  %v3233_v48 = vmul.f32 %v3835_v43, %v3210_v36  ;;  %3854 = vrcp.f32 %v3343_v41 }
 0xb26   : >> { %3856 = vrsqrt.f32 %v5482_v32  ;;  %v3226_v57 = vmul.f32 %v3837_v16, %v5453_v19  ;;  %v3839_v7 = vpop.eup %3838  ;;  %v3293_v30 = vand.u32 2147483648, %v5482_v32  ;;  %v5500_v24 = vadd.f32 1.0, %v5482_v32 }
 0xb27   : >> { %3858 = vrsqrt.f32 %v5485_v14  ;;  %v3154_v11 = vpop.permute.xlu0 %3153  ;;  %v3135_v42 = vpop.permute.xlu1 %3134  ;;  %v3235_v38 = vsel %vm3234_vm10, %v3210_v36, %v3233_v48  ;;  %v3370_v22 = vmul.f32 %v3839_v7, %v3210_v36  ;;  %vm3271_vm10 = vcmp.eq.f32.partialorder %v5467_v53, 0.0 }
 0xb28   : >> { %v3841_v47 = vpop.eup %3840  ;;  %v5503_v51 = vadd.f32 %v3154_v11, %v5318_v12  ;;  %v5506_v15 = vadd.f32 %v3135_v42, %v5321_v31  ;;  %v3238_v50 = vsel %vm3236_vm11, %v3237_v2, %v3235_v38  ;;  %v3228_v61 = vsel %vm3227_vm12, %v5453_v19, %v3226_v57 }
 0xb29   : >> { %v3843_v49 = vpop.eup %3842  ;;  %v3402_v54 = vadd.f32 1e-20, %v3238_v50  ;;  %v3261_v25 = vmul.f32 %v3841_v47, %v5457_v23  ;;  %3860 = vrcp.f32 %v3339_v26  ;;  %v5519_v31 = vmul.f32 %v3370_v22, %v4683_v52 }
 0xb2a   : >> { %v3845_v12 = vpop.eup %3844  ;;  %3862 = vrsqrt.f32 %v5503_v51  ;;  %v3231_v36 = vsel %vm3229_vm13, %v3230_v13, %v3228_v61  ;;  %v3254_v27 = vmul.f32 %v3843_v49, %v5460_v46  ;;  %vm3290_vm11 = vcmp.eq.f32.partialorder %v5482_v32, inf }
 0xb2b   : >> { %v3847_v34 = vpop.eup %3846  ;;  %3864 = vrsqrt.f32 %v5506_v15  ;;  %v3180_v59 = vpop.permute.xlu0 %3179  ;;  %v3369_v8 = vmul.f32 %v3845_v12, %v5453_v19  ;;  %v3401_v55 = vadd.f32 1e-20, %v3231_v36  ;;  %v3263_v56 = vsel %vm3262_vm2, %v5457_v23, %v3261_v25 }
 0xb2c   : >> { %v3169_v2 = vpop.permute.xlu1 %3168  ;;  %v3849_v41 = vpop.eup %3848  ;;  %v5530_v52 = vadd.f32 %v3180_v59, %v5350_v6  ;;  %3866 = vrcp.f32 %v3402_v54  ;;  %v3266_v43 = vsel %vm3264_vm8, %v3265_v58, %v3263_v56  ;;  %v3374_v48 = vmul.f32 %v3847_v34, %v5457_v23 }
 0xb2d   : >> { %v5533_v13 = vadd.f32 %v3169_v2, %v5329_v63  ;;  %v3851_v16 = vpop.eup %3850  ;;  %v3385_v19 = vmul.f32 %v3369_v8, %v4686_v35  ;;  %3868 = vrcp.f32 %v3401_v55  ;;  %v3406_v26 = vadd.f32 1e-20, %v3266_v43 }
 0xb2e   : >> { %vm3292_vm12 = vcmp.eq.f32.partialorder %v5482_v32, 0.0  ;;  %v3853_v6 = vpop.eup %3852  ;;  %3870 = vrsqrt.f32 %v5530_v52  ;;  %v3256_v63 = vsel %vm3255_vm9, %v5460_v46, %v3254_v27  ;;  %v3268_v58 = vmul.f32 %v3849_v41, %v5467_v53  ;;  %v5776_v27 = vld [vmem:[#allocation4_spill] sm:$0xff] }
 0xb2f   : >> { %v3240_v57 = vmul.f32 %v3851_v16, %v5470_v37  ;;  %v3855_v7 = vpop.eup %3854  ;;  %3872 = vrsqrt.f32 %v5533_v13  ;;  %v3173_v35 = vpop.permute.xlu0 %3172  ;;  %v3390_v23 = vmul.f32 %v3374_v48, %v4709_v44  ;;  %v3259_v42 = vsel %vm3257_vm3, %v3258_v62, %v3256_v63 }
 0xb30   : >> { %v3184_v11 = vpop.permute.xlu1 %3183  ;;  %v3373_v38 = vmul.f32 %v3853_v6, %v5460_v46  ;;  %v3857_v47 = vpop.eup %3856  ;;  %v5555_v50 = vadd.f32 %v3173_v35, %v5337_v33  ;;  %3874 = vrcp.f32 %v3406_v26  ;;  %v3405_v49 = vadd.f32 1e-20, %v3259_v42 }
 0xb31   : >> { %v5558_v22 = vadd.f32 %v3184_v11, %v5342_v45  ;;  %v3859_v54 = vpop.eup %3858  ;;  %v3270_v44 = vsel %vm3269_vm4, %v5467_v53, %v3268_v58  ;;  %v3375_v62 = vmul.f32 %v3855_v7, %v5467_v53  ;;  %v3242_v33 = vsel %vm3241_vm5, %v5470_v37, %v3240_v57 }
 0xb32   : >> { %v5561_v61 = vmul.f32 %v3373_v38, %v4711_v40  ;;  %3876 = vrsqrt.f32 %v5555_v50  ;;  %v3273_v45 = vsel %vm3271_vm10, %v3272_v17, %v3270_v44  ;;  %v3245_v40 = vsel %vm3243_vm1, %v3244_v0, %v3242_v33 }
 0xb33   : >> { %v3289_v46 = vmul.f32 %v3857_v47, %v5482_v32  ;;  %v3861_v25 = vpop.eup %3860  ;;  %3878 = vrsqrt.f32 %v5558_v22  ;;  %v3192_v12 = vpop.permute.xlu0 %3191  ;;  %v5582_v34 = vmul.f32 %v3375_v62, %v5776_v27  ;;  %v3407_v59 = vadd.f32 1e-20, %v3273_v45 }
 0xb34   : >> { %v3188_v36 = vpop.permute.xlu1 %3187  ;;  %v3403_v2 = vadd.f32 1e-20, %v3245_v40  ;;  %v3863_v8 = vpop.eup %3862  ;;  %v5585_v53 = vadd.f32 %v3192_v12, %v5353_v21  ;;  %3880 = vrcp.f32 %v3405_v49  ;;  %v3371_v0 = vmul.f32 %v3861_v25, %v5470_v37  ;;  %v5777_v21 = vld [vmem:[#allocation3_spill] sm:$0xff] }
 0xb35   : >> { %v5588_v17 = vadd.f32 %v3188_v36, %v5345_v39  ;;  %v3865_v55 = vpop.eup %3864  ;;  %3882 = vrcp.f32 %v3407_v59  ;;  %v3291_v56 = vsel %vm3290_vm11, %v5482_v32, %v3289_v46  ;;  %v3282_v41 = vmul.f32 %v3859_v54, %v5485_v14 }
 0xb36   : >> { %vm3283_vm3 = vcmp.eq.f32.partialorder %v5485_v14, inf  ;;  %v3867_v43 = vpop.eup %3866  ;;  %3884 = vrsqrt.f32 %v5585_v53  ;;  %v5598_v16 = vmul.f32 %v3371_v0, %v5777_v21  ;;  %v3294_v39 = vsel %vm3292_vm12, %v3293_v30, %v3291_v56 }
 0xb37   : >> { %vm3285_vm4 = vcmp.eq.f32.partialorder %v5485_v14, 0.0  ;;  %v3869_v37 = vpop.eup %3868  ;;  %3886 = vrsqrt.f32 %v5588_v17  ;;  %v3434_v48 = vmul.f32 %v3867_v43, %v5519_v31  ;;  %v3410_v26 = vadd.f32 1e-20, %v3294_v39 }
 0xb38   : >> { %v3284_v6 = vsel %vm3283_vm3, %v5485_v14, %v3282_v41  ;;  %v3871_v63 = vpop.eup %3870  ;;  %v3433_v58 = vmul.f32 %v3869_v37, %v3385_v19  ;;  %3888 = vrcp.f32 %v3403_v2  ;;  %v3286_v57 = vand.u32 2147483648, %v5485_v14 }
 0xb39   : >> { %v3345_v7 = vadd.f32 1.0, %v5485_v14  ;;  %v3873_v35 = vpop.eup %3872  ;;  %3469 = vperm.xlu0 %3768, %v3434_v48   ;;  %3890 = vrcp.f32 %v5500_v24  ;;  %v3275_v30 = vmul.f32 %v3863_v8, %v5503_v51  ;;  %vm3276_vm5 = vcmp.eq.f32.partialorder %v5503_v51, inf }
 0xb3a   : >> { %vm3278_vm1 = vcmp.eq.f32.partialorder %v5503_v51, 0.0  ;;  %v3875_v31 = vpop.eup %3874  ;;  %3466 = vperm.xlu1 %3769, %v3433_v58   ;;  %3892 = vrcp.f32 %v3410_v26  ;;  %v3287_v19 = vsel %vm3285_vm4, %v3286_v57, %v3284_v6  ;;  %v3279_v11 = vand.u32 2147483648, %v5503_v51 }
 0xb3b   : >> { %v3344_v42 = vadd.f32 1.0, %v5503_v51  ;;  %v3438_v38 = vmul.f32 %v3875_v31, %v3390_v23  ;;  %3894 = vrcp.f32 %v3345_v7  ;;  %v3409_v47 = vadd.f32 1e-20, %v3287_v19  ;;  %v5778_v31 = vld [vmem:[#allocation7_spill] sm:$0xff] }
 0xb3c   : >> { %v3277_v24 = vsel %vm3276_vm5, %v5503_v51, %v3275_v30  ;;  %v3877_v49 = vpop.eup %3876  ;;  %v3247_v44 = vmul.f32 %v3865_v55, %v5506_v15  ;;  %vm3248_vm13 = vcmp.eq.f32.partialorder %v5506_v15, inf  ;;  %vm3250_vm2 = vcmp.eq.f32.partialorder %v5506_v15, 0.0 }
 0xb3d   : >> { %v3280_v54 = vsel %vm3278_vm1, %v3279_v11, %v3277_v24  ;;  %3896 = vrcp.f32 %v3344_v42  ;;  %v5621_v62 = vpop.eup %3878  ;;  %3481 = vperm.xlu0 %3768, %v3438_v38   ;;  %v3251_v23 = vand.u32 2147483648, %v5506_v15  ;;  %v3340_v46 = vadd.f32 1.0, %v5506_v15 }
 0xb3e   : >> { %3898 = vrcp.f32 %v3409_v47  ;;  %v3408_v33 = vadd.f32 1e-20, %v3280_v54  ;;  %v3881_v45 = vpop.eup %3880  ;;  %v3249_v40 = vsel %vm3248_vm13, %v5506_v15, %v3247_v44  ;;  %v3310_v25 = vmul.f32 %v3871_v63, %v5530_v52  ;;  %v5779_v54 = vld [vmem:[#allocation5_spill] sm:$0xff] }
 0xb3f   : >> { %vm3311_vm8 = vcmp.eq.f32.partialorder %v5530_v52, inf  ;;  %v3883_v12 = vpop.eup %3882  ;;  %v3437_v36 = vmul.f32 %v3881_v45, %v5561_v61  ;;  %v3252_v27 = vsel %vm3250_vm2, %v3251_v23, %v3249_v40  ;;  %vm3313_vm9 = vcmp.eq.f32.partialorder %v5530_v52, 0.0 }
 0xb40   : >> { %3900 = vrcp.f32 %v3408_v33  ;;  %v5631_v59 = vpop.eup %3884  ;;  %v3439_v2 = vmul.f32 %v3883_v12, %v5582_v34  ;;  %v3404_v8 = vadd.f32 1e-20, %v3252_v27  ;;  %v3312_v0 = vsel %vm3311_vm8, %v5530_v52, %v3310_v25 }
 0xb41   : >> { %3902 = vrcp.f32 %v3340_v46  ;;  %v5635_v55 = vpop.eup %3886  ;;  %3478 = vperm.xlu1 %3769, %v3437_v36   ;;  %v3314_v56 = vand.u32 2147483648, %v5530_v52  ;;  %v3349_v41 = vadd.f32 1.0, %v5530_v52  ;;  %v3296_v61 = vmul.f32 %v3873_v35, %v5533_v13 }
 0xb42   : >> { %vm3297_vm10 = vcmp.eq.f32.partialorder %v5533_v13, inf  ;;  %v3889_v43 = vpop.eup %3888  ;;  %3484 = vperm.xlu0 %3768, %v3439_v2   ;;  %3904 = vrcp.f32 %v3404_v8  ;;  %vm3299_vm11 = vcmp.eq.f32.partialorder %v5533_v13, 0.0  ;;  %v3300_v34 = vand.u32 2147483648, %v5533_v13 }
 0xb43   : >> { %v3347_v21 = vadd.f32 1.0, %v5533_v13  ;;  %v3891_v39 = vpop.eup %3890  ;;  %v3435_v37 = vmul.f32 %v3889_v43, %v5598_v16  ;;  %v3315_v48 = vsel %vm3313_vm9, %v3314_v56, %v3312_v0  ;;  %3906 = vrcp.f32 %v3349_v41 }
 0xb44   : >> { %v3298_v26 = vsel %vm3297_vm10, %v5533_v13, %v3296_v61  ;;  %v3893_v6 = vpop.eup %3892  ;;  %v3378_v63 = vmul.f32 %v3891_v39, %v5482_v32  ;;  %v3413_v58 = vadd.f32 1e-20, %v3315_v48  ;;  %v3303_v30 = vmul.f32 %v3877_v49, %v5555_v50  ;;  %v5781_v61 = vld [vmem:[#allocation14_spill] sm:$0xff] }
 0xb45   : >> { %v3301_v57 = vsel %vm3299_vm11, %v3300_v34, %v3298_v26  ;;  %3908 = vrcp.f32 %v3347_v21  ;;  %v3895_v7 = vpop.eup %3894  ;;  %3472 = vperm.xlu1 %3769, %v3435_v37   ;;  %vm3304_vm12 = vcmp.eq.f32.partialorder %v5555_v50, inf  ;;  %vm3306_vm3 = vcmp.eq.f32.partialorder %v5555_v50, 0.0 }
 0xb46   : >> { %v3411_v35 = vadd.f32 1e-20, %v3301_v57  ;;  %v3394_v19 = vmul.f32 %v3378_v63, %v5778_v31  ;;  %v3377_v11 = vmul.f32 %v3895_v7, %v5485_v14  ;;  %3910 = vrcp.f32 %v3413_v58  ;;  %v5780_v14 = vld [vmem:[#allocation6_spill] sm:$0xff]  ;;  %v5782_v57 = vld [vmem:[#allocation9_spill] sm:$0xff] }
 0xb47   : >> { %v3897_v16 = vpop.eup %3896  ;;  %v3307_v32 = vand.u32 2147483648, %v5555_v50  ;;  %v3305_v47 = vsel %vm3304_vm12, %v5555_v50, %v3303_v30  ;;  %v3348_v24 = vadd.f32 1.0, %v5555_v50  ;;  %v3317_v23 = vmul.f32 %v5621_v62, %v5558_v22  ;;  %v5783_v30 = vld [vmem:[#allocation8_spill] sm:$0xff] }
 0xb48   : >> { %v3899_v42 = vpop.eup %3898  ;;  %v3376_v38 = vmul.f32 %v3897_v16, %v5503_v51  ;;  %3912 = vrcp.f32 %v3411_v35  ;;  %v3442_v49 = vmul.f32 %v3893_v6, %v3394_v19  ;;  %v3393_v44 = vmul.f32 %v3377_v11, %v5779_v54 }
 0xb49   : >> { %v3308_v33 = vsel %vm3306_vm3, %v3307_v32, %v3305_v47  ;;  %3914 = vrcp.f32 %v3348_v24  ;;  %vm3318_vm4 = vcmp.eq.f32.partialorder %v5558_v22, inf  ;;  %vm3320_vm5 = vcmp.eq.f32.partialorder %v5558_v22, 0.0 }
 0xb4a   : >> { %v3901_v45 = vpop.eup %3900  ;;  %v3392_v40 = vmul.f32 %v3376_v38, %v5780_v14  ;;  %v3412_v46 = vadd.f32 1e-20, %v3308_v33  ;;  %3493 = vperm.xlu0 %3768, %v3442_v49   ;;  %v3441_v25 = vmul.f32 %v3899_v42, %v3393_v44  ;;  %v3319_v12 = vsel %vm3318_vm4, %v5558_v22, %v3317_v23  ;;  %v5784_v49 = vld [vmem:[#allocation11_spill] sm:$0xff] }
 0xb4b   : >> { %v3903_v51 = vpop.eup %3902  ;;  %v3321_v36 = vand.u32 2147483648, %v5558_v22  ;;  %v3350_v62 = vadd.f32 1.0, %v5558_v22  ;;  %v3331_v56 = vmul.f32 %v5631_v59, %v5585_v53  ;;  %vm3332_vm1 = vcmp.eq.f32.partialorder %v5585_v53, inf }
 0xb4c   : >> { %v3440_v27 = vmul.f32 %v3901_v45, %v3392_v40  ;;  %v3372_v2 = vmul.f32 %v3903_v51, %v5506_v15  ;;  %3916 = vrcp.f32 %v3412_v46  ;;  %v3905_v8 = vpop.eup %3904  ;;  %3490 = vperm.xlu1 %3769, %v3441_v25   ;;  %vm3334_vm13 = vcmp.eq.f32.partialorder %v5585_v53, 0.0  ;;  %v5785_v40 = vld [vmem:[#allocation13_spill] sm:$0xff] }
 0xb4d   : >> { %v3322_v0 = vsel %vm3320_vm5, %v3321_v36, %v3319_v12  ;;  %v3907_v41 = vpop.eup %3906  ;;  %3918 = vrcp.f32 %v3350_v62  ;;  %v3335_v15 = vand.u32 2147483648, %v5585_v53  ;;  %v3333_v37 = vsel %vm3332_vm1, %v5585_v53, %v3331_v56  ;;  %v5786_v12 = vld [vmem:[#allocation12_spill] sm:$0xff] }
 0xb4e   : >> { %v3388_v43 = vmul.f32 %v3372_v2, %v5781_v61  ;;  %v3414_v34 = vadd.f32 1e-20, %v3322_v0  ;;  %3487 = vperm.xlu0 %3768, %v3440_v27   ;;  %v3381_v39 = vmul.f32 %v3907_v41, %v5530_v52  ;;  %v3352_v48 = vadd.f32 1.0, %v5585_v53  ;;  %v5787_v0 = vld [vmem:[#allocation10_spill] sm:$0xff] }
 0xb4f   : >> { %v3909_v21 = vpop.eup %3908  ;;  %v3324_v59 = vmul.f32 %v5635_v55, %v5588_v17  ;;  %v3336_v63 = vsel %vm3334_vm13, %v3335_v15, %v3333_v37  ;;  %vm3325_vm2 = vcmp.eq.f32.partialorder %v5588_v17, inf  ;;  %v3328_v55 = vand.u32 2147483648, %v5588_v17 }
 0xb50   : >> { %v3436_v26 = vmul.f32 %v3905_v8, %v3388_v43  ;;  %v3379_v6 = vmul.f32 %v3909_v21, %v5533_v13  ;;  %3920 = vrcp.f32 %v3414_v34  ;;  %v3911_v58 = vpop.eup %3910  ;;  %v3397_v7 = vmul.f32 %v3381_v39, %v5782_v57 }
 0xb51   : >> { %3922 = vrcp.f32 %v3352_v48  ;;  %v3416_v35 = vadd.f32 1e-20, %v3336_v63  ;;  %v3326_v31 = vsel %vm3325_vm2, %v5588_v17, %v3324_v59  ;;  %vm3327_vm8 = vcmp.eq.f32.partialorder %v5588_v17, 0.0 }
 0xb52   : >> { %v3913_v52 = vpop.eup %3912  ;;  %3475 = vperm.xlu1 %3769, %v3436_v26   ;;  %v3395_v16 = vmul.f32 %v3379_v6, %v5783_v30  ;;  %v3445_v19 = vmul.f32 %v3911_v58, %v3397_v7  ;;  %v3351_v13 = vadd.f32 1.0, %v5588_v17  ;;  %v3329_v42 = vsel %vm3327_vm8, %v3328_v55, %v3326_v31 }
 0xb53   : >> { %3924 = vrcp.f32 %v3416_v35  ;;  %v3915_v11 = vpop.eup %3914  ;;  %v3415_v47 = vadd.f32 1e-20, %v3329_v42  ;;  %vm3594_vm9 = vcmask 257024   ;;  %vm5788_vm10 = vcmask 1043459  }
 0xb54   : >> { %v3443_v32 = vmul.f32 %v3913_v52, %v3395_v16  ;;  %3502 = vperm.xlu0 %3768, %v3445_v19   ;;  %v3380_v38 = vmul.f32 %v3915_v11, %v5555_v50  ;;  %3926 = vrcp.f32 %v3351_v13 }
 0xb55   : >> { %3928 = vrcp.f32 %v3415_v47 }
 0xb56   : >> { %v3917_v24 = vpop.eup %3916  ;;  %3496 = vperm.xlu1 %3769, %v3443_v32   ;;  %v3396_v54 = vmul.f32 %v3380_v38, %v5784_v49 }
 0xb57   : >> { %v3919_v44 = vpop.eup %3918 }
 0xb58   : >> { %v3444_v33 = vmul.f32 %v3917_v24, %v3396_v54  ;;  %v3382_v23 = vmul.f32 %v3919_v44, %v5558_v22 }
 0xb5a   : >> { %v3921_v45 = vpop.eup %3920  ;;  %3499 = vperm.xlu0 %3768, %v3444_v33   ;;  %v3398_v46 = vmul.f32 %v3382_v23, %v5785_v40 }
 0xb5b   : >> { %v3923_v14 = vpop.eup %3922 }
 0xb5c   : >> { %v3384_v51 = vmul.f32 %v3923_v14, %v5585_v53  ;;  %v3446_v50 = vmul.f32 %v3921_v45, %v3398_v46 }
 0xb5d   : >> { %v3925_v25 = vpop.eup %3924 }
 0xb5e   : >> { %v3400_v36 = vmul.f32 %v3384_v51, %v5786_v12  ;;  %v3927_v27 = vpop.eup %3926  ;;  %3505 = vperm.xlu1 %3769, %v3446_v50  }
 0xb5f   : >> { %v3383_v62 = vmul.f32 %v3927_v27, %v5588_v17  ;;  %v3929_v8 = vpop.eup %3928 }
 0xb60   : >> { %v3448_v2 = vmul.f32 %v3925_v25, %v3400_v36 }
 0xb61   : >> { %v3399_v22 = vmul.f32 %v3383_v62, %v5787_v0 }
 0xb62   : >> { %3511 = vperm.xlu0 %3768, %v3448_v2  }
 0xb63   : >> { %v3447_v56 = vmul.f32 %v3929_v8, %v3399_v22 }
 0xb65   : >> { %3508 = vperm.xlu1 %3769, %v3447_v56  }
 0xbb8   : >> { %v3470_v41 = vpop.permute.xlu0 %3469 }
 0xbb9   : >> { %v3467_v61 = vpop.permute.xlu1 %3466  ;;  %v3520_v58 = vrot.slane %v3470_v41, %v5365_v29 }
 0xbba   : >> { %v3516_v57 = vrot.slane %v3467_v61, %v5372_v9 }
 0xbbc   : >> { %v3482_v43 = vpop.permute.xlu0 %3481  ;;  %v3521_v42 = vsel %vm2937_vm15, %v3520_v58, %v3516_v57 }
 0xbbd   : >> { %v3539_v17 = vrot.slane %v3482_v43, %v5365_v29 }
 0xbc0   : >> { %v3479_v34 = vpop.permute.xlu1 %3478 }
 0xbc1   : >> { %v3485_v53 = vpop.permute.xlu0 %3484  ;;  %v3535_v63 = vrot.slane %v3479_v34, %v5372_v9 }
 0xbc2   : >> { %v3544_v7 = vrot.slane %v3485_v53, %v5368_v18 }
 0xbc3   : >> { %v3540_v13 = vsel %vm2937_vm15, %v3539_v17, %v3535_v63 }
 0xbc4   : >> { %v3473_v15 = vpop.permute.xlu1 %3472  ;;  %v3545_v38 = vsel %vm2944_vm14, %v3544_v7, %v3540_v13 }
 0xbc5   : >> { %v3525_v52 = vrot.slane %v3473_v15, %v5368_v18 }
 0xbc7   : >> { %v3526_v24 = vsel %vm2944_vm14, %v3525_v52, %v3521_v42 }
 0xbc9   : >> { %v3494_v21 = vpop.permute.xlu0 %3493 }
 0xbca   : >> { %v3558_v30 = vrot.slane %v3494_v21, %v5365_v29 }
 0xbcb   : >> { %v3491_v39 = vpop.permute.xlu1 %3490 }
 0xbcc   : >> { %v3554_v16 = vrot.slane %v3491_v39, %v5372_v9 }
 0xbcd   : >> { %v3488_v37 = vpop.permute.xlu0 %3487 }
 0xbce   : >> { %v3549_v31 = vrot.slane %v3488_v37, %v5376_v10  ;;  %v3559_v49 = vsel %vm2937_vm15, %v3558_v30, %v3554_v16 }
 0xbd0   : >> { %v3550_v54 = vsel %vm3065_vm0, %v3549_v31, %v3545_v38 }
 0xbd1   : >> { %v3476_v48 = vpop.permute.xlu1 %3475 }
 0xbd2   : >> { %v3530_v55 = vrot.slane %v3476_v48, %v5376_v10 }
 0xbd3   : >> { %v3503_v59 = vpop.permute.xlu0 %3502 }
 0xbd4   : >> { %v3531_v44 = vsel %vm3065_vm0, %v3530_v55, %v3526_v24  ;;  %v3573_v33 = vrot.slane %v3503_v59, %v5372_v9 }
 0xbd5   : >> { %v3497_v26 = vpop.permute.xlu1 %3496  ;;  %v3589_v51 = vsel %vm1840_vm6, %v3550_v54, %v3531_v44 }
 0xbd6   : >> { %v3563_v19 = vrot.slane %v3497_v26, %v5368_v18 }
 0xbd8   : >> { %v3564_v23 = vsel %vm2944_vm14, %v3563_v19, %v3559_v49 }
 0xbd9   : >> { %v3500_v6 = vpop.permute.xlu0 %3499 }
 0xbda   : >> { %v3568_v11 = vrot.slane %v3500_v6, %v5376_v10 }
 0xbdc   : >> { %v3569_v40 = vsel %vm3065_vm0, %v3568_v11, %v3564_v23 }
 0xbdd   : >> { %v3506_v35 = vpop.permute.xlu1 %3505  ;;  %v3590_v9 = vsel %vm1842_vm7, %v3569_v40, %v3589_v51 }
 0xbde   : >> { %v3577_v47 = vrot.slane %v3506_v35, %v5365_v29 }
 0xbe0   : >> { %v3578_v29 = vsel %vm2937_vm15, %v3577_v47, %v3573_v33 }
 0xbe1   : >> { %v3512_v32 = vpop.permute.xlu0 %3511 }
 0xbe2   : >> { %v3587_v45 = vrot.slane %v3512_v32, %v5376_v10 }
 0xbe4   : >> { %v3509_v14 = vpop.permute.xlu1 %3508  ;;  %814 = sbr.rel (!%p812_p4) target bundleno = 683 (0x2ab), region = 85 }
 0xbe5   : >> { %v3582_v46 = vrot.slane %v3509_v14, %v5368_v18 }
 0xbe7   : >> { %v3583_v25 = vsel %vm2944_vm14, %v3582_v46, %v3578_v29 }
 0xbe8   : >> { %v3588_v50 = vsel %vm3065_vm0, %v3587_v45, %v3583_v25 }
 0xbe9   : >> { %v3591_v10 = vsel %vm5788_vm10, %v3588_v50, %v3590_v9 }
 0xbea   : >> { %3595 = vst.msk [vmem:[%s3593_s9] sm:$0xf] %vm3594_vm9, %v3591_v10 }
 0xbeb PF: > { %s16_s21 = sadd.s32 1, %s3940_s21  }
 0xbec   : > { %p13_p5 = scmp.ge.s32.totalorder %s16_s21, 4  }
 0xbee   :  { %15 = sbr.rel (!%p13_p5) target bundleno = 1 (0x1), region = 96 }

</bundles_post_ra>
